<compile_context>
chip_gen: v6e
topology: v6e:2x2x1
jax: 0.10.0
libtpu: 0.0.40
codegen_flags: <defaults>
</compile_context>

<pallas_src>
import math
from functools import partial

import jax
import jax.numpy as jnp
from jax.experimental import pallas as pl
from jax.experimental.pallas import tpu as pltpu


# --------------------- Kernel 1: encoder blocks + enc_linear ---------------------
def _encoder_kernel(mix_ref, w1_ref, b1_ref, w2_ref, b2_ref, we_ref, be_ref, o_ref):
    x = mix_ref[...].astype(jnp.float32)                                     # (nb, M)
    h1 = jnp.dot(x, w1_ref[...], preferred_element_type=jnp.float32) + b1_ref[...]
    h1 = jnp.maximum(h1, 0.2 * h1)          # LeakyReLU(0.2); Dropout(p=0) == identity
    h2 = jnp.dot(h1, w2_ref[...], preferred_element_type=jnp.float32) + b2_ref[...]
    h2 = jnp.maximum(h2, 0.2 * h2)
    # TODO(synk): Dropout(p=0.3) after this activation is identity (inference mode).
    o = jnp.dot(h2, we_ref[...], preferred_element_type=jnp.float32) + be_ref[...]
    o_ref[...] = o.astype(o_ref.dtype)                                       # (nb, S*W)


# ------ Kernel 2: attention + relu masks + linear_attn + decoder + rate softmax --
def _make_main_kernel(heads, head_dim, seq_len, width, nb, n_cell):
    H, D, S, W, C = heads, head_dim, seq_len, width, n_cell

    def kernel(x_ref, wqkv_ref, wo_ref, bo_ref, wsel_ref, bl_ref,
               wd1_ref, bd1_ref, g1_ref, be1_ref,
               wd2_ref, bd2_ref, g2_ref, be2_ref,
               wr_ref, br_ref,
               cell_ref, noise_ref, rate_ref):
        # x_ref: (nb, S, W) enc_mix chunk; all weights are full (grid-invariant) blocks.
        x2 = x_ref[...].astype(jnp.float32).reshape(nb * S, W)   # leading-dim merge: free

        # --- Q/K/V for all heads in ONE matmul (block-diagonal weight, scale folded) ---
        qkv = jnp.dot(x2, wqkv_ref[...], preferred_element_type=jnp.float32)  # (nb*S, 3W)
        wo_all = wo_ref[...]                                                   # (H, D, 2W)

        acc = None
        for h in range(H):                                      # static tiny head loop
            q = qkv[:, h * D:(h + 1) * D].reshape(nb, S, D)
            k = qkv[:, W + h * D:W + (h + 1) * D].reshape(nb, S, D)
            v = qkv[:, 2 * W + h * D:2 * W + (h + 1) * D].reshape(nb, S, D)
            e = jnp.einsum('nqd,nkd->nqk', q, k, preferred_element_type=jnp.float32)
            m = jnp.max(e, axis=-1, keepdims=True)
            p = jnp.exp(e - m)
            den = jnp.sum(p, axis=-1, keepdims=True)
            inv = pl.reciprocal(den, approx=True)               # EUP slot
            inv = inv * (2.0 - den * inv)                       # one Newton step
            ctx = jnp.einsum('nqk,nkd->nqd', p, v,
                             preferred_element_type=jnp.float32) * inv         # (nb,S,D)
            t = jnp.dot(ctx.reshape(nb * S, D), wo_all[h],
                        preferred_element_type=jnp.float32)                    # (nb*S,2W)
            acc = t if acc is None else acc + t

        attn = acc + bo_ref[...]              # columns pre-permuted: [mask0 | mask1]
        mask0 = jnp.maximum(attn[:, :W], 0.0)               # relu(attn_x[..., 0])
        mask1 = jnp.maximum(attn[:, W:2 * W], 0.0)          # relu(attn_x[..., 1])
        noise2 = mask0 * x2
        cell2 = mask1 * x2
        noise_ref[...] = noise2.reshape(nb, S, W).astype(noise_ref.dtype)
        cell_ref[...] = cell2.reshape(nb, S, W).astype(cell_ref.dtype)

        # --- linear_attn over the seq axis as a kron-selector matmul ---
        res = jnp.dot(wsel_ref[...], cell2,
                      preferred_element_type=jnp.float32) + bl_ref[...]        # (nb, W)

        # --- decoder: Linear + LayerNorm + LeakyReLU, twice ---
        t1 = jnp.dot(res, wd1_ref[...], preferred_element_type=jnp.float32) + bd1_ref[...]
        mu1 = jnp.mean(t1, axis=-1, keepdims=True)
        v1 = jnp.mean(jnp.square(t1 - mu1), axis=-1, keepdims=True)
        t1 = (t1 - mu1) * jax.lax.rsqrt(v1 + 1e-5) * g1_ref[...] + be1_ref[...]
        t1 = jnp.maximum(t1, 0.2 * t1)

        t2 = jnp.dot(t1, wd2_ref[...], preferred_element_type=jnp.float32) + bd2_ref[...]
        mu2 = jnp.mean(t2, axis=-1, keepdims=True)
        v2 = jnp.mean(jnp.square(t2 - mu2), axis=-1, keepdims=True)
        t2 = (t2 - mu2) * jax.lax.rsqrt(v2 + 1e-5) * g2_ref[...] + be2_ref[...]
        t2 = jnp.maximum(t2, 0.2 * t2)

        # --- rate_linear + softmax ---
        logits = jnp.dot(t2, wr_ref[...], preferred_element_type=jnp.float32) + br_ref[...]
        lm = jnp.max(logits, axis=-1, keepdims=True)
        pe = jnp.exp(logits - lm)
        rate_ref[...] = (pe / jnp.sum(pe, axis=-1, keepdims=True)).astype(rate_ref.dtype)

    return kernel


# ----------------------------------- Wrapper -------------------------------------
@partial(jax.jit, static_argnames=("heads", "feat_map_w", "feat_map_h",
                                   "num_cell_type", "batch_block"))
def mbdeconv_forward(mix, params, *, heads, feat_map_w, feat_map_h,
                     num_cell_type, batch_block=8):
    """Returns (extract_cell, noise, pred_rate) like MBdeconv.forward (inference)."""
    f32 = jnp.float32
    W, S, H, C = feat_map_w, feat_map_h, heads, num_cell_type
    D = W // H
    assert D * H == W, "feat_map_w must be divisible by heads"
    N, M = mix.shape
    nb = batch_block
    assert nb % 8 == 0
    n_pad = pl.cdiv(N, nb) * nb
    mix_p = mix if n_pad == N else jnp.pad(mix, ((0, n_pad - N), (0, 0)))
    grid = (n_pad // nb,)

    # ---- weight layout plumbing (nn.Linear computes x @ W.T) ----
    w1 = params["enc1_w"].T.astype(f32)
    b1 = params["enc1_b"].astype(f32).reshape(1, 2 * W)
    w2 = params["enc2_w"].T.astype(f32)
    b2 = params["enc2_b"].astype(f32).reshape(1, W)
    we = params["encl_w"].T.astype(f32)
    be = params["encl_b"].astype(f32).reshape(1, S * W)

    scale = 1.0 / math.sqrt(W)                    # softmax(energy / embed_size**0.5)
    eye_h = jnp.eye(H, dtype=f32)
    wqkv = jnp.concatenate(
        [jnp.kron(eye_h, params["wq"].T.astype(f32) * scale),
         jnp.kron(eye_h, params["wk"].T.astype(f32)),
         jnp.kron(eye_h, params["wv"].T.astype(f32))], axis=1)          # (W, 3W)

    # permute fc_out columns: even output features first (mask0), then odd (mask1)
    perm = jnp.concatenate([jnp.arange(0, 2 * W, 2), jnp.arange(1, 2 * W, 2)])
    wo_h = params["fc_w"].T.astype(f32)[:, perm].reshape(H, D, 2 * W)
    bo = params["fc_b"].astype(f32)[perm].reshape(1, 2 * W)

    wsel = jnp.kron(jnp.eye(nb, dtype=f32), params["lat_w"].astype(f32))  # (nb, nb*S)
    bl = params["lat_b"].astype(f32).reshape(1, 1)

    wd1 = params["d1_w"].T.astype(f32)
    bd1 = params["d1_b"].astype(f32).reshape(1, 2 * W)
    g1 = params["ln1_g"].astype(f32).reshape(1, 2 * W)
    be1 = params["ln1_b"].astype(f32).reshape(1, 2 * W)
    wd2 = params["d2_w"].T.astype(f32)
    bd2 = params["d2_b"].astype(f32).reshape(1, W)
    g2 = params["ln2_g"].astype(f32).reshape(1, W)
    be2 = params["ln2_b"].astype(f32).reshape(1, W)
    wr = params["rate_w"].T.astype(f32)
    br = params["rate_b"].astype(f32).reshape(1, C)

    # ---- kernel 1: encoder + enc_linear, lane-dense (nb, S*W) output ----
    enc_flat = pl.pallas_call(
        _encoder_kernel,
        out_shape=jax.ShapeDtypeStruct((n_pad, S * W), f32),
        grid_spec=pltpu.PrefetchScalarGridSpec(
            num_scalar_prefetch=0, grid=grid,
            in_specs=[
                pl.BlockSpec((nb, M), lambda i: (i, 0)),
                pl.BlockSpec((M, 2 * W), lambda i: (0, 0)),
                pl.BlockSpec((1, 2 * W), lambda i: (0, 0)),
                pl.BlockSpec((2 * W, W), lambda i: (0, 0)),
                pl.BlockSpec((1, W), lambda i: (0, 0)),
                pl.BlockSpec((W, S * W), lambda i: (0, 0)),
                pl.BlockSpec((1, S * W), lambda i: (0, 0)),
            ],
            out_specs=pl.BlockSpec((nb, S * W), lambda i: (i, 0)),
        ),
        compiler_params=pltpu.CompilerParams(dimension_semantics=("parallel",)),
    )(mix_p, w1, b1, w2, b2, we, be)

    # row-major metadata reshape in XLA; the seq-axis relayout is done by the
    # BlockSpec DMA of kernel 2 (no in-kernel cross-lane reshape/transpose).
    enc_mix = enc_flat.reshape(n_pad, S, W)

    kernel2 = _make_main_kernel(H, D, S, W, nb, C)
    cell, noise, rate = pl.pallas_call(
        kernel2,
        out_shape=(jax.ShapeDtypeStruct((n_pad, S, W), f32),
                   jax.ShapeDtypeStruct((n_pad, S, W), f32),
                   jax.ShapeDtypeStruct((n_pad, C), f32)),
        grid_spec=pltpu.PrefetchScalarGridSpec(
            num_scalar_prefetch=0, grid=grid,
            in_specs=[
                pl.BlockSpec((nb, S, W), lambda i: (i, 0, 0)),
                pl.BlockSpec((W, 3 * W), lambda i: (0, 0)),
                pl.BlockSpec((H, D, 2 * W), lambda i: (0, 0, 0)),
                pl.BlockSpec((1, 2 * W), lambda i: (0, 0)),
                pl.BlockSpec((nb, nb * S), lambda i: (0, 0)),
                pl.BlockSpec((1, 1), lambda i: (0, 0)),
                pl.BlockSpec((W, 2 * W), lambda i: (0, 0)),
                pl.BlockSpec((1, 2 * W), lambda i: (0, 0)),
                pl.BlockSpec((1, 2 * W), lambda i: (0, 0)),
                pl.BlockSpec((1, 2 * W), lambda i: (0, 0)),
                pl.BlockSpec((2 * W, W), lambda i: (0, 0)),
                pl.BlockSpec((1, W), lambda i: (0, 0)),
                pl.BlockSpec((1, W), lambda i: (0, 0)),
                pl.BlockSpec((1, W), lambda i: (0, 0)),
                pl.BlockSpec((W, C), lambda i: (0, 0)),
                pl.BlockSpec((1, C), lambda i: (0, 0)),
            ],
            out_specs=(pl.BlockSpec((nb, S, W), lambda i: (i, 0, 0)),
                       pl.BlockSpec((nb, S, W), lambda i: (i, 0, 0)),
                       pl.BlockSpec((nb, C), lambda i: (i, 0))),
        ),
        compiler_params=pltpu.CompilerParams(dimension_semantics=("parallel",)),
    )(enc_mix, wqkv, wo_h, bo, wsel, bl,
      wd1, bd1, g1, be1, wd2, bd2, g2, be2, wr, br)

    return cell[:N], noise[:N], rate[:N]


# --------------------------- Pure-JAX reference ----------------------------------
def reference_forward(mix, params, *, heads, feat_map_w, feat_map_h, num_cell_type):
    f32 = jnp.float32
    W, S, H = feat_map_w, feat_map_h, heads
    D = W // H
    x = mix.astype(f32)
    h1 = x @ params["enc1_w"].T + params["enc1_b"]
    h1 = jnp.where(h1 >= 0, h1, 0.2 * h1)
    h2 = h1 @ params["enc2_w"].T + params["enc2_b"]
    h2 = jnp.where(h2 >= 0, h2, 0.2 * h2)
    enc = h2 @ params["encl_w"].T + params["encl_b"]
    enc_mix = enc.reshape(-1, S, W)
    N = enc_mix.shape[0]
    xh = enc_mix.reshape(N, S, H, D)
    q = jnp.einsum('nqhd,ed->nqhe', xh, params["wq"])
    k = jnp.einsum('nkhd,ed->nkhe', xh, params["wk"])
    v = jnp.einsum('nvhd,ed->nvhe', xh, params["wv"])
    energy = jnp.einsum('nqhd,nkhd->nhqk', q, k)
    attn = jax.nn.softmax(energy / math.sqrt(W), axis=3)
    out = jnp.einsum('nhql,nlhd->nqhd', attn, v).reshape(N, S, H * D)
    attn_x = (out @ params["fc_w"].T + params["fc_b"]).reshape(N, S, W, 2)
    noise = jax.nn.relu(attn_x[..., 0]) * enc_mix
    cell = jax.nn.relu(attn_x[..., 1]) * enc_mix
    res = jnp.einsum('nsw,s->nw', cell, params["lat_w"][0]) + params["lat_b"][0]

    def layer(t, w, b, g, be):
        t = t @ w.T + b
        mu = t.mean(-1, keepdims=True)
        var = ((t - mu) ** 2).mean(-1, keepdims=True)
        t = (t - mu) / jnp.sqrt(var + 1e-5) * g + be
        return jnp.where(t >= 0, t, 0.2 * t)

    t = layer(res, params["d1_w"], params["d1_b"], params["ln1_g"], params["ln1_b"])
    t = layer(t, params["d2_w"], params["d2_b"], params["ln2_g"], params["ln2_b"])
    logits = t @ params["rate_w"].T + params["rate_b"]
    pred = jax.nn.softmax(logits, axis=-1)
    return cell, noise, pred


if __name__ == "__main__":
    num_MB, feat_map_w, feat_map_h = 64, 32, 8
    heads, num_cell_type = 4, 8
    W, S, C, M = feat_map_w, feat_map_h, num_cell_type, num_MB
    D = W // heads

    key = jax.random.PRNGKey(0)
    ks = jax.random.split(key, 24)

    def uni(k, shape, fan_in):
        lim = 1.0 / math.sqrt(fan_in)
        return jax.random.uniform(k, shape, minval=-lim, maxval=lim, dtype=jnp.float32)

    params = {
        "enc1_w": uni(ks[0], (2 * W, M), M), "enc1_b": uni(ks[1], (2 * W,), M),
        "enc2_w": uni(ks[2], (W, 2 * W), 2 * W), "enc2_b": uni(ks[3], (W,), 2 * W),
        "encl_w": uni(ks[4], (S * W, W), W), "encl_b": uni(ks[5], (S * W,), W),
        "wq": uni(ks[6], (D, D), D), "wk": uni(ks[7], (D, D), D), "wv": uni(ks[8], (D, D), D),
        "fc_w": uni(ks[9], (2 * W, W), W), "fc_b": uni(ks[10], (2 * W,), W),
        "lat_w": uni(ks[11], (1, S), S), "lat_b": uni(ks[12], (1,), S),
        "d1_w": uni(ks[13], (2 * W, W), W), "d1_b": uni(ks[14], (2 * W,), W),
        "ln1_g": 1.0 + 0.1 * jax.random.normal(ks[15], (2 * W,), dtype=jnp.float32),
        "ln1_b": 0.1 * jax.random.normal(ks[16], (2 * W,), dtype=jnp.float32),
        "d2_w": uni(ks[17], (W, 2 * W), 2 * W), "d2_b": uni(ks[18], (W,), 2 * W),
        "ln2_g": 1.0 + 0.1 * jax.random.normal(ks[19], (W,), dtype=jnp.float32),
        "ln2_b": 0.1 * jax.random.normal(ks[20], (W,), dtype=jnp.float32),
        "rate_w": uni(ks[21], (C, W), W), "rate_b": uni(ks[22], (C,), W),
    }

    fwd = partial(mbdeconv_forward, heads=heads, feat_map_w=W, feat_map_h=S,
                  num_cell_type=C, batch_block=8)
    ref = partial(reference_forward, heads=heads, feat_map_w=W, feat_map_h=S,
                  num_cell_type=C)

    # Small batch: single grid step (batch padded 2 -> 8).
    mix = jax.random.normal(ks[23], (2, M), dtype=jnp.float32)
    cell, noise, rate = jax.block_until_ready(fwd(mix, params))
    cell_r, noise_r, rate_r = ref(mix, params)
    assert cell.shape == (2, S, W) and noise.shape == (2, S, W) and rate.shape == (2, C)
    for a, b, nm in ((cell, cell_r, "extract_cell"), (noise, noise_r, "noise"),
                     (rate, rate_r, "pred_rate")):
        assert jnp.allclose(a, b, atol=1e-4, rtol=1e-4), f"mismatch in {nm} (N=2)"

    # Larger batch: multi-step parallel grid + batch padding (18 -> 24, 3 steps).
    mix_big = jax.random.normal(jax.random.PRNGKey(1), (18, M), dtype=jnp.float32)
    outs = jax.block_until_ready(fwd(mix_big, params))
    refs = ref(mix_big, params)
    for a, b, nm in zip(outs, refs, ("extract_cell", "noise", "pred_rate")):
        assert a.shape == b.shape
        assert jnp.allclose(a, b, atol=1e-4, rtol=1e-4), f"mismatch in {nm} (N=18)"

    print("KERNEL_OK")
</pallas_src>

<mosaic_0001>
module attributes {stable_mosaic.version = 11 : i64} {
  func.func @_encoder_kernel(%arg0: i32, %arg1: memref<8x64xf32, #tpu.memory_space<vmem>>, %arg2: memref<64x64xf32, #tpu.memory_space<vmem>>, %arg3: memref<1x64xf32, #tpu.memory_space<vmem>>, %arg4: memref<64x32xf32, #tpu.memory_space<vmem>>, %arg5: memref<1x32xf32, #tpu.memory_space<vmem>>, %arg6: memref<32x256xf32, #tpu.memory_space<vmem>>, %arg7: memref<1x256xf32, #tpu.memory_space<vmem>>, %arg8: memref<8x256xf32, #tpu.memory_space<vmem>>) attributes {dimension_semantics = [#tpu.dimension_semantics<parallel>], iteration_bounds = array<i64: 1>, scalar_prefetch = 0 : i64, scratch_operands = 0 : i64, tpu.core_type = #tpu.core_type<tc>, window_params = [{transform_indices = @transform_0, window_bounds = array<i64: 8, 64>}, {pipeline_mode = #tpu.pipeline_mode<synchronous>, transform_indices = @transform_1, window_bounds = array<i64: 64, 64>}, {pipeline_mode = #tpu.pipeline_mode<synchronous>, transform_indices = @transform_2, window_bounds = array<i64: 1, 64>}, {pipeline_mode = #tpu.pipeline_mode<synchronous>, transform_indices = @transform_3, window_bounds = array<i64: 64, 32>}, {pipeline_mode = #tpu.pipeline_mode<synchronous>, transform_indices = @transform_4, window_bounds = array<i64: 1, 32>}, {pipeline_mode = #tpu.pipeline_mode<synchronous>, transform_indices = @transform_5, window_bounds = array<i64: 32, 256>}, {pipeline_mode = #tpu.pipeline_mode<synchronous>, transform_indices = @transform_6, window_bounds = array<i64: 1, 256>}, {transform_indices = @transform_7, window_bounds = array<i64: 8, 256>}]} {
    %c0 = arith.constant 0 : index
    %c0_0 = arith.constant 0 : index
    %0 = vector.load %arg1[%c0, %c0_0] : memref<8x64xf32, #tpu.memory_space<vmem>>, vector<8x64xf32>
    %c0_1 = arith.constant 0 : index
    %c0_2 = arith.constant 0 : index
    %1 = vector.load %arg2[%c0_1, %c0_2] : memref<64x64xf32, #tpu.memory_space<vmem>>, vector<64x64xf32>
    %cst = arith.constant dense<0.000000e+00> : vector<8x64xf32>
    %2 = tpu.matmul %0, %1, %cst {dimension_numbers = #tpu.dot_dimension_numbers<[1], [0], [0], [1], [0, 0, 1, 1], [], []>} : vector<8x64xf32>, vector<64x64xf32>, vector<8x64xf32> -> vector<8x64xf32>
    %c0_3 = arith.constant 0 : index
    %c0_4 = arith.constant 0 : index
    %3 = vector.load %arg3[%c0_3, %c0_4] : memref<1x64xf32, #tpu.memory_space<vmem>>, vector<1x64xf32>
    %4 = vector.broadcast %3 : vector<1x64xf32> to vector<8x64xf32>
    %5 = arith.addf %2, %4 : vector<8x64xf32>
    %cst_5 = arith.constant 2.000000e-01 : f32
    %6 = vector.broadcast %cst_5 : f32 to vector<8x64xf32>
    %7 = arith.mulf %6, %5 : vector<8x64xf32>
    %8 = arith.maximumf %5, %7 : vector<8x64xf32>
    %c0_6 = arith.constant 0 : index
    %c0_7 = arith.constant 0 : index
    %9 = vector.load %arg4[%c0_6, %c0_7] : memref<64x32xf32, #tpu.memory_space<vmem>>, vector<64x32xf32>
    %cst_8 = arith.constant dense<0.000000e+00> : vector<8x32xf32>
    %10 = tpu.matmul %8, %9, %cst_8 {dimension_numbers = #tpu.dot_dimension_numbers<[1], [0], [0], [1], [0, 0, 1, 1], [], []>} : vector<8x64xf32>, vector<64x32xf32>, vector<8x32xf32> -> vector<8x32xf32>
    %c0_9 = arith.constant 0 : index
    %c0_10 = arith.constant 0 : index
    %11 = vector.load %arg5[%c0_9, %c0_10] : memref<1x32xf32, #tpu.memory_space<vmem>>, vector<1x32xf32>
    %12 = vector.broadcast %11 : vector<1x32xf32> to vector<8x32xf32>
    %13 = arith.addf %10, %12 : vector<8x32xf32>
    %cst_11 = arith.constant 2.000000e-01 : f32
    %14 = vector.broadcast %cst_11 : f32 to vector<8x32xf32>
    %15 = arith.mulf %14, %13 : vector<8x32xf32>
    %16 = arith.maximumf %13, %15 : vector<8x32xf32>
    %c0_12 = arith.constant 0 : index
    %c0_13 = arith.constant 0 : index
    %17 = vector.load %arg6[%c0_12, %c0_13] : memref<32x256xf32, #tpu.memory_space<vmem>>, vector<32x256xf32>
    %cst_14 = arith.constant dense<0.000000e+00> : vector<8x256xf32>
    %18 = tpu.matmul %16, %17, %cst_14 {dimension_numbers = #tpu.dot_dimension_numbers<[1], [0], [0], [1], [0, 0, 1, 1], [], []>} : vector<8x32xf32>, vector<32x256xf32>, vector<8x256xf32> -> vector<8x256xf32>
    %c0_15 = arith.constant 0 : index
    %c0_16 = arith.constant 0 : index
    %19 = vector.load %arg7[%c0_15, %c0_16] : memref<1x256xf32, #tpu.memory_space<vmem>>, vector<1x256xf32>
    %20 = vector.broadcast %19 : vector<1x256xf32> to vector<8x256xf32>
    %21 = arith.addf %18, %20 : vector<8x256xf32>
    %c0_17 = arith.constant 0 : index
    %c0_18 = arith.constant 0 : index
    %22 = vector.load %arg8[%c0_17, %c0_18] : memref<8x256xf32, #tpu.memory_space<vmem>>, vector<8x256xf32>
    tpu.vector_store %arg8[%c0_17, %c0_18], %21 {strides = array<i32>} : memref<8x256xf32, #tpu.memory_space<vmem>>, vector<8x256xf32>,
    return
  }
  func.func @transform_0(%arg0: i32) -> (i32, i32) {
    %c0_i32 = arith.constant 0 : i32
    %c0_i32_0 = arith.constant 0 : i32
    return %arg0, %c0_i32 : i32, i32
  }
  func.func @transform_1(%arg0: i32) -> (i32, i32) {
    %c0_i32 = arith.constant 0 : i32
    %c0_i32_0 = arith.constant 0 : i32
    %c0_i32_1 = arith.constant 0 : i32
    return %c0_i32, %c0_i32_0 : i32, i32
  }
  func.func @transform_2(%arg0: i32) -> (i32, i32) {
    %c0_i32 = arith.constant 0 : i32
    %c0_i32_0 = arith.constant 0 : i32
    %c0_i32_1 = arith.constant 0 : i32
    return %c0_i32, %c0_i32_0 : i32, i32
  }
  func.func @transform_3(%arg0: i32) -> (i32, i32) {
    %c0_i32 = arith.constant 0 : i32
    %c0_i32_0 = arith.constant 0 : i32
    %c0_i32_1 = arith.constant 0 : i32
    return %c0_i32, %c0_i32_0 : i32, i32
  }
  func.func @transform_4(%arg0: i32) -> (i32, i32) {
    %c0_i32 = arith.constant 0 : i32
    %c0_i32_0 = arith.constant 0 : i32
    %c0_i32_1 = arith.constant 0 : i32
    return %c0_i32, %c0_i32_0 : i32, i32
  }
  func.func @transform_5(%arg0: i32) -> (i32, i32) {
    %c0_i32 = arith.constant 0 : i32
    %c0_i32_0 = arith.constant 0 : i32
    %c0_i32_1 = arith.constant 0 : i32
    return %c0_i32, %c0_i32_0 : i32, i32
  }
  func.func @transform_6(%arg0: i32) -> (i32, i32) {
    %c0_i32 = arith.constant 0 : i32
    %c0_i32_0 = arith.constant 0 : i32
    %c0_i32_1 = arith.constant 0 : i32
    return %c0_i32, %c0_i32_0 : i32, i32
  }
  func.func @transform_7(%arg0: i32) -> (i32, i32) {
    %c0_i32 = arith.constant 0 : i32
    %c0_i32_0 = arith.constant 0 : i32
    return %arg0, %c0_i32 : i32, i32
  }
}

module attributes {stable_mosaic.version = 11 : i64} {
  func.func @kernel(%arg0: i32, %arg1: memref<8x8x32xf32, #tpu.memory_space<vmem>>, %arg2: memref<32x96xf32, #tpu.memory_space<vmem>>, %arg3: memref<4x8x64xf32, #tpu.memory_space<vmem>>, %arg4: memref<1x64xf32, #tpu.memory_space<vmem>>, %arg5: memref<8x64xf32, #tpu.memory_space<vmem>>, %arg6: memref<1x1xf32, #tpu.memory_space<vmem>>, %arg7: memref<32x64xf32, #tpu.memory_space<vmem>>, %arg8: memref<1x64xf32, #tpu.memory_space<vmem>>, %arg9: memref<1x64xf32, #tpu.memory_space<vmem>>, %arg10: memref<1x64xf32, #tpu.memory_space<vmem>>, %arg11: memref<64x32xf32, #tpu.memory_space<vmem>>, %arg12: memref<1x32xf32, #tpu.memory_space<vmem>>, %arg13: memref<1x32xf32, #tpu.memory_space<vmem>>, %arg14: memref<1x32xf32, #tpu.memory_space<vmem>>, %arg15: memref<32x8xf32, #tpu.memory_space<vmem>>, %arg16: memref<1x8xf32, #tpu.memory_space<vmem>>, %arg17: memref<8x8x32xf32, #tpu.memory_space<vmem>>, %arg18: memref<8x8x32xf32, #tpu.memory_space<vmem>>, %arg19: memref<8x8xf32, #tpu.memory_space<vmem>>) attributes {dimension_semantics = [#tpu.dimension_semantics<parallel>], iteration_bounds = array<i64: 1>, scalar_prefetch = 0 : i64, scratch_operands = 0 : i64, tpu.core_type = #tpu.core_type<tc>, window_params = [{transform_indices = @transform_0, window_bounds = array<i64: 8, 8, 32>}, {pipeline_mode = #tpu.pipeline_mode<synchronous>, transform_indices = @transform_1, window_bounds = array<i64: 32, 96>}, {pipeline_mode = #tpu.pipeline_mode<synchronous>, transform_indices = @transform_2, window_bounds = array<i64: 4, 8, 64>}, {pipeline_mode = #tpu.pipeline_mode<synchronous>, transform_indices = @transform_3, window_bounds = array<i64: 1, 64>}, {pipeline_mode = #tpu.pipeline_mode<synchronous>, transform_indices = @transform_4, window_bounds = array<i64: 8, 64>}, {pipeline_mode = #tpu.pipeline_mode<synchronous>, transform_indices = @transform_5, window_bounds = array<i64: 1, 1>}, {pipeline_mode = #tpu.pipeline_mode<synchronous>, transform_indices = @transform_6, window_bounds = array<i64: 32, 64>}, {pipeline_mode = #tpu.pipeline_mode<synchronous>, transform_indices = @transform_7, window_bounds = array<i64: 1, 64>}, {pipeline_mode = #tpu.pipeline_mode<synchronous>, transform_indices = @transform_8, window_bounds = array<i64: 1, 64>}, {pipeline_mode = #tpu.pipeline_mode<synchronous>, transform_indices = @transform_9, window_bounds = array<i64: 1, 64>}, {pipeline_mode = #tpu.pipeline_mode<synchronous>, transform_indices = @transform_10, window_bounds = array<i64: 64, 32>}, {pipeline_mode = #tpu.pipeline_mode<synchronous>, transform_indices = @transform_11, window_bounds = array<i64: 1, 32>}, {pipeline_mode = #tpu.pipeline_mode<synchronous>, transform_indices = @transform_12, window_bounds = array<i64: 1, 32>}, {pipeline_mode = #tpu.pipeline_mode<synchronous>, transform_indices = @transform_13, window_bounds = array<i64: 1, 32>}, {pipeline_mode = #tpu.pipeline_mode<synchronous>, transform_indices = @transform_14, window_bounds = array<i64: 32, 8>}, {pipeline_mode = #tpu.pipeline_mode<synchronous>, transform_indices = @transform_15, window_bounds = array<i64: 1, 8>}, {transform_indices = @transform_16, window_bounds = array<i64: 8, 8, 32>}, {transform_indices = @transform_17, window_bounds = array<i64: 8, 8, 32>}, {transform_indices = @transform_18, window_bounds = array<i64: 8, 8>}]} {
    %c0 = arith.constant 0 : index
    %c0_0 = arith.constant 0 : index
    %c0_1 = arith.constant 0 : index
    %0 = vector.load %arg1[%c0, %c0_0, %c0_1] : memref<8x8x32xf32, #tpu.memory_space<vmem>>, vector<8x8x32xf32>
    %1 = vector.shape_cast %0 : vector<8x8x32xf32> to vector<64x32xf32>
    %c0_2 = arith.constant 0 : index
    %c0_3 = arith.constant 0 : index
    %2 = vector.load %arg2[%c0_2, %c0_3] : memref<32x96xf32, #tpu.memory_space<vmem>>, vector<32x96xf32>
    %cst = arith.constant dense<0.000000e+00> : vector<64x96xf32>
    %3 = tpu.matmul %1, %2, %cst {dimension_numbers = #tpu.dot_dimension_numbers<[1], [0], [0], [1], [0, 0, 1, 1], [], []>} : vector<64x32xf32>, vector<32x96xf32>, vector<64x96xf32> -> vector<64x96xf32>
    %c0_4 = arith.constant 0 : index
    %c0_5 = arith.constant 0 : index
    %c0_6 = arith.constant 0 : index
    %4 = vector.load %arg3[%c0_4, %c0_5, %c0_6] : memref<4x8x64xf32, #tpu.memory_space<vmem>>, vector<4x8x64xf32>
    %5 = vector.extract_strided_slice %3 {offsets = [0, 0], sizes = [64, 8], strides = [1, 1]} : vector<64x96xf32> to vector<64x8xf32>
    %6 = vector.shape_cast %5 : vector<64x8xf32> to vector<8x8x8xf32>
    %7 = vector.extract_strided_slice %3 {offsets = [0, 32], sizes = [64, 8], strides = [1, 1]} : vector<64x96xf32> to vector<64x8xf32>
    %8 = vector.shape_cast %7 : vector<64x8xf32> to vector<8x8x8xf32>
    %9 = vector.extract_strided_slice %3 {offsets = [0, 64], sizes = [64, 8], strides = [1, 1]} : vector<64x96xf32> to vector<64x8xf32>
    %10 = vector.shape_cast %9 : vector<64x8xf32> to vector<8x8x8xf32>
    "tpu.trace_start"() <{level = 10 : i32, message = "nqd,nkd->nqk"}> : () -> ()
    %cst_7 = arith.constant dense<0.000000e+00> : vector<8x8x8xf32>
    %11 = tpu.matmul %6, %8, %cst_7 {dimension_numbers = #tpu.dot_dimension_numbers<[2], [2], [1], [1], [0, 0, 0, 1, 1, 1], [0], [0]>} : vector<8x8x8xf32>, vector<8x8x8xf32>, vector<8x8x8xf32> -> vector<8x8x8xf32>
    "tpu.trace_stop"() : () -> ()
    %cst_8 = arith.constant dense<0xFF800000> : vector<8x8xf32>
    %12 = vector.multi_reduction <maximumf>, %11, %cst_8 [2] : vector<8x8x8xf32> to vector<8x8xf32>
    %13 = vector.shape_cast %12 : vector<8x8xf32> to vector<8x8x1xf32>
    %14 = vector.broadcast %13 : vector<8x8x1xf32> to vector<8x8x8xf32>
    %15 = arith.subf %11, %14 : vector<8x8x8xf32>
    %16 = math.exp %15 : vector<8x8x8xf32>
    %cst_9 = arith.constant dense<0.000000e+00> : vector<8x8xf32>
    %17 = vector.multi_reduction <add>, %16, %cst_9 [2] : vector<8x8x8xf32> to vector<8x8xf32>
    %18 = vector.shape_cast %17 : vector<8x8xf32> to vector<8x8x1xf32>
    %19 = tpu.reciprocal %18 {approx = true} : vector<8x8x1xf32> -> vector<8x8x1xf32>
    %20 = arith.mulf %18, %19 : vector<8x8x1xf32>
    %cst_10 = arith.constant 2.000000e+00 : f32
    %21 = vector.broadcast %cst_10 : f32 to vector<8x8x1xf32>
    %22 = arith.subf %21, %20 : vector<8x8x1xf32>
    %23 = arith.mulf %19, %22 : vector<8x8x1xf32>
    "tpu.trace_start"() <{level = 10 : i32, message = "nqk,nkd->nqd"}> : () -> ()
    %cst_11 = arith.constant dense<0.000000e+00> : vector<8x8x8xf32>
    %24 = tpu.matmul %16, %10, %cst_11 {dimension_numbers = #tpu.dot_dimension_numbers<[2], [1], [1], [2], [0, 0, 0, 1, 1, 2], [0], [0]>} : vector<8x8x8xf32>, vector<8x8x8xf32>, vector<8x8x8xf32> -> vector<8x8x8xf32>
    "tpu.trace_stop"() : () -> ()
    %25 = vector.broadcast %23 : vector<8x8x1xf32> to vector<8x8x8xf32>
    %26 = arith.mulf %24, %25 : vector<8x8x8xf32>
    %27 = vector.shape_cast %26 : vector<8x8x8xf32> to vector<64x8xf32>
    %28 = vector.extract_strided_slice %4 {offsets = [0, 0, 0], sizes = [1, 8, 64], strides = [1, 1, 1]} : vector<4x8x64xf32> to vector<1x8x64xf32>
    %29 = vector.shape_cast %28 : vector<1x8x64xf32> to vector<8x64xf32>
    %cst_12 = arith.constant dense<0.000000e+00> : vector<64x64xf32>
    %30 = tpu.matmul %27, %29, %cst_12 {dimension_numbers = #tpu.dot_dimension_numbers<[1], [0], [0], [1], [0, 0, 1, 1], [], []>} : vector<64x8xf32>, vector<8x64xf32>, vector<64x64xf32> -> vector<64x64xf32>
    %31 = vector.extract_strided_slice %3 {offsets = [0, 8], sizes = [64, 8], strides = [1, 1]} : vector<64x96xf32> to vector<64x8xf32>
    %32 = vector.shape_cast %31 : vector<64x8xf32> to vector<8x8x8xf32>
    %33 = vector.extract_strided_slice %3 {offsets = [0, 40], sizes = [64, 8], strides = [1, 1]} : vector<64x96xf32> to vector<64x8xf32>
    %34 = vector.shape_cast %33 : vector<64x8xf32> to vector<8x8x8xf32>
    %35 = vector.extract_strided_slice %3 {offsets = [0, 72], sizes = [64, 8], strides = [1, 1]} : vector<64x96xf32> to vector<64x8xf32>
    %36 = vector.shape_cast %35 : vector<64x8xf32> to vector<8x8x8xf32>
    "tpu.trace_start"() <{level = 10 : i32, message = "nqd,nkd->nqk"}> : () -> ()
    %cst_13 = arith.constant dense<0.000000e+00> : vector<8x8x8xf32>
    %37 = tpu.matmul %32, %34, %cst_13 {dimension_numbers = #tpu.dot_dimension_numbers<[2], [2], [1], [1], [0, 0, 0, 1, 1, 1], [0], [0]>} : vector<8x8x8xf32>, vector<8x8x8xf32>, vector<8x8x8xf32> -> vector<8x8x8xf32>
    "tpu.trace_stop"() : () -> ()
    %cst_14 = arith.constant dense<0xFF800000> : vector<8x8xf32>
    %38 = vector.multi_reduction <maximumf>, %37, %cst_14 [2] : vector<8x8x8xf32> to vector<8x8xf32>
    %39 = vector.shape_cast %38 : vector<8x8xf32> to vector<8x8x1xf32>
    %40 = vector.broadcast %39 : vector<8x8x1xf32> to vector<8x8x8xf32>
    %41 = arith.subf %37, %40 : vector<8x8x8xf32>
    %42 = math.exp %41 : vector<8x8x8xf32>
    %cst_15 = arith.constant dense<0.000000e+00> : vector<8x8xf32>
    %43 = vector.multi_reduction <add>, %42, %cst_15 [2] : vector<8x8x8xf32> to vector<8x8xf32>
    %44 = vector.shape_cast %43 : vector<8x8xf32> to vector<8x8x1xf32>
    %45 = tpu.reciprocal %44 {approx = true} : vector<8x8x1xf32> -> vector<8x8x1xf32>
    %46 = arith.mulf %44, %45 : vector<8x8x1xf32>
    %cst_16 = arith.constant 2.000000e+00 : f32
    %47 = vector.broadcast %cst_16 : f32 to vector<8x8x1xf32>
    %48 = arith.subf %47, %46 : vector<8x8x1xf32>
    %49 = arith.mulf %45, %48 : vector<8x8x1xf32>
    "tpu.trace_start"() <{level = 10 : i32, message = "nqk,nkd->nqd"}> : () -> ()
    %cst_17 = arith.constant dense<0.000000e+00> : vector<8x8x8xf32>
    %50 = tpu.matmul %42, %36, %cst_17 {dimension_numbers = #tpu.dot_dimension_numbers<[2], [1], [1], [2], [0, 0, 0, 1, 1, 2], [0], [0]>} : vector<8x8x8xf32>, vector<8x8x8xf32>, vector<8x8x8xf32> -> vector<8x8x8xf32>
    "tpu.trace_stop"() : () -> ()
    %51 = vector.broadcast %49 : vector<8x8x1xf32> to vector<8x8x8xf32>
    %52 = arith.mulf %50, %51 : vector<8x8x8xf32>
    %53 = vector.shape_cast %52 : vector<8x8x8xf32> to vector<64x8xf32>
    %54 = vector.extract_strided_slice %4 {offsets = [1, 0, 0], sizes = [1, 8, 64], strides = [1, 1, 1]} : vector<4x8x64xf32> to vector<1x8x64xf32>
    %55 = vector.shape_cast %54 : vector<1x8x64xf32> to vector<8x64xf32>
    %cst_18 = arith.constant dense<0.000000e+00> : vector<64x64xf32>
    %56 = tpu.matmul %53, %55, %cst_18 {dimension_numbers = #tpu.dot_dimension_numbers<[1], [0], [0], [1], [0, 0, 1, 1], [], []>} : vector<64x8xf32>, vector<8x64xf32>, vector<64x64xf32> -> vector<64x64xf32>
    %57 = arith.addf %30, %56 : vector<64x64xf32>
    %58 = vector.extract_strided_slice %3 {offsets = [0, 16], sizes = [64, 8], strides = [1, 1]} : vector<64x96xf32> to vector<64x8xf32>
    %59 = vector.shape_cast %58 : vector<64x8xf32> to vector<8x8x8xf32>
    %60 = vector.extract_strided_slice %3 {offsets = [0, 48], sizes = [64, 8], strides = [1, 1]} : vector<64x96xf32> to vector<64x8xf32>
    %61 = vector.shape_cast %60 : vector<64x8xf32> to vector<8x8x8xf32>
    %62 = vector.extract_strided_slice %3 {offsets = [0, 80], sizes = [64, 8], strides = [1, 1]} : vector<64x96xf32> to vector<64x8xf32>
    %63 = vector.shape_cast %62 : vector<64x8xf32> to vector<8x8x8xf32>
    "tpu.trace_start"() <{level = 10 : i32, message = "nqd,nkd->nqk"}> : () -> ()
    %cst_19 = arith.constant dense<0.000000e+00> : vector<8x8x8xf32>
    %64 = tpu.matmul %59, %61, %cst_19 {dimension_numbers = #tpu.dot_dimension_numbers<[2], [2], [1], [1], [0, 0, 0, 1, 1, 1], [0], [0]>} : vector<8x8x8xf32>, vector<8x8x8xf32>, vector<8x8x8xf32> -> vector<8x8x8xf32>
    "tpu.trace_stop"() : () -> ()
    %cst_20 = arith.constant dense<0xFF800000> : vector<8x8xf32>
    %65 = vector.multi_reduction <maximumf>, %64, %cst_20 [2] : vector<8x8x8xf32> to vector<8x8xf32>
    %66 = vector.shape_cast %65 : vector<8x8xf32> to vector<8x8x1xf32>
    %67 = vector.broadcast %66 : vector<8x8x1xf32> to vector<8x8x8xf32>
    %68 = arith.subf %64, %67 : vector<8x8x8xf32>
    %69 = math.exp %68 : vector<8x8x8xf32>
    %cst_21 = arith.constant dense<0.000000e+00> : vector<8x8xf32>
    %70 = vector.multi_reduction <add>, %69, %cst_21 [2] : vector<8x8x8xf32> to vector<8x8xf32>
    %71 = vector.shape_cast %70 : vector<8x8xf32> to vector<8x8x1xf32>
    %72 = tpu.reciprocal %71 {approx = true} : vector<8x8x1xf32> -> vector<8x8x1xf32>
    %73 = arith.mulf %71, %72 : vector<8x8x1xf32>
    %cst_22 = arith.constant 2.000000e+00 : f32
    %74 = vector.broadcast %cst_22 : f32 to vector<8x8x1xf32>
    %75 = arith.subf %74, %73 : vector<8x8x1xf32>
    %76 = arith.mulf %72, %75 : vector<8x8x1xf32>
    "tpu.trace_start"() <{level = 10 : i32, message = "nqk,nkd->nqd"}> : () -> ()
    %cst_23 = arith.constant dense<0.000000e+00> : vector<8x8x8xf32>
    %77 = tpu.matmul %69, %63, %cst_23 {dimension_numbers = #tpu.dot_dimension_numbers<[2], [1], [1], [2], [0, 0, 0, 1, 1, 2], [0], [0]>} : vector<8x8x8xf32>, vector<8x8x8xf32>, vector<8x8x8xf32> -> vector<8x8x8xf32>
    "tpu.trace_stop"() : () -> ()
    %78 = vector.broadcast %76 : vector<8x8x1xf32> to vector<8x8x8xf32>
    %79 = arith.mulf %77, %78 : vector<8x8x8xf32>
    %80 = vector.shape_cast %79 : vector<8x8x8xf32> to vector<64x8xf32>
    %81 = vector.extract_strided_slice %4 {offsets = [2, 0, 0], sizes = [1, 8, 64], strides = [1, 1, 1]} : vector<4x8x64xf32> to vector<1x8x64xf32>
    %82 = vector.shape_cast %81 : vector<1x8x64xf32> to vector<8x64xf32>
    %cst_24 = arith.constant dense<0.000000e+00> : vector<64x64xf32>
    %83 = tpu.matmul %80, %82, %cst_24 {dimension_numbers = #tpu.dot_dimension_numbers<[1], [0], [0], [1], [0, 0, 1, 1], [], []>} : vector<64x8xf32>, vector<8x64xf32>, vector<64x64xf32> -> vector<64x64xf32>
    %84 = arith.addf %57, %83 : vector<64x64xf32>
    %85 = vector.extract_strided_slice %3 {offsets = [0, 24], sizes = [64, 8], strides = [1, 1]} : vector<64x96xf32> to vector<64x8xf32>
    %86 = vector.shape_cast %85 : vector<64x8xf32> to vector<8x8x8xf32>
    %87 = vector.extract_strided_slice %3 {offsets = [0, 56], sizes = [64, 8], strides = [1, 1]} : vector<64x96xf32> to vector<64x8xf32>
    %88 = vector.shape_cast %87 : vector<64x8xf32> to vector<8x8x8xf32>
    %89 = vector.extract_strided_slice %3 {offsets = [0, 88], sizes = [64, 8], strides = [1, 1]} : vector<64x96xf32> to vector<64x8xf32>
    %90 = vector.shape_cast %89 : vector<64x8xf32> to vector<8x8x8xf32>
    "tpu.trace_start"() <{level = 10 : i32, message = "nqd,nkd->nqk"}> : () -> ()
    %cst_25 = arith.constant dense<0.000000e+00> : vector<8x8x8xf32>
    %91 = tpu.matmul %86, %88, %cst_25 {dimension_numbers = #tpu.dot_dimension_numbers<[2], [2], [1], [1], [0, 0, 0, 1, 1, 1], [0], [0]>} : vector<8x8x8xf32>, vector<8x8x8xf32>, vector<8x8x8xf32> -> vector<8x8x8xf32>
    "tpu.trace_stop"() : () -> ()
    %cst_26 = arith.constant dense<0xFF800000> : vector<8x8xf32>
    %92 = vector.multi_reduction <maximumf>, %91, %cst_26 [2] : vector<8x8x8xf32> to vector<8x8xf32>
    %93 = vector.shape_cast %92 : vector<8x8xf32> to vector<8x8x1xf32>
    %94 = vector.broadcast %93 : vector<8x8x1xf32> to vector<8x8x8xf32>
    %95 = arith.subf %91, %94 : vector<8x8x8xf32>
    %96 = math.exp %95 : vector<8x8x8xf32>
    %cst_27 = arith.constant dense<0.000000e+00> : vector<8x8xf32>
    %97 = vector.multi_reduction <add>, %96, %cst_27 [2] : vector<8x8x8xf32> to vector<8x8xf32>
    %98 = vector.shape_cast %97 : vector<8x8xf32> to vector<8x8x1xf32>
    %99 = tpu.reciprocal %98 {approx = true} : vector<8x8x1xf32> -> vector<8x8x1xf32>
    %100 = arith.mulf %98, %99 : vector<8x8x1xf32>
    %cst_28 = arith.constant 2.000000e+00 : f32
    %101 = vector.broadcast %cst_28 : f32 to vector<8x8x1xf32>
    %102 = arith.subf %101, %100 : vector<8x8x1xf32>
    %103 = arith.mulf %99, %102 : vector<8x8x1xf32>
    "tpu.trace_start"() <{level = 10 : i32, message = "nqk,nkd->nqd"}> : () -> ()
    %cst_29 = arith.constant dense<0.000000e+00> : vector<8x8x8xf32>
    %104 = tpu.matmul %96, %90, %cst_29 {dimension_numbers = #tpu.dot_dimension_numbers<[2], [1], [1], [2], [0, 0, 0, 1, 1, 2], [0], [0]>} : vector<8x8x8xf32>, vector<8x8x8xf32>, vector<8x8x8xf32> -> vector<8x8x8xf32>
    "tpu.trace_stop"() : () -> ()
    %105 = vector.broadcast %103 : vector<8x8x1xf32> to vector<8x8x8xf32>
    %106 = arith.mulf %104, %105 : vector<8x8x8xf32>
    %107 = vector.shape_cast %106 : vector<8x8x8xf32> to vector<64x8xf32>
    %108 = vector.extract_strided_slice %4 {offsets = [3, 0, 0], sizes = [1, 8, 64], strides = [1, 1, 1]} : vector<4x8x64xf32> to vector<1x8x64xf32>
    %109 = vector.shape_cast %108 : vector<1x8x64xf32> to vector<8x64xf32>
    %cst_30 = arith.constant dense<0.000000e+00> : vector<64x64xf32>
    %110 = tpu.matmul %107, %109, %cst_30 {dimension_numbers = #tpu.dot_dimension_numbers<[1], [0], [0], [1], [0, 0, 1, 1], [], []>} : vector<64x8xf32>, vector<8x64xf32>, vector<64x64xf32> -> vector<64x64xf32>
    %111 = arith.addf %84, %110 : vector<64x64xf32>
    %c0_31 = arith.constant 0 : index
    %c0_32 = arith.constant 0 : index
    %112 = vector.load %arg4[%c0_31, %c0_32] : memref<1x64xf32, #tpu.memory_space<vmem>>, vector<1x64xf32>
    %113 = vector.broadcast %112 : vector<1x64xf32> to vector<64x64xf32>
    %114 = arith.addf %111, %113 : vector<64x64xf32>
    %115 = vector.extract_strided_slice %114 {offsets = [0, 0], sizes = [64, 32], strides = [1, 1]} : vector<64x64xf32> to vector<64x32xf32>
    %cst_33 = arith.constant 0.000000e+00 : f32
    %116 = vector.broadcast %cst_33 : f32 to vector<64x32xf32>
    %117 = arith.maximumf %115, %116 : vector<64x32xf32>
    %118 = vector.extract_strided_slice %114 {offsets = [0, 32], sizes = [64, 32], strides = [1, 1]} : vector<64x64xf32> to vector<64x32xf32>
    %cst_34 = arith.constant 0.000000e+00 : f32
    %119 = vector.broadcast %cst_34 : f32 to vector<64x32xf32>
    %120 = arith.maximumf %118, %119 : vector<64x32xf32>
    %121 = arith.mulf %117, %1 : vector<64x32xf32>
    %122 = arith.mulf %120, %1 : vector<64x32xf32>
    %123 = vector.shape_cast %121 : vector<64x32xf32> to vector<8x8x32xf32>
    %c0_35 = arith.constant 0 : index
    %c0_36 = arith.constant 0 : index
    %c0_37 = arith.constant 0 : index
    %124 = vector.load %arg18[%c0_35, %c0_36, %c0_37] : memref<8x8x32xf32, #tpu.memory_space<vmem>>, vector<8x8x32xf32>
    tpu.vector_store %arg18[%c0_35, %c0_36, %c0_37], %123 {strides = array<i32>} : memref<8x8x32xf32, #tpu.memory_space<vmem>>, vector<8x8x32xf32>,
    %125 = vector.shape_cast %122 : vector<64x32xf32> to vector<8x8x32xf32>
    %c0_38 = arith.constant 0 : index
    %c0_39 = arith.constant 0 : index
    %c0_40 = arith.constant 0 : index
    %126 = vector.load %arg17[%c0_38, %c0_39, %c0_40] : memref<8x8x32xf32, #tpu.memory_space<vmem>>, vector<8x8x32xf32>
    tpu.vector_store %arg17[%c0_38, %c0_39, %c0_40], %125 {strides = array<i32>} : memref<8x8x32xf32, #tpu.memory_space<vmem>>, vector<8x8x32xf32>,
    %c0_41 = arith.constant 0 : index
    %c0_42 = arith.constant 0 : index
    %127 = vector.load %arg5[%c0_41, %c0_42] : memref<8x64xf32, #tpu.memory_space<vmem>>, vector<8x64xf32>
    %cst_43 = arith.constant dense<0.000000e+00> : vector<8x32xf32>
    %128 = tpu.matmul %127, %122, %cst_43 {dimension_numbers = #tpu.dot_dimension_numbers<[1], [0], [0], [1], [0, 0, 1, 1], [], []>} : vector<8x64xf32>, vector<64x32xf32>, vector<8x32xf32> -> vector<8x32xf32>
    %c0_44 = arith.constant 0 : index
    %c0_45 = arith.constant 0 : index
    %129 = vector.load %arg6[%c0_44, %c0_45] : memref<1x1xf32, #tpu.memory_space<vmem>>, vector<1x1xf32>
    %130 = vector.broadcast %129 : vector<1x1xf32> to vector<8x32xf32>
    %131 = arith.addf %128, %130 : vector<8x32xf32>
    %c0_46 = arith.constant 0 : index
    %c0_47 = arith.constant 0 : index
    %132 = vector.load %arg7[%c0_46, %c0_47] : memref<32x64xf32, #tpu.memory_space<vmem>>, vector<32x64xf32>
    %cst_48 = arith.constant dense<0.000000e+00> : vector<8x64xf32>
    %133 = tpu.matmul %131, %132, %cst_48 {dimension_numbers = #tpu.dot_dimension_numbers<[1], [0], [0], [1], [0, 0, 1, 1], [], []>} : vector<8x32xf32>, vector<32x64xf32>, vector<8x64xf32> -> vector<8x64xf32>
    %c0_49 = arith.constant 0 : index
    %c0_50 = arith.constant 0 : index
    %134 = vector.load %arg8[%c0_49, %c0_50] : memref<1x64xf32, #tpu.memory_space<vmem>>, vector<1x64xf32>
    %135 = vector.broadcast %134 : vector<1x64xf32> to vector<8x64xf32>
    %136 = arith.addf %133, %135 : vector<8x64xf32>
    %cst_51 = arith.constant dense<0.000000e+00> : vector<8xf32>
    %137 = vector.multi_reduction <add>, %136, %cst_51 [1] : vector<8x64xf32> to vector<8xf32>
    %138 = vector.shape_cast %137 : vector<8xf32> to vector<8x1xf32>
    %cst_52 = arith.constant 6.400000e+01 : f32
    %139 = vector.broadcast %cst_52 : f32 to vector<8x1xf32>
    %140 = arith.divf %138, %139 : vector<8x1xf32>
    %141 = vector.broadcast %140 : vector<8x1xf32> to vector<8x64xf32>
    %142 = arith.subf %136, %141 : vector<8x64xf32>
    %143 = arith.mulf %142, %142 : vector<8x64xf32>
    %cst_53 = arith.constant dense<0.000000e+00> : vector<8xf32>
    %144 = vector.multi_reduction <add>, %143, %cst_53 [1] : vector<8x64xf32> to vector<8xf32>
    %145 = vector.shape_cast %144 : vector<8xf32> to vector<8x1xf32>
    %cst_54 = arith.constant 6.400000e+01 : f32
    %146 = vector.broadcast %cst_54 : f32 to vector<8x1xf32>
    %147 = arith.divf %145, %146 : vector<8x1xf32>
    %148 = vector.broadcast %140 : vector<8x1xf32> to vector<8x64xf32>
    %149 = arith.subf %136, %148 : vector<8x64xf32>
    %cst_55 = arith.constant 9.99999974E-6 : f32
    %150 = vector.broadcast %cst_55 : f32 to vector<8x1xf32>
    %151 = arith.addf %147, %150 : vector<8x1xf32>
    %152 = math.rsqrt %151 : vector<8x1xf32>
    %153 = vector.broadcast %152 : vector<8x1xf32> to vector<8x64xf32>
    %154 = arith.mulf %149, %153 : vector<8x64xf32>
    %c0_56 = arith.constant 0 : index
    %c0_57 = arith.constant 0 : index
    %155 = vector.load %arg9[%c0_56, %c0_57] : memref<1x64xf32, #tpu.memory_space<vmem>>, vector<1x64xf32>
    %156 = vector.broadcast %155 : vector<1x64xf32> to vector<8x64xf32>
    %157 = arith.mulf %154, %156 : vector<8x64xf32>
    %c0_58 = arith.constant 0 : index
    %c0_59 = arith.constant 0 : index
    %158 = vector.load %arg10[%c0_58, %c0_59] : memref<1x64xf32, #tpu.memory_space<vmem>>, vector<1x64xf32>
    %159 = vector.broadcast %158 : vector<1x64xf32> to vector<8x64xf32>
    %160 = arith.addf %157, %159 : vector<8x64xf32>
    %cst_60 = arith.constant 2.000000e-01 : f32
    %161 = vector.broadcast %cst_60 : f32 to vector<8x64xf32>
    %162 = arith.mulf %161, %160 : vector<8x64xf32>
    %163 = arith.maximumf %160, %162 : vector<8x64xf32>
    %c0_61 = arith.constant 0 : index
    %c0_62 = arith.constant 0 : index
    %164 = vector.load %arg11[%c0_61, %c0_62] : memref<64x32xf32, #tpu.memory_space<vmem>>, vector<64x32xf32>
    %cst_63 = arith.constant dense<0.000000e+00> : vector<8x32xf32>
    %165 = tpu.matmul %163, %164, %cst_63 {dimension_numbers = #tpu.dot_dimension_numbers<[1], [0], [0], [1], [0, 0, 1, 1], [], []>} : vector<8x64xf32>, vector<64x32xf32>, vector<8x32xf32> -> vector<8x32xf32>
    %c0_64 = arith.constant 0 : index
    %c0_65 = arith.constant 0 : index
    %166 = vector.load %arg12[%c0_64, %c0_65] : memref<1x32xf32, #tpu.memory_space<vmem>>, vector<1x32xf32>
    %167 = vector.broadcast %166 : vector<1x32xf32> to vector<8x32xf32>
    %168 = arith.addf %165, %167 : vector<8x32xf32>
    %cst_66 = arith.constant dense<0.000000e+00> : vector<8xf32>
    %169 = vector.multi_reduction <add>, %168, %cst_66 [1] : vector<8x32xf32> to vector<8xf32>
    %170 = vector.shape_cast %169 : vector<8xf32> to vector<8x1xf32>
    %cst_67 = arith.constant 3.200000e+01 : f32
    %171 = vector.broadcast %cst_67 : f32 to vector<8x1xf32>
    %172 = arith.divf %170, %171 : vector<8x1xf32>
    %173 = vector.broadcast %172 : vector<8x1xf32> to vector<8x32xf32>
    %174 = arith.subf %168, %173 : vector<8x32xf32>
    %175 = arith.mulf %174, %174 : vector<8x32xf32>
    %cst_68 = arith.constant dense<0.000000e+00> : vector<8xf32>
    %176 = vector.multi_reduction <add>, %175, %cst_68 [1] : vector<8x32xf32> to vector<8xf32>
    %177 = vector.shape_cast %176 : vector<8xf32> to vector<8x1xf32>
    %cst_69 = arith.constant 3.200000e+01 : f32
    %178 = vector.broadcast %cst_69 : f32 to vector<8x1xf32>
    %179 = arith.divf %177, %178 : vector<8x1xf32>
    %180 = vector.broadcast %172 : vector<8x1xf32> to vector<8x32xf32>
    %181 = arith.subf %168, %180 : vector<8x32xf32>
    %cst_70 = arith.constant 9.99999974E-6 : f32
    %182 = vector.broadcast %cst_70 : f32 to vector<8x1xf32>
    %183 = arith.addf %179, %182 : vector<8x1xf32>
    %184 = math.rsqrt %183 : vector<8x1xf32>
    %185 = vector.broadcast %184 : vector<8x1xf32> to vector<8x32xf32>
    %186 = arith.mulf %181, %185 : vector<8x32xf32>
    %c0_71 = arith.constant 0 : index
    %c0_72 = arith.constant 0 : index
    %187 = vector.load %arg13[%c0_71, %c0_72] : memref<1x32xf32, #tpu.memory_space<vmem>>, vector<1x32xf32>
    %188 = vector.broadcast %187 : vector<1x32xf32> to vector<8x32xf32>
    %189 = arith.mulf %186, %188 : vector<8x32xf32>
    %c0_73 = arith.constant 0 : index
    %c0_74 = arith.constant 0 : index
    %190 = vector.load %arg14[%c0_73, %c0_74] : memref<1x32xf32, #tpu.memory_space<vmem>>, vector<1x32xf32>
    %191 = vector.broadcast %190 : vector<1x32xf32> to vector<8x32xf32>
    %192 = arith.addf %189, %191 : vector<8x32xf32>
    %cst_75 = arith.constant 2.000000e-01 : f32
    %193 = vector.broadcast %cst_75 : f32 to vector<8x32xf32>
    %194 = arith.mulf %193, %192 : vector<8x32xf32>
    %195 = arith.maximumf %192, %194 : vector<8x32xf32>
    %c0_76 = arith.constant 0 : index
    %c0_77 = arith.constant 0 : index
    %196 = vector.load %arg15[%c0_76, %c0_77] : memref<32x8xf32, #tpu.memory_space<vmem>>, vector<32x8xf32>
    %cst_78 = arith.constant dense<0.000000e+00> : vector<8x8xf32>
    %197 = tpu.matmul %195, %196, %cst_78 {dimension_numbers = #tpu.dot_dimension_numbers<[1], [0], [0], [1], [0, 0, 1, 1], [], []>} : vector<8x32xf32>, vector<32x8xf32>, vector<8x8xf32> -> vector<8x8xf32>
    %c0_79 = arith.constant 0 : index
    %c0_80 = arith.constant 0 : index
    %198 = vector.load %arg16[%c0_79, %c0_80] : memref<1x8xf32, #tpu.memory_space<vmem>>, vector<1x8xf32>
    %199 = vector.broadcast %198 : vector<1x8xf32> to vector<8x8xf32>
    %200 = arith.addf %197, %199 : vector<8x8xf32>
    %cst_81 = arith.constant dense<0xFF800000> : vector<8xf32>
    %201 = vector.multi_reduction <maximumf>, %200, %cst_81 [1] : vector<8x8xf32> to vector<8xf32>
    %202 = vector.shape_cast %201 : vector<8xf32> to vector<8x1xf32>
    %203 = vector.broadcast %202 : vector<8x1xf32> to vector<8x8xf32>
    %204 = arith.subf %200, %203 : vector<8x8xf32>
    %205 = math.exp %204 : vector<8x8xf32>
    %cst_82 = arith.constant dense<0.000000e+00> : vector<8xf32>
    %206 = vector.multi_reduction <add>, %205, %cst_82 [1] : vector<8x8xf32> to vector<8xf32>
    %207 = vector.shape_cast %206 : vector<8xf32> to vector<8x1xf32>
    %208 = vector.broadcast %207 : vector<8x1xf32> to vector<8x8xf32>
    %209 = arith.divf %205, %208 : vector<8x8xf32>
    %c0_83 = arith.constant 0 : index
    %c0_84 = arith.constant 0 : index
    %210 = vector.load %arg19[%c0_83, %c0_84] : memref<8x8xf32, #tpu.memory_space<vmem>>, vector<8x8xf32>
    tpu.vector_store %arg19[%c0_83, %c0_84], %209 {strides = array<i32>} : memref<8x8xf32, #tpu.memory_space<vmem>>, vector<8x8xf32>,
    return
  }
  func.func @transform_0(%arg0: i32) -> (i32, i32, i32) {
    %c0_i32 = arith.constant 0 : i32
    %c0_i32_0 = arith.constant 0 : i32
    %c0_i32_1 = arith.constant 0 : i32
    return %arg0, %c0_i32, %c0_i32_0 : i32, i32, i32
  }
  func.func @transform_1(%arg0: i32) -> (i32, i32) {
    %c0_i32 = arith.constant 0 : i32
    %c0_i32_0 = arith.constant 0 : i32
    %c0_i32_1 = arith.constant 0 : i32
    return %c0_i32, %c0_i32_0 : i32, i32
  }
  func.func @transform_2(%arg0: i32) -> (i32, i32, i32) {
    %c0_i32 = arith.constant 0 : i32
    %c0_i32_0 = arith.constant 0 : i32
    %c0_i32_1 = arith.constant 0 : i32
    %c0_i32_2 = arith.constant 0 : i32
    return %c0_i32, %c0_i32_0, %c0_i32_1 : i32, i32, i32
  }
  func.func @transform_3(%arg0: i32) -> (i32, i32) {
    %c0_i32 = arith.constant 0 : i32
    %c0_i32_0 = arith.constant 0 : i32
    %c0_i32_1 = arith.constant 0 : i32
    return %c0_i32, %c0_i32_0 : i32, i32
  }
  func.func @transform_4(%arg0: i32) -> (i32, i32) {
    %c0_i32 = arith.constant 0 : i32
    %c0_i32_0 = arith.constant 0 : i32
    %c0_i32_1 = arith.constant 0 : i32
    return %c0_i32, %c0_i32_0 : i32, i32
  }
  func.func @transform_5(%arg0: i32) -> (i32, i32) {
    %c0_i32 = arith.constant 0 : i32
    %c0_i32_0 = arith.constant 0 : i32
    %c0_i32_1 = arith.constant 0 : i32
    return %c0_i32, %c0_i32_0 : i32, i32
  }
  func.func @transform_6(%arg0: i32) -> (i32, i32) {
    %c0_i32 = arith.constant 0 : i32
    %c0_i32_0 = arith.constant 0 : i32
    %c0_i32_1 = arith.constant 0 : i32
    return %c0_i32, %c0_i32_0 : i32, i32
  }
  func.func @transform_7(%arg0: i32) -> (i32, i32) {
    %c0_i32 = arith.constant 0 : i32
    %c0_i32_0 = arith.constant 0 : i32
    %c0_i32_1 = arith.constant 0 : i32
    return %c0_i32, %c0_i32_0 : i32, i32
  }
  func.func @transform_8(%arg0: i32) -> (i32, i32) {
    %c0_i32 = arith.constant 0 : i32
    %c0_i32_0 = arith.constant 0 : i32
    %c0_i32_1 = arith.constant 0 : i32
    return %c0_i32, %c0_i32_0 : i32, i32
  }
  func.func @transform_9(%arg0: i32) -> (i32, i32) {
    %c0_i32 = arith.constant 0 : i32
    %c0_i32_0 = arith.constant 0 : i32
    %c0_i32_1 = arith.constant 0 : i32
    return %c0_i32, %c0_i32_0 : i32, i32
  }
  func.func @transform_10(%arg0: i32) -> (i32, i32) {
    %c0_i32 = arith.constant 0 : i32
    %c0_i32_0 = arith.constant 0 : i32
    %c0_i32_1 = arith.constant 0 : i32
    return %c0_i32, %c0_i32_0 : i32, i32
  }
  func.func @transform_11(%arg0: i32) -> (i32, i32) {
    %c0_i32 = arith.constant 0 : i32
    %c0_i32_0 = arith.constant 0 : i32
    %c0_i32_1 = arith.constant 0 : i32
    return %c0_i32, %c0_i32_0 : i32, i32
  }
  func.func @transform_12(%arg0: i32) -> (i32, i32) {
    %c0_i32 = arith.constant 0 : i32
    %c0_i32_0 = arith.constant 0 : i32
    %c0_i32_1 = arith.constant 0 : i32
    return %c0_i32, %c0_i32_0 : i32, i32
  }
  func.func @transform_13(%arg0: i32) -> (i32, i32) {
    %c0_i32 = arith.constant 0 : i32
    %c0_i32_0 = arith.constant 0 : i32
    %c0_i32_1 = arith.constant 0 : i32
    return %c0_i32, %c0_i32_0 : i32, i32
  }
  func.func @transform_14(%arg0: i32) -> (i32, i32) {
    %c0_i32 = arith.constant 0 : i32
    %c0_i32_0 = arith.constant 0 : i32
    %c0_i32_1 = arith.constant 0 : i32
    return %c0_i32, %c0_i32_0 : i32, i32
  }
  func.func @transform_15(%arg0: i32) -> (i32, i32) {
    %c0_i32 = arith.constant 0 : i32
    %c0_i32_0 = arith.constant 0 : i32
    %c0_i32_1 = arith.constant 0 : i32
    return %c0_i32, %c0_i32_0 : i32, i32
  }
  func.func @transform_16(%arg0: i32) -> (i32, i32, i32) {
    %c0_i32 = arith.constant 0 : i32
    %c0_i32_0 = arith.constant 0 : i32
    %c0_i32_1 = arith.constant 0 : i32
    return %arg0, %c0_i32, %c0_i32_0 : i32, i32, i32
  }
  func.func @transform_17(%arg0: i32) -> (i32, i32, i32) {
    %c0_i32 = arith.constant 0 : i32
    %c0_i32_0 = arith.constant 0 : i32
    %c0_i32_1 = arith.constant 0 : i32
    return %arg0, %c0_i32, %c0_i32_0 : i32, i32, i32
  }
  func.func @transform_18(%arg0: i32) -> (i32, i32) {
    %c0_i32 = arith.constant 0 : i32
    %c0_i32_0 = arith.constant 0 : i32
    return %arg0, %c0_i32 : i32, i32
  }
}

</mosaic_0001>

<bundles_post_ra>
// kernel: mbdeconv_forward.2
= control target key start
LH: loop header
LB: loop body
LE: loop exit
PB: predicated region body
PF: predicated region fallthrough
CT: control target
= control target key end

     0   :  { %v372_v0 = vmov 0.0   ;;  %vm373_vm0 = vmmov 0   ;;  %vm42_vm1 = vcmask 523264   ;;  %vm228_vm2 = vcmask 261120   ;;  %s506_s1 = inlined_call_operand.vmem [shape: f32[64,64], index: 1, kind: input, shape index: {}]   ;;  %s507_s3 = inlined_call_operand.vmem [shape: f32[64,32], index: 3, kind: input, shape index: {}]   ;;  %s508_s0 = inlined_call_operand.vmem [shape: f32[8,64], index: 0, kind: input, shape index: {}]   ;;  %s509_s5 = inlined_call_operand.vmem [shape: f32[32,256], index: 5, kind: input, shape index: {}]   ;;  %s510_s2 = inlined_call_operand.vmem [shape: f32[1,64], index: 2, kind: input, shape index: {}]   ;;  %s511_s4 = inlined_call_operand.vmem [shape: f32[1,32], index: 4, kind: input, shape index: {}]   ;;  %s512_s6 = inlined_call_operand.vmem [shape: f32[1,256], index: 6, kind: input, shape index: {}]   ;;  %s513_s7 = inlined_call_operand.vmem [shape: f32[8,256], index: 7, kind: output, shape index: {}]  }
   0x1   :  { %332 = vmatprep.subr.mxu0 %v372_v0  ;;  %v34_v1 = vld [vmem:[%s506_s1 + $0x38] sm:$0xff]  ;;  %v33_v2 = vld [vmem:[%s506_s1 + $0x30] sm:$0xff]  ;;  %348 = vmatprep.mubr.msk.f32.mxu0 %vm373_vm0, %v372_v0  ;;  %v32_v3 = vld [vmem:[%s506_s1 + $0x28] sm:$0xff]  ;;  %v218_v38 = vlaneseq }
   0x2   :  { %333 = vmatpush3.msra.mxu0 %v34_v1  ;;  %351 = vmatprep.subr.mxu1 %v372_v0  ;;  %v125_v4 = vld [vmem:[%s507_s3 + $0x38] sm:$0xff]  ;;  %v124_v5 = vld [vmem:[%s507_s3 + $0x30] sm:$0xff]  ;;  %v31_v6 = vld [vmem:[%s506_s1 + $0x20] sm:$0xff] }
   0x3   :  { %334 = vmatprep.subr.mxu0 %v372_v0  ;;  %367 = vmatprep.mubr.msk.f32.mxu1 %vm373_vm0, %v372_v0  ;;  %v123_v7 = vld [vmem:[%s507_s3 + $0x28] sm:$0xff]  ;;  %v30_v8 = vld [vmem:[%s506_s1 + $0x18] sm:$0xff]  ;;  %v122_v9 = vld [vmem:[%s507_s3 + $0x20] sm:$0xff]  ;;  %v219_v39 = vshrl.u32 %v218_v38, 7 }
   0x4   :  { %335 = vmatpush3.msra.mxu0 %v33_v2  ;;  %352 = vmatpush3.msra.mxu1 %v125_v4  ;;  %v29_v10 = vld [vmem:[%s506_s1 + $0x10] sm:$0xff]  ;;  %v28_v11 = vld [vmem:[%s506_s1 + $0x8] sm:$0xff]  ;;  %v27_v12 = vld [vmem:[%s506_s1] sm:$0xff] }
   0x5   :  { %336 = vmatprep.subr.mxu0 %v372_v0  ;;  %353 = vmatprep.subr.mxu1 %v372_v0  ;;  %v26_v13 = vld [vmem:[%s508_s0] sm:$0xff]  ;;  %v121_v14 = vld [vmem:[%s507_s3 + $0x18] sm:$0xff]  ;;  %v120_v15 = vld [vmem:[%s507_s3 + $0x10] sm:$0xff]  ;;  %v220_v40 = vsub.s32 0, %v219_v39  ;;  %v224_v42 = vsub.s32 1, %v219_v39 }
   0x6   :  { %337 = vmatpush3.msra.mxu0 %v32_v3  ;;  %354 = vmatpush3.msra.mxu1 %v124_v5  ;;  %v119_v16 = vld [vmem:[%s507_s3 + $0x8] sm:$0xff]  ;;  %v118_v17 = vld [vmem:[%s507_s3] sm:$0xff]  ;;  %v215_v18 = vld [vmem:[%s509_s5 + $0x38] sm:$0xff] }
   0x7   :  { %338 = vmatprep.subr.mxu0 %v372_v0  ;;  %355 = vmatprep.subr.mxu1 %v372_v0  ;;  %v309_v19 = vld [vmem:[%s510_s2] ss:$0 sm:$0xff]  ;;  %v214_v25 = vld [vmem:[%s509_s5 + $0x30] sm:$0xff]  ;;  %v213_v26 = vld [vmem:[%s509_s5 + $0x28] sm:$0xff] }
   0x8   :  { %339 = vmatpush3.msra.mxu0 %v31_v6  ;;  %356 = vmatpush3.msra.mxu1 %v123_v7  ;;  %v212_v27 = vld [vmem:[%s509_s5 + $0x20] sm:$0xff]  ;;  %v211_v28 = vld [vmem:[%s509_s5 + $0x18] sm:$0xff]  ;;  %v210_v29 = vld [vmem:[%s509_s5 + $0x10] sm:$0xff] }
   0x9   :  { %340 = vmatprep.subr.mxu0 %v372_v0  ;;  %357 = vmatprep.subr.mxu1 %v372_v0  ;;  %v209_v30 = vld [vmem:[%s509_s5 + $0x8] sm:$0xff]  ;;  %v208_v31 = vld [vmem:[%s509_s5] sm:$0xff] }
   0xa   :  { %341 = vmatpush3.msra.mxu0 %v30_v8  ;;  %358 = vmatpush3.msra.mxu1 %v122_v9  ;;  %v311_v32 = vld [vmem:[%s511_s4] ss:$0 sm:$0xff] }
   0xb   :  { %342 = vmatprep.subr.mxu0 %v372_v0  ;;  %359 = vmatprep.subr.mxu1 %v372_v0  ;;  %v216_v41 = vld [vmem:[%s512_s6] sm:$0x3] }
   0xc   :  { %343 = vmatpush3.msra.mxu0 %v29_v10  ;;  %360 = vmatpush3.msra.mxu1 %v121_v14  ;;  %v221_v43 = vrot.slane %v216_v41, %v220_v40  ;;  %v225_v44 = vrot.slane %v216_v41, %v224_v42 }
   0xd   :  { %344 = vmatprep.subr.mxu0 %v372_v0  ;;  %361 = vmatprep.subr.mxu1 %v372_v0 }
   0xe   :  { %345 = vmatpush3.msra.mxu0 %v28_v11  ;;  %362 = vmatpush3.msra.mxu1 %v120_v15 }
   0xf   :  { %346 = vmatprep.subr.mxu0 %v372_v0  ;;  %363 = vmatprep.subr.mxu1 %v372_v0 }
  0x10   :  { %347 = vmatpush3.msra.mxu0 %v27_v12  ;;  %364 = vmatpush3.msra.mxu1 %v119_v16 }
  0x11   :  { %349 = vmatmul.mubr.msk.f32.vlgmr.msra.gmra.mxu0 %vm42_vm1, %v26_v13  ;;  %365 = vmatprep.subr.mxu1 %v372_v0 }
  0x12   :  { %296 = vmatprep.mubr.f32.mxu0 %v372_v0  ;;  %366 = vmatpush3.msra.mxu1 %v118_v17 }
  0x13   :  { %256 = vmatprep.subr.mxu0 %v215_v18 }
  0x14   :  { %257 = vmatpush1.msra.mxu0 %v214_v25 }
  0x15   :  { %258 = vmatprep.subr.mxu0 %v213_v26 }
  0x16   :  { %259 = vmatpush1.msra.mxu0 %v212_v27 }
  0x17   :  { %260 = vmatprep.subr.mxu0 %v211_v28 }
  0x18   :  { %261 = vmatpush1.msra.mxu0 %v210_v29 }
  0x19   :  { %262 = vmatprep.subr.mxu0 %v209_v30 }
  0x1a   :  { %263 = vmatpush1.msra.mxu0 %v208_v31 }
  0xd1   :  { %v112_v20 = vpop.f32.mrf.mxu0 }
  0xd2   :  { %v113_v21 = vadd.f32 %v309_v19, %v112_v20 }
  0xd3   :  { %v350_v22 = vpop.f32.mrf.mxu0 }
  0xd4   :  { %v116_v23 = vmul.f32 0.2, %v113_v21 }
  0xd6   :  { %v117_v24 = vmax.f32 %v113_v21, %v116_v23 }
  0xd8   :  { %368 = vmatmul.mubr.msk.f32.vlgmr.msra.gmra.mxu1 %vm42_vm1, %v117_v24 }
 0x198   :  { %v202_v33 = vpop.f32.mrf.mxu1 }
 0x199   :  { %v203_v34 = vadd.f32 %v311_v32, %v202_v33 }
 0x19a   :  { %v369_v35 = vpop.f32.mrf.mxu1 }
 0x19b   :  { %v206_v36 = vmul.f32 0.2, %v203_v34 }
 0x19d   :  { %v207_v37 = vmax.f32 %v203_v34, %v206_v36 }
 0x19f   :  { %313 = vmatmul.mubr.msk.f32.vlgmr.msra.gmra.mxu0 %vm228_vm2, %v207_v37 }
 0x25f   :  { %v298_v45 = vpop.f32.mrf.mxu0 }
 0x260   :  { %v299_v46 = vadd.f32 %v298_v45, %v221_v43 }
 0x261   :  { %v300_v47 = vpop.f32.mrf.mxu0 }
 0x262   :  { %303 = vst [vmem:[%s513_s7] sm:$0xff] %v299_v46  ;;  %v301_v48 = vadd.f32 %v300_v47, %v225_v44 }
 0x264   :  { %304 = vst [vmem:[%s513_s7 + $0x8] sm:$0xff] %v301_v48 }

// kernel: mbdeconv_forward.3
= control target key start
LH: loop header
LB: loop body
LE: loop exit
PB: predicated region body
PF: predicated region fallthrough
CT: control target
= control target key end

     0   :  { %vm70_vm0 = vcmask 261120   ;;  %v7614_v12 = vmov 0.0   ;;  %vm7615_vm1 = vmmov 0   ;;  %s7616_s24 = smov 96   ;;  %s7617_s25 = smov 64   ;;  %vm207_vm2 = vcmask 64512   ;;  %s8879_s1 = inlined_call_operand.vmem [shape: f32[32,96], index: 1, kind: input, shape index: {}]   ;;  %s8880_s0 = inlined_call_operand.vmem [shape: f32[8,8,32], index: 0, kind: input, shape index: {}]   ;;  %s8881_s2 = inlined_call_operand.vmem [shape: f32[4,8,64], index: 2, kind: input, shape index: {}]   ;;  %s8882_s3 = inlined_call_operand.vmem [shape: f32[1,64], index: 3, kind: input, shape index: {}]   ;;  %s8883_s17 = inlined_call_operand.vmem [shape: f32[8,8,32], index: 17, kind: output, shape index: {1}]   ;;  %s8884_s5 = inlined_call_operand.<no memory space> [shape: f32[1,1], index: 5, kind: input, shape index: {}]   ;;  %s8885_s6 = inlined_call_operand.vmem [shape: f32[32,64], index: 6, kind: input, shape index: {}]   ;;  %s8886_s16 = inlined_call_operand.vmem [shape: f32[8,8,32], index: 16, kind: output, shape index: {0}]   ;;  %s8887_s4 = inlined_call_operand.vmem [shape: f32[8,64], index: 4, kind: input, shape index: {}]   ;;  %s8888_s7 = inlined_call_operand.vmem [shape: f32[1,64], index: 7, kind: input, shape index: {}]   ;;  %s8889_s10 = inlined_call_operand.vmem [shape: f32[64,32], index: 10, kind: input, shape index: {}]   ;;  %s8890_s8 = inlined_call_operand.vmem [shape: f32[1,64], index: 8, kind: input, shape index: {}]   ;;  %s8891_s9 = inlined_call_operand.vmem [shape: f32[1,64], index: 9, kind: input, shape index: {}]   ;;  %s8892_s11 = inlined_call_operand.vmem [shape: f32[1,32], index: 11, kind: input, shape index: {}]   ;;  %s8893_s14 = inlined_call_operand.vmem [shape: f32[32,8], index: 14, kind: input, shape index: {}]   ;;  %s8894_s12 = inlined_call_operand.vmem [shape: f32[1,32], index: 12, kind: input, shape index: {}]   ;;  %s8895_s13 = inlined_call_operand.vmem [shape: f32[1,32], index: 13, kind: input, shape index: {}]   ;;  %s8896_s15 = inlined_call_operand.vmem [shape: f32[1,8], index: 15, kind: input, shape index: {}]   ;;  %s8897_s18 = inlined_call_operand.vmem [shape: f32[8,8], index: 18, kind: output, shape index: {2}]  }
   0x1   :  { %8901 = sst [smem:[#allocation3_spill]] %s8879_s1  ;;  %7018 = vmatprep.subr.mxu1 %v7614_v12  ;;  %7020 = vmatprep.mubr.msk.f32.mxu1 %vm7615_vm1, %v7614_v12  ;;  %s7618_s26 = smov 88   ;;  %vm6227_vm3 = vcmask 523264  }
   0x2   :  { %8902 = sst [smem:[#allocation4_spill]] %s8880_s0  ;;  %s7619_s27 = smov 120  }
   0x3   :  { %8903 = sst [smem:[#allocation5_spill]] %s8881_s2  ;;  %s7620_s28 = smov 56  }
   0x4   :  { %s8904_s29 = sld [smem:[#allocation3_spill]]  ;;  %s7621_s30 = smov 80  }
   0x5   :  { %s8905_s20 = sld [smem:[#allocation4_spill]]  ;;  %s7623_s21 = smov 48  }
   0x6   :  { %s8906_s0 = sld [smem:[#allocation5_spill]]  ;;  %s7624_s23 = smov 72  }
   0xa   :  { %v69_v0 = vld [vmem:[%s8904_s29 + $0x18] sm:$0xff]  ;;  %v68_v1 = vld [vmem:[%s8904_s29 + $0x10] sm:$0xff]  ;;  %v67_v3 = vld [vmem:[%s8904_s29 + $0x8] sm:$0xff] }
   0xb   :  { %6998 = vmatprep.subr.mxu0 %v69_v0  ;;  %v58_v2 = vld [vmem:[%s8905_s20] sm:$0xff]  ;;  %v59_v5 = vld [vmem:[%s8905_s20 + $0x8] sm:$0xff]  ;;  %v60_v6 = vld [vmem:[%s8905_s20 + $0x10] sm:$0xff] }
   0xc   :  { %6999 = vmatpush3.msra.mxu0 %v69_v0  ;;  %7006 = vmatprep.mubr.msk.f32.mxu0 %vm70_vm0, %v58_v2  ;;  %v66_v4 = vld [vmem:[%s8904_s29] sm:$0xff]  ;;  %v61_v7 = vld [vmem:[%s8905_s20 + $0x18] sm:$0xff]  ;;  %v63_v9 = vld [vmem:[%s8905_s20 + $0x28] sm:$0xff]  ;;  %s7622_s29 = smov 112  }
   0xd   :  { %7000 = vmatprep.subr.mxu0 %v68_v1  ;;  %v62_v8 = vld [vmem:[%s8905_s20 + $0x20] sm:$0xff]  ;;  %v64_v10 = vld [vmem:[%s8905_s20 + $0x30] sm:$0xff]  ;;  %v65_v11 = vld [vmem:[%s8905_s20 + $0x38] sm:$0xff] }
   0xe   :  { %7001 = vmatpush3.msra.mxu0 %v68_v1 }
   0xf   :  { %7002 = vmatprep.subr.mxu0 %v67_v3 }
  0x10   :  { %7003 = vmatpush3.msra.mxu0 %v67_v3 }
  0x11   :  { %7004 = vmatprep.subr.mxu0 %v66_v4 }
  0x12   :  { %7005 = vmatpush3.msra.mxu0 %v66_v4 }
  0x13   :  { %7007 = vmatmul.mubr.msk.f32.vlgmr.msra.gmra.mxu0 %vm70_vm0, %v59_v5  ;;  %7053 = vmatprep.subr.mxu0 %v7614_v12 }
  0x14   :  { %7009 = vmatprep.mubr.msk.f32.mxu0 %vm70_vm0, %v60_v6 }
  0x17   :  { %7010 = vmatmul.mubr.msk.f32.gmra.mxu0 %vm70_vm0, %v61_v7 }
  0x18   :  { %7012 = vmatprep.mubr.msk.f32.mxu0 %vm70_vm0, %v62_v8 }
  0x1b   :  { %7013 = vmatmul.mubr.msk.f32.gmra.mxu0 %vm70_vm0, %v63_v9 }
  0x1c   :  { %7015 = vmatprep.mubr.msk.f32.mxu0 %vm70_vm0, %v64_v10 }
  0x1f   :  { %7016 = vmatmul.mubr.msk.f32.gmra.mxu0 %vm70_vm0, %v65_v11 }
  0x20   :  { %7055 = vmatprep.mubr.msk.f32.mxu0 %vm7615_vm1, %v7614_v12 }
  0xd3   :  { %v7774_v13 = vpop.f32.mrf.mxu0 }
  0xd5   :  { %v7776_v14 = vpop.f32.mrf.mxu0 }
  0xd6   :  { %205 = vrot.lane.b32.xlu0 %v7776_v14, %s7616_s24 }
  0xd7   :  { %v7780_v15 = vpop.f32.mrf.mxu0 }
  0xd9   :  { %v7782_v16 = vpop.f32.mrf.mxu0 }
  0xda   :  { %283 = vrot.lane.b32.xlu0 %v7774_v13, %s7616_s24  ;;  %360 = vrot.lane.b32.xlu1 %v7782_v16, %s7616_s24 }
  0xdb   :  { %v7788_v17 = vpop.f32.mrf.mxu0 }
  0xdd   :  { %v7790_v18 = vpop.f32.mrf.mxu0 }
  0xde   :  { %437 = vrot.lane.b32.xlu1 %v7780_v15, %s7616_s24  ;;  %514 = vrot.lane.b32.xlu0 %v7790_v18, %s7616_s24 }
  0xdf   :  { %v7796_v19 = vpop.f32.mrf.mxu0 }
  0xe1   :  { %v7798_v20 = vpop.f32.mrf.mxu0 }
  0xe2   :  { %591 = vrot.lane.b32.xlu1 %v7788_v17, %s7616_s24  ;;  %668 = vrot.lane.b32.xlu0 %v7798_v20, %s7616_s24 }
  0xe6   :  { %745 = vrot.lane.b32.xlu1 %v7796_v19, %s7616_s24  ;;  %1001 = vrot.lane.b32.xlu0 %v7774_v13, %s7617_s25 }
  0xea   :  { %925 = vrot.lane.b32.xlu1 %v7776_v14, %s7617_s25  ;;  %1229 = vrot.lane.b32.xlu0 %v7790_v18, %s7617_s25 }
  0xee   :  { %1077 = vrot.lane.b32.xlu1 %v7782_v16, %s7617_s25  ;;  %1543 = vrot.lane.b32.xlu0 %v7776_v14, %s7618_s26 }
  0xf2   :  { %1153 = vrot.lane.b32.xlu1 %v7780_v15, %s7617_s25  ;;  %1541 = vrot.lane.b32.xlu0 %v7776_v14, %s7619_s27 }
  0xf6   :  { %1305 = vrot.lane.b32.xlu1 %v7788_v17, %s7617_s25  ;;  %1381 = vrot.lane.b32.xlu0 %v7798_v20, %s7617_s25 }
  0xfa   :  { %1457 = vrot.lane.b32.xlu1 %v7796_v19, %s7617_s25  ;;  %s7625_s25 = smov 104  }
  0xfe   :  { %1621 = vrot.lane.b32.xlu1 %v7774_v13, %s7618_s26 }
 0x102   :  { %1619 = vrot.lane.b32.xlu1 %v7774_v13, %s7619_s27 }
 0x148   :  { %v206_v21 = vpop.permute.xlu0 %205 }
 0x149   :  { %7019 = vmatpush3.xpose.msk.msra.mxu1 %vm207_vm2, %v206_v21 }
 0x14a   :  { %7023 = vmatprep.subr.mxu1 %v7614_v12 }
 0x14c   :  { %7021 = vmatmul.mubr.msk.f32.vlgmr.msra.gmra.mxu1 %vm207_vm2, %v7776_v14  ;;  %v284_v22 = vpop.permute.xlu0 %283  ;;  %v361_v23 = vpop.permute.xlu1 %360 }
 0x14d   :  { %7024 = vmatpush3.xpose.msk.msra.mxu1 %vm207_vm2, %v284_v22  ;;  %7025 = vmatprep.mubr.msk.f32.mxu1 %vm7615_vm1, %v7614_v12 }
 0x14e   :  { %7028 = vmatprep.subr.mxu1 %v7614_v12 }
 0x150   :  { %7026 = vmatmul.mubr.msk.f32.vlgmr.msra.gmra.mxu1 %vm207_vm2, %v7774_v13  ;;  %v438_v24 = vpop.permute.xlu1 %437  ;;  %v515_v25 = vpop.permute.xlu0 %514 }
 0x151   :  { %7029 = vmatpush3.xpose.msk.msra.mxu1 %vm207_vm2, %v361_v23  ;;  %7030 = vmatprep.mubr.msk.f32.mxu1 %vm7615_vm1, %v7614_v12 }
 0x152   :  { %7033 = vmatprep.subr.mxu1 %v7614_v12 }
 0x154   :  { %7031 = vmatmul.mubr.msk.f32.vlgmr.msra.gmra.mxu1 %vm207_vm2, %v7782_v16  ;;  %v592_v26 = vpop.permute.xlu1 %591  ;;  %v669_v27 = vpop.permute.xlu0 %668 }
 0x155   :  { %7034 = vmatpush3.xpose.msk.msra.mxu1 %vm207_vm2, %v438_v24  ;;  %7035 = vmatprep.mubr.msk.f32.mxu1 %vm7615_vm1, %v7614_v12 }
 0x156   :  { %7038 = vmatprep.subr.mxu1 %v7614_v12 }
 0x158   :  { %7036 = vmatmul.mubr.msk.f32.vlgmr.msra.gmra.mxu1 %vm207_vm2, %v7780_v15  ;;  %v746_v28 = vpop.permute.xlu1 %745  ;;  %v1002_v29 = vpop.permute.xlu0 %1001 }
 0x159   :  { %7039 = vmatpush3.xpose.msk.msra.mxu1 %vm207_vm2, %v515_v25  ;;  %7054 = vmatpush3.xpose.msk.msra.mxu0 %vm207_vm2, %v746_v28 }
 0x15a   :  { %7040 = vmatprep.mubr.msk.f32.mxu1 %vm7615_vm1, %v7614_v12  ;;  %7043 = vmatprep.subr.mxu1 %v7614_v12 }
 0x15b   :  { %7063 = vmatprep.subr.mxu0 %v7614_v12 }
 0x15c   :  { %7041 = vmatmul.mubr.msk.f32.vlgmr.msra.gmra.mxu1 %vm207_vm2, %v7790_v18  ;;  %7056 = vmatmul.mubr.msk.f32.vlgmr.msra.gmra.mxu0 %vm207_vm2, %v7796_v19  ;;  %v926_v30 = vpop.permute.xlu1 %925  ;;  %v1230_v57 = vpop.permute.xlu0 %1229 }
 0x15d   :  { %7044 = vmatpush3.xpose.msk.msra.mxu1 %vm207_vm2, %v592_v26  ;;  %7064 = vmatpush3.msra.mxu0 %v1002_v29 }
 0x15e   :  { %7045 = vmatprep.mubr.msk.f32.mxu1 %vm7615_vm1, %v7614_v12  ;;  %7048 = vmatprep.subr.mxu1 %v7614_v12 }
 0x15f   :  { %7065 = vmatprep.mubr.msk.f32.mxu0 %vm7615_vm1, %v7614_v12  ;;  %7073 = vmatprep.subr.mxu0 %v7614_v12 }
 0x160   :  { %7046 = vmatmul.mubr.msk.f32.vlgmr.msra.gmra.mxu1 %vm207_vm2, %v7788_v17  ;;  %v1078_v55 = vpop.permute.xlu1 %1077  ;;  %v7940_v59 = vpop.permute.xlu0 %1543 }
 0x161   :  { %7049 = vmatpush3.xpose.msk.msra.mxu1 %vm207_vm2, %v669_v27  ;;  %7050 = vmatprep.mubr.msk.f32.mxu1 %vm7615_vm1, %v7614_v12 }
 0x162   :  { %7058 = vmatprep.subr.mxu1 %v7614_v12 }
 0x164   :  { %7051 = vmatmul.mubr.msk.f32.vlgmr.msra.gmra.mxu1 %vm207_vm2, %v7798_v20  ;;  %v1154_v56 = vpop.permute.xlu1 %1153  ;;  %v7942_v61 = vpop.permute.xlu0 %1541 }
 0x165   :  { %7059 = vmatpush3.msra.mxu1 %v926_v30  ;;  %7060 = vmatprep.mubr.msk.f32.mxu1 %vm7615_vm1, %v7614_v12 }
 0x166   :  { %7068 = vmatprep.subr.mxu1 %v7614_v12 }
 0x168   :  { %v1306_v58 = vpop.permute.xlu1 %1305  ;;  %v1382_v63 = vpop.permute.xlu0 %1381 }
 0x16c   :  { %v1458_v60 = vpop.permute.xlu1 %1457 }
 0x170   :  { %v7944_v62 = vpop.permute.xlu1 %1621 }
 0x174   :  { %v7946_v0 = vpop.permute.xlu1 %1619 }
 0x20c   :  { %v7872_v31 = vpop.f32.mrf.mxu1 }
 0x20d   :  { %v821_v32 = vsel %vm207_vm2, %v7872_v31, -inf }
 0x20e   :  { %v7022_v33 = vpop.f32.mrf.mxu1  ;;  %822 = vmax.xlane.f32.xlu0 %v821_v32 }
 0x210   :  { %v7876_v34 = vpop.f32.mrf.mxu1 }
 0x211   :  { %v824_v35 = vsel %vm207_vm2, %v7876_v34, -inf }
 0x212   :  { %v7027_v36 = vpop.f32.mrf.mxu1  ;;  %825 = vmax.xlane.f32.xlu1 %v824_v35 }
 0x214   :  { %v7880_v37 = vpop.f32.mrf.mxu1 }
 0x215   :  { %v827_v38 = vsel %vm207_vm2, %v7880_v37, -inf }
 0x216   :  { %v7032_v39 = vpop.f32.mrf.mxu1  ;;  %828 = vmax.xlane.f32.xlu0 %v827_v38 }
 0x218   :  { %v7884_v40 = vpop.f32.mrf.mxu1 }
 0x219   :  { %v830_v49 = vsel %vm207_vm2, %v7884_v40, -inf }
 0x21a   :  { %v7037_v41 = vpop.f32.mrf.mxu1 }
 0x21c   :  { %v7886_v42 = vpop.f32.mrf.mxu1  ;;  %v7888_v43 = vpop.f32.mrf.mxu0 }
 0x21d   :  { %v833_v44 = vsel %vm207_vm2, %v7886_v42, -inf  ;;  %v842_v45 = vsel %vm207_vm2, %v7888_v43, -inf }
 0x21e   :  { %v7042_v46 = vpop.f32.mrf.mxu1  ;;  %834 = vmax.xlane.f32.xlu1 %v833_v44  ;;  %843 = vmax.xlane.f32.xlu0 %v842_v45  ;;  %v7057_v47 = vpop.f32.mrf.mxu0 }
 0x220   :  { %v7894_v48 = vpop.f32.mrf.mxu1 }
 0x221   :  { %v836_v52 = vsel %vm207_vm2, %v7894_v48, -inf }
 0x222   :  { %v7047_v50 = vpop.f32.mrf.mxu1  ;;  %831 = vmax.xlane.f32.xlu0 %v830_v49 }
 0x224   :  { %v7898_v51 = vpop.f32.mrf.mxu1 }
 0x225   :  { %v839_v54 = vsel %vm207_vm2, %v7898_v51, -inf }
 0x226   :  { %v7052_v53 = vpop.f32.mrf.mxu1  ;;  %837 = vmax.xlane.f32.xlu0 %v836_v52 }
 0x22f   :  { %1777 = vrot.lane.b32.xlu1 %v7780_v15, %s7618_s26 }
 0x233   :  { %1775 = vrot.lane.b32.xlu1 %v7780_v15, %s7619_s27 }
 0x23c   :  { %1699 = vrot.lane.b32.xlu0 %v7782_v16, %s7618_s26 }
 0x240   :  { %1697 = vrot.lane.b32.xlu0 %v7782_v16, %s7619_s27 }
 0x244   :  { %1855 = vrot.lane.b32.xlu0 %v7790_v18, %s7618_s26 }
 0x248   :  { %1853 = vrot.lane.b32.xlu0 %v7790_v18, %s7619_s27 }
 0x24c   :  { %2011 = vrot.lane.b32.xlu0 %v7798_v20, %s7618_s26 }
 0x250   :  { %2009 = vrot.lane.b32.xlu0 %v7798_v20, %s7619_s27 }
 0x254   :  { %2345 = vrot.lane.b32.xlu0 %v7774_v13, %s7620_s28 }
 0x257   :  { %840 = vmax.xlane.f32.xlu1 %v839_v54 }
 0x258   :  { %2573 = vrot.lane.b32.xlu0 %v7790_v18, %s7620_s28 }
 0x268   :  { %1933 = vrot.lane.b32.xlu1 %v7788_v17, %s7618_s26 }
 0x26c   :  { %1931 = vrot.lane.b32.xlu1 %v7788_v17, %s7619_s27 }
 0x270   :  { %2089 = vrot.lane.b32.xlu1 %v7796_v19, %s7618_s26 }
 0x274   :  { %2087 = vrot.lane.b32.xlu1 %v7796_v19, %s7619_s27 }
 0x278   :  { %2269 = vrot.lane.b32.xlu1 %v7776_v14, %s7620_s28 }
 0x27c   :  { %2421 = vrot.lane.b32.xlu1 %v7782_v16, %s7620_s28 }
 0x280   :  { %2497 = vrot.lane.b32.xlu1 %v7780_v15, %s7620_s28 }
 0x284   :  { %2649 = vrot.lane.b32.xlu1 %v7788_v17, %s7620_s28 }
 0x297   :  { %v823_v1 = vpop.xlane.xlu0 %822 }
 0x298   :  { %v845_v2 = vsub.f32 %v7872_v31, %v823_v1 }
 0x29a   :  { %v853_v3 = vmul.f32 1.442695, %v845_v2 }
 0x29b   :  { %v826_v4 = vpop.xlane.xlu1 %825 }
 0x29c   :  { %7470 = vpow2.f32 %v853_v3  ;;  %v846_v5 = vsub.f32 %v7876_v34, %v826_v4 }
 0x29e   :  { %v855_v6 = vmul.f32 1.442695, %v846_v5 }
 0x29f   :  { %v829_v7 = vpop.xlane.xlu0 %828 }
 0x2a0   :  { %7472 = vpow2.f32 %v855_v6  ;;  %v847_v8 = vsub.f32 %v7880_v37, %v829_v7 }
 0x2a2   :  { %v857_v9 = vmul.f32 1.442695, %v847_v8 }
 0x2a4   :  { %7474 = vpow2.f32 %v857_v9 }
 0x2a7   :  { %v835_v10 = vpop.xlane.xlu1 %834  ;;  %v844_v11 = vpop.xlane.xlu0 %843 }
 0x2a8   :  { %v849_v21 = vsub.f32 %v7886_v42, %v835_v10  ;;  %v852_v29 = vsub.f32 %v7888_v43, %v844_v11 }
 0x2a9   :  { %v7952_v22 = vpop.eup %7470 }
 0x2aa   :  { %v861_v23 = vmul.f32 1.442695, %v849_v21  ;;  %7061 = vmatmul.mubr.msk.f32.vlgmr.msra.gmra.mxu1 %vm207_vm2, %v7952_v22  ;;  %v867_v33 = vmul.f32 1.442695, %v852_v29 }
 0x2ab   :  { %7069 = vmatpush3.msra.mxu1 %v1078_v55  ;;  %v832_v24 = vpop.xlane.xlu0 %831  ;;  %7070 = vmatprep.mubr.msk.f32.mxu1 %vm7615_vm1, %v7614_v12  ;;  %v1778_v38 = vpop.permute.xlu1 %1777 }
 0x2ac   :  { %7476 = vpow2.f32 %v861_v23  ;;  %v848_v25 = vsub.f32 %v7884_v40, %v832_v24  ;;  %7078 = vmatprep.subr.mxu1 %v7614_v12 }
 0x2ad   :  { %v7960_v26 = vpop.eup %7472 }
 0x2ae   :  { %v859_v27 = vmul.f32 1.442695, %v848_v25  ;;  %7066 = vmatmul.mubr.msk.f32.vlgmr.msra.gmra.mxu0 %vm207_vm2, %v7960_v26 }
 0x2af   :  { %7074 = vmatpush3.msra.mxu0 %v1154_v56  ;;  %v838_v28 = vpop.xlane.xlu0 %837  ;;  %7075 = vmatprep.mubr.msk.f32.mxu0 %vm7615_vm1, %v7614_v12  ;;  %v1776_v39 = vpop.permute.xlu1 %1775 }
 0x2b0   :  { %7478 = vpow2.f32 %v859_v27  ;;  %v850_v30 = vsub.f32 %v7894_v48, %v838_v28  ;;  %7083 = vmatprep.subr.mxu0 %v7614_v12 }
 0x2b1   :  { %v7969_v31 = vpop.eup %7474 }
 0x2b2   :  { %v863_v32 = vmul.f32 1.442695, %v850_v30  ;;  %7071 = vmatmul.mubr.msk.f32.vlgmr.msra.gmra.mxu1 %vm207_vm2, %v7969_v31 }
 0x2b3   :  { %7079 = vmatpush3.msra.mxu1 %v1230_v57  ;;  %7080 = vmatprep.mubr.msk.f32.mxu1 %vm7615_vm1, %v7614_v12  ;;  %v1700_v40 = vpop.permute.xlu0 %1699 }
 0x2b4   :  { %7480 = vpow2.f32 %v863_v32  ;;  %7088 = vmatprep.subr.mxu1 %v7614_v12 }
 0x2b5   :  { %7482 = vpow2.f32 %v867_v33 }
 0x2b7   :  { %v1698_v41 = vpop.permute.xlu0 %1697 }
 0x2b9   :  { %v7976_v34 = vpop.eup %7476 }
 0x2ba   :  { %7081 = vmatmul.mubr.msk.f32.vlgmr.msra.gmra.mxu1 %vm207_vm2, %v7976_v34 }
 0x2bb   :  { %7089 = vmatpush3.msra.mxu1 %v1382_v63  ;;  %7090 = vmatprep.mubr.msk.f32.mxu1 %vm7615_vm1, %v7614_v12  ;;  %v1856_v42 = vpop.permute.xlu0 %1855 }
 0x2bc   :  { %7098 = vmatprep.subr.mxu1 %v7614_v12 }
 0x2bd   :  { %v7983_v35 = vpop.eup %7478 }
 0x2be   :  { %7076 = vmatmul.mubr.msk.f32.vlgmr.msra.gmra.mxu0 %vm207_vm2, %v7983_v35 }
 0x2bf   :  { %7084 = vmatpush3.msra.mxu0 %v1306_v58  ;;  %7085 = vmatprep.mubr.msk.f32.mxu0 %vm7615_vm1, %v7614_v12  ;;  %v1854_v43 = vpop.permute.xlu0 %1853 }
 0x2c0   :  { %7093 = vmatprep.subr.mxu0 %v7614_v12 }
 0x2c1   :  { %v7990_v36 = vpop.eup %7480 }
 0x2c2   :  { %7086 = vmatmul.mubr.msk.f32.vlgmr.msra.gmra.mxu0 %vm207_vm2, %v7990_v36  ;;  %v7997_v37 = vpop.eup %7482 }
 0x2c3   :  { %7094 = vmatpush3.msra.mxu0 %v1458_v60  ;;  %7095 = vmatprep.mubr.msk.f32.mxu0 %vm7615_vm1, %v7614_v12  ;;  %v2012_v48 = vpop.permute.xlu0 %2011 }
 0x2c4   :  { %7103 = vmatprep.subr.mxu0 %v7614_v12 }
 0x2c6   :  { %7096 = vmatmul.mubr.msk.f32.vlgmr.msra.gmra.mxu0 %vm207_vm2, %v7997_v37 }
 0x2c7   :  { %7104 = vmatpush3.xpose.msk.msra.mxu0 %vm207_vm2, %v7944_v62  ;;  %7105 = vmatprep.mubr.msk.f32.mxu0 %vm7615_vm1, %v7614_v12  ;;  %v2010_v50 = vpop.permute.xlu0 %2009 }
 0x2c8   :  { %7113 = vmatprep.subr.mxu0 %v7614_v12 }
 0x2ca   :  { %7106 = vmatmul.mubr.msk.f32.vlgmr.msra.gmra.mxu0 %vm207_vm2, %v7946_v0 }
 0x2cb   :  { %7114 = vmatpush3.xpose.msk.msra.mxu0 %vm207_vm2, %v1778_v38  ;;  %7115 = vmatprep.mubr.msk.f32.mxu0 %vm7615_vm1, %v7614_v12  ;;  %v2346_v53 = vpop.permute.xlu0 %2345 }
 0x2cc   :  { %7123 = vmatprep.subr.mxu0 %v7614_v12 }
 0x2ce   :  { %7116 = vmatmul.mubr.msk.f32.vlgmr.msra.gmra.mxu0 %vm207_vm2, %v1776_v39 }
 0x2cf   :  { %7125 = vmatprep.mubr.msk.f32.mxu0 %vm7615_vm1, %v7614_v12 }
 0x2e0   :  { %v841_v44 = vpop.xlane.xlu1 %840 }
 0x2e1   :  { %v851_v45 = vsub.f32 %v7898_v51, %v841_v44 }
 0x2e3   :  { %v865_v46 = vmul.f32 1.442695, %v851_v45 }
 0x2e4   :  { %v1934_v47 = vpop.permute.xlu1 %1933 }
 0x2e5   :  { %7484 = vpow2.f32 %v865_v46  ;;  %7124 = vmatpush3.xpose.msk.msra.mxu0 %vm207_vm2, %v1934_v47 }
 0x2e6   :  { %7133 = vmatprep.subr.mxu0 %v7614_v12 }
 0x2e8   :  { %v1932_v49 = vpop.permute.xlu1 %1931 }
 0x2e9   :  { %7126 = vmatmul.mubr.msk.f32.vlgmr.msra.gmra.mxu0 %vm207_vm2, %v1932_v49  ;;  %v872_v49 = vsel %vm207_vm2, %v7960_v26, 0.0 }
 0x2ea   :  { %7135 = vmatprep.mubr.msk.f32.mxu0 %vm7615_vm1, %v7614_v12 }
 0x2ec   :  { %v2090_v52 = vpop.permute.xlu1 %2089 }
 0x2ed   :  { %7134 = vmatpush3.xpose.msk.msra.mxu0 %vm207_vm2, %v2090_v52 }
 0x2ee   :  { %7143 = vmatprep.subr.mxu0 %v7614_v12 }
 0x2f0   :  { %v2088_v51 = vpop.permute.xlu1 %2087 }
 0x2f1   :  { %7136 = vmatmul.mubr.msk.f32.vlgmr.msra.gmra.mxu0 %vm207_vm2, %v2088_v51  ;;  %v878_v51 = vsel %vm207_vm2, %v7983_v35, 0.0 }
 0x2f2   :  { %v8024_v54 = vpop.eup %7484  ;;  %7144 = vmatpush3.msra.mxu0 %v2346_v53  ;;  %7145 = vmatprep.mubr.msk.f32.mxu0 %vm7615_vm1, %v7614_v12  ;;  %v881_v53 = vsel %vm207_vm2, %v7976_v34, 0.0 }
 0x2f3   :  { %7091 = vmatmul.mubr.msk.f32.vlgmr.msra.gmra.mxu1 %vm207_vm2, %v8024_v54  ;;  %7153 = vmatprep.subr.mxu0 %v7614_v12 }
 0x2f4   :  { %7099 = vmatpush3.xpose.msk.msra.mxu1 %vm207_vm2, %v7940_v59  ;;  %7100 = vmatprep.mubr.msk.f32.mxu1 %vm7615_vm1, %v7614_v12  ;;  %v2270_v55 = vpop.permute.xlu1 %2269 }
 0x2f5   :  { %7108 = vmatprep.subr.mxu1 %v7614_v12 }
 0x2f7   :  { %7101 = vmatmul.mubr.msk.f32.vlgmr.msra.gmra.mxu1 %vm207_vm2, %v7942_v61 }
 0x2f8   :  { %7109 = vmatpush3.xpose.msk.msra.mxu1 %vm207_vm2, %v1700_v40  ;;  %7110 = vmatprep.mubr.msk.f32.mxu1 %vm7615_vm1, %v7614_v12  ;;  %v2422_v52 = vpop.permute.xlu1 %2421 }
 0x2f9   :  { %7118 = vmatprep.subr.mxu1 %v7614_v12 }
 0x2fb   :  { %7111 = vmatmul.mubr.msk.f32.vlgmr.msra.gmra.mxu1 %vm207_vm2, %v1698_v41 }
 0x2fc   :  { %7119 = vmatpush3.xpose.msk.msra.mxu1 %vm207_vm2, %v1856_v42  ;;  %7120 = vmatprep.mubr.msk.f32.mxu1 %vm7615_vm1, %v7614_v12 }
 0x2fd   :  { %7128 = vmatprep.subr.mxu1 %v7614_v12 }
 0x2ff   :  { %7121 = vmatmul.mubr.msk.f32.vlgmr.msra.gmra.mxu1 %vm207_vm2, %v1854_v43 }
 0x300   :  { %7129 = vmatpush3.xpose.msk.msra.mxu1 %vm207_vm2, %v2012_v48  ;;  %7130 = vmatprep.mubr.msk.f32.mxu1 %vm7615_vm1, %v7614_v12  ;;  %v869_v48 = vsel %vm207_vm2, %v7952_v22, 0.0  ;;  %v884_v22 = vsel %vm207_vm2, %v7990_v36, 0.0  ;;  %v2574_v36 = vpop.permute.xlu0 %2573 }
 0x301   :  { %7138 = vmatprep.subr.mxu1 %v7614_v12 }
 0x303   :  { %7131 = vmatmul.mubr.msk.f32.vlgmr.msra.gmra.mxu1 %vm207_vm2, %v2010_v50  ;;  %v875_v50 = vsel %vm207_vm2, %v7969_v31, 0.0 }
 0x304   :  { %7139 = vmatpush3.msra.mxu1 %v2270_v55  ;;  %7140 = vmatprep.mubr.msk.f32.mxu1 %vm7615_vm1, %v7614_v12  ;;  %v2498_v55 = vpop.permute.xlu1 %2497 }
 0x305   :  { %7148 = vmatprep.subr.mxu1 %v7614_v12 }
 0x308   :  { %v8109_v26 = vpop.permute.xlu1 %2649 }
 0x36a   :  { %v8056_v56 = vpop.f32.mrf.mxu1 }
 0x36c   :  { %v7062_v57 = vpop.f32.mrf.mxu1 }
 0x36e   :  { %v8058_v58 = vpop.f32.mrf.mxu0 }
 0x370   :  { %v7067_v59 = vpop.f32.mrf.mxu0 }
 0x372   :  { %v8060_v60 = vpop.f32.mrf.mxu1 }
 0x374   :  { %v7072_v61 = vpop.f32.mrf.mxu1 }
 0x37a   :  { %v8062_v62 = vpop.f32.mrf.mxu1 }
 0x37c   :  { %v7082_v63 = vpop.f32.mrf.mxu1 }
 0x37e   :  { %v8064_v0 = vpop.f32.mrf.mxu0 }
 0x380   :  { %v7077_v1 = vpop.f32.mrf.mxu0 }
 0x382   :  { %v8066_v2 = vpop.f32.mrf.mxu0 }
 0x384   :  { %v7087_v3 = vpop.f32.mrf.mxu0 }
 0x386   :  { %v8068_v4 = vpop.f32.mrf.mxu0 }
 0x388   :  { %v7097_v5 = vpop.f32.mrf.mxu0 }
 0x38a   :  { %v1693_v6 = vpop.f32.mrf.mxu0 }
 0x38b   :  { %v2168_v7 = vsel %vm207_vm2, %v1693_v6, -inf }
 0x38c   :  { %2169 = vmax.xlane.f32.xlu1 %v2168_v7  ;;  %v7107_v8 = vpop.f32.mrf.mxu0 }
 0x38e   :  { %v8071_v9 = vpop.f32.mrf.mxu0 }
 0x38f   :  { %v2174_v41 = vsel %vm207_vm2, %v8071_v9, -inf }
 0x390   :  { %v7117_v10 = vpop.f32.mrf.mxu0 }
 0x3a9   :  { %v8073_v11 = vpop.f32.mrf.mxu0 }
 0x3aa   :  { %v2180_v45 = vsel %vm207_vm2, %v8073_v11, -inf }
 0x3ab   :  { %v7127_v21 = vpop.f32.mrf.mxu0 }
 0x3b1   :  { %v8075_v23 = vpop.f32.mrf.mxu0 }
 0x3b2   :  { %v2186_v47 = vsel %vm207_vm2, %v8075_v23, -inf }
 0x3b3   :  { %v8077_v24 = vpop.f32.mrf.mxu1  ;;  %v7137_v25 = vpop.f32.mrf.mxu0 }
 0x3b5   :  { %v7092_v27 = vpop.f32.mrf.mxu1 }
 0x3b7   :  { %v1615_v28 = vpop.f32.mrf.mxu1 }
 0x3b8   :  { %v2165_v29 = vsel %vm207_vm2, %v1615_v28, -inf }
 0x3b9   :  { %v7102_v30 = vpop.f32.mrf.mxu1  ;;  %2166 = vmax.xlane.f32.xlu0 %v2165_v29 }
 0x3bb   :  { %v1771_v32 = vpop.f32.mrf.mxu1 }
 0x3bc   :  { %v2171_v33 = vsel %vm207_vm2, %v1771_v32, -inf }
 0x3bd   :  { %2172 = vmax.xlane.f32.xlu0 %v2171_v33  ;;  %v7112_v38 = vpop.f32.mrf.mxu1 }
 0x3bf   :  { %v1927_v39 = vpop.f32.mrf.mxu1 }
 0x3c0   :  { %v2177_v40 = vsel %vm207_vm2, %v1927_v39, -inf }
 0x3c1   :  { %v7122_v42 = vpop.f32.mrf.mxu1  ;;  %2178 = vmax.xlane.f32.xlu1 %v2177_v40  ;;  %2175 = vmax.xlane.f32.xlu0 %v2174_v41 }
 0x3c3   :  { %v2083_v43 = vpop.f32.mrf.mxu1 }
 0x3c4   :  { %v2183_v44 = vsel %vm207_vm2, %v2083_v43, -inf }
 0x3c5   :  { %v7132_v46 = vpop.f32.mrf.mxu1  ;;  %2184 = vmax.xlane.f32.xlu1 %v2183_v44  ;;  %2181 = vmax.xlane.f32.xlu0 %v2180_v45 }
 0x3c9   :  { %2187 = vmax.xlane.f32.xlu0 %v2186_v47  ;;  %v887_v47 = vsel %vm207_vm2, %v8024_v54, 0.0  ;;  %v200_v54 = vld [vmem:[%s8906_s0] sm:$0xff] }
 0x3d6   :  { %2801 = vrot.lane.b32.xlu1 %v7796_v19, %s7620_s28 }
 0x3df   :  { %2725 = vrot.lane.b32.xlu0 %v7798_v20, %s7620_s28  ;;  %s7626_s28 = smov 40  }
 0x3fa   :  { %870 = vadd.xlane.f32.xlu1 %v869_v48 }
 0x3fe   :  { %873 = vadd.xlane.f32.xlu0 %v872_v49 }
 0x402   :  { %876 = vadd.xlane.f32.xlu0 %v875_v50 }
 0x406   :  { %879 = vadd.xlane.f32.xlu0 %v878_v51  ;;  %v890_v51 = vsel %vm207_vm2, %v7997_v37, 0.0 }
 0x40a   :  { %882 = vadd.xlane.f32.xlu0 %v881_v53 }
 0x40b   :  { %3145 = vrot.lane.b32.xlu1 %v7776_v14, %s7621_s30 }
 0x40e   :  { %885 = vadd.xlane.f32.xlu0 %v884_v22 }
 0x40f   :  { %3143 = vrot.lane.b32.xlu1 %v7776_v14, %s7622_s29 }
 0x413   :  { %3221 = vrot.lane.b32.xlu1 %v7774_v13, %s7622_s29 }
 0x415   :  { %v2170_v31 = vpop.xlane.xlu1 %2169 }
 0x416   :  { %v2190_v34 = vsub.f32 %v1693_v6, %v2170_v31 }
 0x417   :  { %3379 = vrot.lane.b32.xlu1 %v7780_v15, %s7621_s30 }
 0x418   :  { %v2199_v35 = vmul.f32 1.442695, %v2190_v34 }
 0x41a   :  { %7486 = vpow2.f32 %v2199_v35 }
 0x427   :  { %v7487_v57 = vpop.eup %7486 }
 0x428   :  { %7146 = vmatmul.mubr.msk.f32.vlgmr.msra.gmra.mxu0 %vm207_vm2, %v7487_v57  ;;  %v2216_v42 = vsel %vm207_vm2, %v7487_v57, 0.0 }
 0x429   :  { %7154 = vmatpush3.msra.mxu0 %v2498_v55  ;;  %7155 = vmatprep.mubr.msk.f32.mxu0 %vm7615_vm1, %v7614_v12 }
 0x42a   :  { %7163 = vmatprep.subr.mxu0 %v7614_v12 }
 0x442   :  { %v2167_v59 = vpop.xlane.xlu0 %2166 }
 0x443   :  { %v2189_v61 = vsub.f32 %v1615_v28, %v2167_v59 }
 0x445   :  { %v2197_v63 = vmul.f32 1.442695, %v2189_v61 }
 0x446   :  { %v2173_v1 = vpop.xlane.xlu0 %2172 }
 0x447   :  { %7488 = vpow2.f32 %v2197_v63  ;;  %v2191_v3 = vsub.f32 %v1771_v32, %v2173_v1 }
 0x449   :  { %v2201_v5 = vmul.f32 1.442695, %v2191_v3 }
 0x44a   :  { %v2179_v6 = vpop.xlane.xlu1 %2178  ;;  %v2176_v7 = vpop.xlane.xlu0 %2175 }
 0x44b   :  { %7490 = vpow2.f32 %v2201_v5  ;;  %v2193_v8 = vsub.f32 %v1927_v39, %v2179_v6  ;;  %v2192_v10 = vsub.f32 %v8071_v9, %v2176_v7  ;;  %v201_v5 = vld [vmem:[%s8906_s0 + $0x8] sm:$0xff] }
 0x44d   :  { %v2205_v21 = vmul.f32 1.442695, %v2193_v8  ;;  %v2203_v25 = vmul.f32 1.442695, %v2192_v10 }
 0x44e   :  { %v2185_v27 = vpop.xlane.xlu1 %2184  ;;  %v2182_v29 = vpop.xlane.xlu0 %2181 }
 0x44f   :  { %7492 = vpow2.f32 %v2205_v21  ;;  %v2195_v30 = vsub.f32 %v2083_v43, %v2185_v27  ;;  %v2194_v33 = vsub.f32 %v8073_v11, %v2182_v29 }
 0x450   :  { %7494 = vpow2.f32 %v2203_v25 }
 0x451   :  { %v2209_v28 = vmul.f32 1.442695, %v2195_v30  ;;  %v2207_v38 = vmul.f32 1.442695, %v2194_v33 }
 0x452   :  { %v2188_v40 = vpop.xlane.xlu0 %2187  ;;  %v2802_v50 = vpop.permute.xlu1 %2801 }
 0x453   :  { %7496 = vpow2.f32 %v2209_v28  ;;  %v2196_v32 = vsub.f32 %v8075_v23, %v2188_v40 }
 0x454   :  { %v7489_v41 = vpop.eup %7488  ;;  %7498 = vpow2.f32 %v2207_v38 }
 0x455   :  { %v2211_v39 = vmul.f32 1.442695, %v2196_v32  ;;  %7141 = vmatmul.mubr.msk.f32.vlgmr.msra.gmra.mxu1 %vm207_vm2, %v7489_v41  ;;  %v2213_v9 = vsel %vm207_vm2, %v7489_v41, 0.0 }
 0x456   :  { %7149 = vmatpush3.msra.mxu1 %v2422_v52  ;;  %2214 = vadd.xlane.f32.xlu0 %v2213_v9  ;;  %v2726_v45 = vpop.permute.xlu0 %2725 }
 0x457   :  { %7500 = vpow2.f32 %v2211_v39  ;;  %7150 = vmatprep.mubr.msk.f32.mxu1 %vm7615_vm1, %v7614_v12  ;;  %7158 = vmatprep.subr.mxu1 %v7614_v12 }
 0x458   :  { %v7491_v11 = vpop.eup %7490 }
 0x459   :  { %7151 = vmatmul.mubr.msk.f32.vlgmr.msra.gmra.mxu1 %vm207_vm2, %v7491_v11  ;;  %v2219_v23 = vsel %vm207_vm2, %v7491_v11, 0.0 }
 0x45a   :  { %7159 = vmatpush3.msra.mxu1 %v2574_v36  ;;  %2220 = vadd.xlane.f32.xlu1 %v2219_v23 }
 0x45b   :  { %2217 = vadd.xlane.f32.xlu0 %v2216_v42  ;;  %7160 = vmatprep.mubr.msk.f32.mxu1 %vm7615_vm1, %v7614_v12 }
 0x45c   :  { %v7493_v43 = vpop.eup %7492  ;;  %7168 = vmatprep.subr.mxu1 %v7614_v12 }
 0x45d   :  { %v7495_v44 = vpop.eup %7494  ;;  %7161 = vmatmul.mubr.msk.f32.vlgmr.msra.gmra.mxu1 %vm207_vm2, %v7493_v43  ;;  %v2225_v52 = vsel %vm207_vm2, %v7493_v43, 0.0 }
 0x45e   :  { %7156 = vmatmul.mubr.msk.f32.vlgmr.msra.gmra.mxu0 %vm207_vm2, %v7495_v44  ;;  %7169 = vmatpush3.msra.mxu1 %v2726_v45  ;;  %v2222_v46 = vsel %vm207_vm2, %v7495_v44, 0.0 }
 0x45f   :  { %7164 = vmatpush3.msra.mxu0 %v8109_v26  ;;  %2223 = vadd.xlane.f32.xlu1 %v2222_v46 }
 0x460   :  { %v7497_v48 = vpop.eup %7496  ;;  %888 = vadd.xlane.f32.xlu0 %v887_v47  ;;  %7165 = vmatprep.mubr.msk.f32.mxu0 %vm7615_vm1, %v7614_v12 }
 0x461   :  { %v7499_v49 = vpop.eup %7498  ;;  %7170 = vmatprep.mubr.msk.f32.mxu1 %vm7615_vm1, %v7614_v12  ;;  %7173 = vmatprep.subr.mxu0 %v7614_v12  ;;  %v2231_v22 = vsel %vm207_vm2, %v7497_v48, 0.0 }
 0x462   :  { %7166 = vmatmul.mubr.msk.f32.vlgmr.msra.gmra.mxu0 %vm207_vm2, %v7499_v49  ;;  %7171 = vmatmul.mubr.msk.f32.vlgmr.msra.gmra.mxu1 %vm207_vm2, %v7497_v48  ;;  %v2228_v55 = vsel %vm207_vm2, %v7499_v49, 0.0 }
 0x463   :  { %7174 = vmatpush3.msra.mxu0 %v2802_v50  ;;  %2226 = vadd.xlane.f32.xlu1 %v2225_v52 }
 0x464   :  { %v7501_v53 = vpop.eup %7500  ;;  %891 = vadd.xlane.f32.xlu0 %v890_v51  ;;  %7175 = vmatprep.mubr.msk.f32.mxu0 %vm7615_vm1, %v7614_v12 }
 0x465   :  { %7192 = vmatprep.subr.mxu0 %v200_v54  ;;  %v2234_v26 = vsel %vm207_vm2, %v7501_v53, 0.0  ;;  %7178 = vmatprep.subr.mxu1 %v201_v5 }
 0x466   :  { %7176 = vmatmul.mubr.msk.f32.vlgmr.msra.gmra.mxu0 %vm207_vm2, %v7501_v53  ;;  %7179 = vmatpush3.msra.mxu1 %v201_v5 }
 0x467   :  { %2229 = vadd.xlane.f32.xlu1 %v2228_v55  ;;  %7193 = vmatpush3.msra.mxu0 %v200_v54 }
 0x468   :  { %7211 = vmatprep.subr.mxu0 %v7614_v12  ;;  %7206 = vmatprep.subr.mxu1 %v7614_v12 }
 0x46b   :  { %2232 = vadd.xlane.f32.xlu1 %v2231_v22 }
 0x46f   :  { %2235 = vadd.xlane.f32.xlu1 %v2234_v26 }
 0x47a   :  { %3223 = vrot.lane.b32.xlu0 %v7774_v13, %s7621_s30 }
 0x47e   :  { %3301 = vrot.lane.b32.xlu0 %v7782_v16, %s7621_s30 }
 0x480   :  { %3377 = vrot.lane.b32.xlu1 %v7780_v15, %s7622_s29 }
 0x482   :  { %3299 = vrot.lane.b32.xlu0 %v7782_v16, %s7622_s29 }
 0x483   :  { %v871_v37 = vpop.xlane.xlu1 %870 }
 0x484   :  { %7502 = vrcp.f32 %v871_v37  ;;  %3535 = vrot.lane.b32.xlu1 %v7788_v17, %s7621_s30 }
 0x486   :  { %3457 = vrot.lane.b32.xlu0 %v7790_v18, %s7621_s30 }
 0x487   :  { %v874_v31 = vpop.xlane.xlu0 %873  ;;  %v8201_v45 = vpop.permute.xlu1 %3145 }
 0x488   :  { %3533 = vrot.lane.b32.xlu1 %v7788_v17, %s7622_s29  ;;  %7504 = vrcp.f32 %v874_v31 }
 0x48a   :  { %3455 = vrot.lane.b32.xlu0 %v7790_v18, %s7622_s29 }
 0x48b   :  { %v877_v34 = vpop.xlane.xlu0 %876  ;;  %v8203_v46 = vpop.permute.xlu1 %3143 }
 0x48c   :  { %3691 = vrot.lane.b32.xlu1 %v7796_v19, %s7621_s30  ;;  %7506 = vrcp.f32 %v877_v34 }
 0x48e   :  { %3613 = vrot.lane.b32.xlu0 %v7798_v20, %s7621_s30 }
 0x48f   :  { %v880_v35 = vpop.xlane.xlu0 %879 }
 0x490   :  { %3689 = vrot.lane.b32.xlu1 %v7796_v19, %s7622_s29  ;;  %7508 = vrcp.f32 %v880_v35 }
 0x491   :  { %v7503_v57 = vpop.eup %7502 }
 0x492   :  { %v901_v36 = vmul.f32 %v7503_v57, %v871_v37  ;;  %3611 = vrot.lane.b32.xlu0 %v7798_v20, %s7622_s29 }
 0x493   :  { %v883_v59 = vpop.xlane.xlu0 %882 }
 0x494   :  { %v909_v61 = vsub.f32 2.0, %v901_v36  ;;  %3871 = vrot.lane.b32.xlu1 %v7776_v14, %s7623_s21  ;;  %7510 = vrcp.f32 %v883_v59 }
 0x495   :  { %v7505_v63 = vpop.eup %7504 }
 0x496   :  { %v917_v1 = vmul.f32 %v7503_v57, %v909_v61  ;;  %v902_v3 = vmul.f32 %v7505_v63, %v874_v31 }
 0x497   :  { %v886_v6 = vpop.xlane.xlu0 %885 }
 0x498   :  { %v910_v7 = vsub.f32 2.0, %v902_v3  ;;  %7512 = vrcp.f32 %v886_v6  ;;  %v1533_v8 = vmul.f32 %v8056_v56, %v917_v1 }
 0x499   :  { %v7507_v10 = vpop.eup %7506 }
 0x49a   :  { %v918_v21 = vmul.f32 %v7505_v63, %v910_v7  ;;  %v903_v25 = vmul.f32 %v7507_v10, %v877_v34  ;;  %7194 = vmatprep.mubr.msk.f32.mxu0 %vm207_vm2, %v1533_v8 }
 0x49c   :  { %v1534_v27 = vmul.f32 %v8058_v58, %v918_v21  ;;  %v911_v29 = vsub.f32 2.0, %v903_v25 }
 0x49d   :  { %v7509_v30 = vpop.eup %7508 }
 0x49e   :  { %v919_v33 = vmul.f32 %v7507_v10, %v911_v29  ;;  %v904_v28 = vmul.f32 %v7509_v30, %v880_v35  ;;  %7195 = vmatmul.mubr.msk.f32.vlgmr.msra.gmra.mxu0 %vm207_vm2, %v1534_v27 }
 0x4a0   :  { %v912_v38 = vsub.f32 2.0, %v904_v28  ;;  %v1535_v40 = vmul.f32 %v8060_v60, %v919_v33 }
 0x4a1   :  { %v7511_v56 = vpop.eup %7510 }
 0x4a2   :  { %v920_v32 = vmul.f32 %v7509_v30, %v912_v38  ;;  %v905_v41 = vmul.f32 %v7511_v56, %v883_v59  ;;  %7197 = vmatprep.mubr.msk.f32.mxu0 %vm207_vm2, %v1535_v40 }
 0x4a4   :  { %v913_v39 = vsub.f32 2.0, %v905_v41  ;;  %v1536_v9 = vmul.f32 %v8064_v0, %v920_v32  ;;  %v3222_v0 = vpop.permute.xlu1 %3221 }
 0x4a5   :  { %v7513_v11 = vpop.eup %7512 }
 0x4a6   :  { %v921_v23 = vmul.f32 %v7511_v56, %v913_v39  ;;  %v906_v58 = vmul.f32 %v7513_v11, %v886_v6  ;;  %7198 = vmatmul.mubr.msk.f32.gmra.mxu0 %vm207_vm2, %v1536_v9 }
 0x4a8   :  { %v914_v42 = vsub.f32 2.0, %v906_v58  ;;  %v1537_v43 = vmul.f32 %v8062_v62, %v921_v23  ;;  %v3380_v47 = vpop.permute.xlu1 %3379 }
 0x4aa   :  { %v922_v44 = vmul.f32 %v7513_v11, %v914_v42  ;;  %7200 = vmatprep.mubr.msk.f32.mxu0 %vm207_vm2, %v1537_v43 }
 0x4ac   :  { %v1538_v60 = vmul.f32 %v8066_v2, %v922_v44 }
 0x4ae   :  { %7201 = vmatmul.mubr.msk.f32.gmra.mxu0 %vm207_vm2, %v1538_v60 }
 0x4df   :  { %v2215_v48 = vpop.xlane.xlu0 %2214 }
 0x4e3   :  { %v2221_v49 = vpop.xlane.xlu1 %2220 }
 0x4e4   :  { %v2218_v50 = vpop.xlane.xlu0 %2217 }
 0x4e8   :  { %v8205_v52 = vpop.xlane.xlu1 %2223  ;;  %v8207_v54 = vpop.f32.mrf.mxu0 }
 0x4e9   :  { %v889_v62 = vpop.xlane.xlu0 %888 }
 0x4ea   :  { %7514 = vrcp.f32 %v889_v62  ;;  %v7147_v51 = vpop.f32.mrf.mxu0 }
 0x4ec   :  { %v2227_v53 = vpop.xlane.xlu1 %2226 }
 0x4ed   :  { %v892_v2 = vpop.xlane.xlu0 %891 }
 0x4ee   :  { %7516 = vrcp.f32 %v892_v2 }
 0x4ef   :  { %7518 = vrcp.f32 %v2218_v50 }
 0x4f0   :  { %v8209_v55 = vpop.xlane.xlu1 %2229  ;;  %7520 = vrcp.f32 %v2215_v48 }
 0x4f1   :  { %v3224_v22 = vpop.permute.xlu0 %3223  ;;  %7522 = vrcp.f32 %v2221_v49 }
 0x4f2   :  { %7212 = vmatpush3.xpose.msk.msra.mxu0 %vm207_vm2, %v3224_v22  ;;  %7524 = vrcp.f32 %v2227_v53 }
 0x4f3   :  { %7221 = vmatprep.subr.mxu0 %v7614_v12  ;;  %7526 = vrcp.f32 %v8205_v52 }
 0x4f4   :  { %v8213_v26 = vpop.xlane.xlu1 %2232  ;;  %7528 = vrcp.f32 %v8209_v55 }
 0x4f5   :  { %7530 = vrcp.f32 %v8213_v26 }
 0x4f7   :  { %v7515_v37 = vpop.eup %7514 }
 0x4f8   :  { %v907_v31 = vmul.f32 %v7515_v37, %v889_v62  ;;  %v8215_v34 = vpop.xlane.xlu1 %2235 }
 0x4f9   :  { %7532 = vrcp.f32 %v8215_v34 }
 0x4fa   :  { %v915_v35 = vsub.f32 2.0, %v907_v31 }
 0x4fb   :  { %v7517_v57 = vpop.eup %7516 }
 0x4fc   :  { %v923_v36 = vmul.f32 %v7515_v37, %v915_v35  ;;  %v908_v59 = vmul.f32 %v7517_v57, %v892_v2  ;;  %v3378_v61 = vpop.permute.xlu1 %3377  ;;  %v7519_v8 = vpop.eup %7518 }
 0x4fe   :  { %v916_v63 = vsub.f32 2.0, %v908_v59  ;;  %v1539_v1 = vmul.f32 %v8077_v24, %v923_v36  ;;  %v7521_v24 = vpop.eup %7520 }
 0x4ff   :  { %v2245_v10 = vmul.f32 %v7521_v24, %v2215_v48  ;;  %v7523_v21 = vpop.eup %7522 }
 0x500   :  { %v924_v3 = vmul.f32 %v7517_v57, %v916_v63  ;;  %7203 = vmatprep.mubr.msk.f32.mxu0 %vm207_vm2, %v1539_v1  ;;  %v3536_v5 = vpop.permute.xlu1 %3535  ;;  %v2247_v30 = vmul.f32 %v7523_v21, %v2221_v49  ;;  %v7525_v33 = vpop.eup %7524 }
 0x501   :  { %v2253_v29 = vsub.f32 2.0, %v2245_v10  ;;  %v7527_v28 = vpop.eup %7526  ;;  %v2249_v32 = vmul.f32 %v7525_v33, %v2227_v53 }
 0x502   :  { %v1540_v6 = vmul.f32 %v8068_v4, %v924_v3  ;;  %v2246_v4 = vmul.f32 %v7519_v8, %v2218_v50  ;;  %v2255_v56 = vsub.f32 2.0, %v2247_v30  ;;  %v7529_v39 = vpop.eup %7528  ;;  %v2248_v9 = vmul.f32 %v7527_v28, %v8205_v52  ;;  %v3302_v52 = vpop.permute.xlu0 %3301 }
 0x503   :  { %v2261_v41 = vmul.f32 %v7521_v24, %v2253_v29  ;;  %v7531_v23 = vpop.eup %7530  ;;  %v2257_v44 = vsub.f32 2.0, %v2249_v32 }
 0x504   :  { %7204 = vmatmul.mubr.msk.f32.gmra.mxu0 %vm207_vm2, %v1540_v6  ;;  %v3534_v7 = vpop.permute.xlu1 %3533  ;;  %v2254_v27 = vsub.f32 2.0, %v2246_v4  ;;  %v2263_v60 = vmul.f32 %v7523_v21, %v2255_v56  ;;  %v2251_v48 = vmul.f32 %v7531_v23, %v8213_v26 }
 0x505   :  { %7213 = vmatprep.mubr.msk.f32.mxu0 %vm7615_vm1, %v7614_v12  ;;  %v2265_v51 = vmul.f32 %v7525_v33, %v2257_v44 }
 0x506   :  { %v2262_v38 = vmul.f32 %v7519_v8, %v2254_v27  ;;  %v7533_v50 = vpop.eup %7532  ;;  %v2259_v2 = vsub.f32 2.0, %v2251_v48  ;;  %v3300_v36 = vpop.permute.xlu0 %3299 }
 0x508   :  { %7214 = vmatmul.mubr.msk.f32.vlgmr.msra.gmra.mxu0 %vm207_vm2, %v3222_v0  ;;  %v3692_v25 = vpop.permute.xlu1 %3691  ;;  %v2878_v42 = vmul.f32 %v8207_v54, %v2262_v38  ;;  %v2256_v0 = vsub.f32 2.0, %v2248_v9  ;;  %v2267_v63 = vmul.f32 %v7531_v23, %v2259_v2 }
 0x509   :  { %7222 = vmatpush3.xpose.msk.msra.mxu0 %vm207_vm2, %v3380_v47  ;;  %7223 = vmatprep.mubr.msk.f32.mxu0 %vm7615_vm1, %v7614_v12  ;;  %v2250_v47 = vmul.f32 %v7529_v39, %v8209_v55  ;;  %v2252_v55 = vmul.f32 %v7533_v50, %v8215_v34 }
 0x50a   :  { %7231 = vmatprep.subr.mxu0 %v7614_v12  ;;  %v2264_v22 = vmul.f32 %v7527_v28, %v2256_v0  ;;  %v3458_v24 = vpop.permute.xlu0 %3457 }
 0x50b   :  { %v2258_v53 = vsub.f32 2.0, %v2250_v47 }
 0x50c   :  { %7224 = vmatmul.mubr.msk.f32.vlgmr.msra.gmra.mxu0 %vm207_vm2, %v3378_v61  ;;  %v3690_v40 = vpop.permute.xlu1 %3689  ;;  %v2260_v61 = vsub.f32 2.0, %v2252_v55 }
 0x50d   :  { %7232 = vmatpush3.xpose.msk.msra.mxu0 %vm207_vm2, %v3536_v5  ;;  %7233 = vmatprep.mubr.msk.f32.mxu0 %vm7615_vm1, %v7614_v12 }
 0x50e   :  { %7241 = vmatprep.subr.mxu0 %v7614_v12  ;;  %v2268_v8 = vmul.f32 %v7533_v50, %v2260_v61 }
 0x510   :  { %7234 = vmatmul.mubr.msk.f32.vlgmr.msra.gmra.mxu0 %vm207_vm2, %v3534_v7  ;;  %v3872_v29 = vpop.permute.xlu1 %3871 }
 0x511   :  { %7242 = vmatpush3.xpose.msk.msra.mxu0 %vm207_vm2, %v3692_v25  ;;  %7243 = vmatprep.mubr.msk.f32.mxu0 %vm7615_vm1, %v7614_v12  ;;  %v3456_v25 = vpop.permute.xlu0 %3455 }
 0x512   :  { %7251 = vmatprep.subr.mxu0 %v7614_v12 }
 0x514   :  { %7244 = vmatmul.mubr.msk.f32.vlgmr.msra.gmra.mxu0 %vm207_vm2, %v3690_v40 }
 0x515   :  { %v2341_v11 = vpop.f32.mrf.mxu1  ;;  %7253 = vmatprep.mubr.msk.f32.mxu0 %vm7615_vm1, %v7614_v12  ;;  %v3614_v27 = vpop.permute.xlu0 %3613 }
 0x516   :  { %v2877_v58 = vmul.f32 %v2341_v11, %v2261_v41 }
 0x517   :  { %v7142_v43 = vpop.f32.mrf.mxu1 }
 0x518   :  { %7180 = vmatprep.mubr.msk.f32.mxu1 %vm207_vm2, %v2877_v58 }
 0x519   :  { %v2493_v49 = vpop.f32.mrf.mxu1  ;;  %7181 = vmatmul.mubr.msk.f32.vlgmr.msra.gmra.mxu1 %vm207_vm2, %v2878_v42 }
 0x51a   :  { %v2879_v62 = vmul.f32 %v2493_v49, %v2263_v60  ;;  %7207 = vmatpush3.xpose.msk.msra.mxu1 %vm207_vm2, %v8201_v45  ;;  %v2266_v45 = vmul.f32 %v7529_v39, %v2258_v53 }
 0x51b   :  { %v7152_v54 = vpop.f32.mrf.mxu1  ;;  %7216 = vmatprep.subr.mxu1 %v7614_v12 }
 0x51c   :  { %7183 = vmatprep.mubr.msk.f32.mxu1 %vm207_vm2, %v2879_v62 }
 0x51d   :  { %v2645_v26 = vpop.f32.mrf.mxu1 }
 0x51e   :  { %v2569_v37 = vpop.f32.mrf.mxu0  ;;  %v2881_v31 = vmul.f32 %v2645_v26, %v2265_v51 }
 0x51f   :  { %v2880_v35 = vmul.f32 %v2569_v37, %v2264_v22  ;;  %v7162_v57 = vpop.f32.mrf.mxu1 }
 0x520   :  { %v7157_v59 = vpop.f32.mrf.mxu0 }
 0x521   :  { %7184 = vmatmul.mubr.msk.f32.gmra.mxu1 %vm207_vm2, %v2880_v35 }
 0x522   :  { %v2721_v1 = vpop.f32.mrf.mxu0  ;;  %v2797_v3 = vpop.f32.mrf.mxu1  ;;  %7186 = vmatprep.mubr.msk.f32.mxu1 %vm207_vm2, %v2881_v31 }
 0x523   :  { %v2882_v5 = vmul.f32 %v2721_v1, %v2266_v45  ;;  %v2883_v6 = vmul.f32 %v2797_v3, %v2267_v63 }
 0x524   :  { %v7167_v34 = vpop.f32.mrf.mxu0  ;;  %v7172_v7 = vpop.f32.mrf.mxu1 }
 0x525   :  { %7187 = vmatmul.mubr.msk.f32.gmra.mxu1 %vm207_vm2, %v2882_v5 }
 0x526   :  { %v2873_v4 = vpop.f32.mrf.mxu0  ;;  %7189 = vmatprep.mubr.msk.f32.mxu1 %vm207_vm2, %v2883_v6 }
 0x527   :  { %v2884_v10 = vmul.f32 %v2873_v4, %v2268_v8 }
 0x528   :  { %v7177_v21 = vpop.f32.mrf.mxu0 }
 0x529   :  { %7190 = vmatmul.mubr.msk.f32.gmra.mxu1 %vm207_vm2, %v2884_v10 }
 0x52a   :  { %7208 = vmatprep.mubr.msk.f32.mxu1 %vm7615_vm1, %v7614_v12 }
 0x52d   :  { %7209 = vmatmul.mubr.msk.f32.vlgmr.msra.gmra.mxu1 %vm207_vm2, %v8203_v46  ;;  %v3612_v46 = vpop.permute.xlu0 %3611 }
 0x52e   :  { %7217 = vmatpush3.xpose.msk.msra.mxu1 %vm207_vm2, %v3302_v52  ;;  %7218 = vmatprep.mubr.msk.f32.mxu1 %vm7615_vm1, %v7614_v12 }
 0x52f   :  { %7226 = vmatprep.subr.mxu1 %v7614_v12 }
 0x531   :  { %7219 = vmatmul.mubr.msk.f32.vlgmr.msra.gmra.mxu1 %vm207_vm2, %v3300_v36 }
 0x532   :  { %7227 = vmatpush3.xpose.msk.msra.mxu1 %vm207_vm2, %v3458_v24  ;;  %7228 = vmatprep.mubr.msk.f32.mxu1 %vm7615_vm1, %v7614_v12 }
 0x533   :  { %7236 = vmatprep.subr.mxu1 %v7614_v12 }
 0x535   :  { %7229 = vmatmul.mubr.msk.f32.vlgmr.msra.gmra.mxu1 %vm207_vm2, %v3456_v25 }
 0x536   :  { %7237 = vmatpush3.xpose.msk.msra.mxu1 %vm207_vm2, %v3614_v27  ;;  %7238 = vmatprep.mubr.msk.f32.mxu1 %vm7615_vm1, %v7614_v12 }
 0x537   :  { %7246 = vmatprep.subr.mxu1 %v7614_v12 }
 0x539   :  { %7239 = vmatmul.mubr.msk.f32.vlgmr.msra.gmra.mxu1 %vm207_vm2, %v3612_v46 }
 0x53a   :  { %7247 = vmatpush3.msra.mxu1 %v3872_v29  ;;  %7248 = vmatprep.mubr.msk.f32.mxu1 %vm7615_vm1, %v7614_v12 }
 0x53b   :  { %7256 = vmatprep.subr.mxu1 %v7614_v12 }
 0x55e   :  { %v8283_v30 = vpop.f32.mrf.mxu0 }
 0x560   :  { %v8285_v33 = vpop.f32.mrf.mxu0 }
 0x566   :  { %v8287_v28 = vpop.f32.mrf.mxu0 }
 0x568   :  { %v8289_v38 = vpop.f32.mrf.mxu0 }
 0x56e   :  { %v8291_v40 = vpop.f32.mrf.mxu0 }
 0x570   :  { %v3124_v56 = vpop.f32.mrf.mxu0 }
 0x5c4   :  { %v7205_v32 = vpop.f32.mrf.mxu0 }
 0x5c6   :  { %v3134_v41 = vpop.f32.mrf.mxu0 }
 0x5c8   :  { %v3295_v39 = vpop.f32.mrf.mxu0 }
 0x5c9   :  { %v3770_v9 = vsel %vm207_vm2, %v3295_v39, -inf }
 0x5ca   :  { %3771 = vmax.xlane.f32.xlu1 %v3770_v9  ;;  %v7215_v11 = vpop.f32.mrf.mxu0 }
 0x5cc   :  { %v3451_v23 = vpop.f32.mrf.mxu0 }
 0x5cd   :  { %v3776_v58 = vsel %vm207_vm2, %v3451_v23, -inf }
 0x5ce   :  { %3777 = vmax.xlane.f32.xlu0 %v3776_v58  ;;  %v7225_v42 = vpop.f32.mrf.mxu0 }
 0x5d0   :  { %v3607_v43 = vpop.f32.mrf.mxu0 }
 0x5d1   :  { %v3782_v44 = vsel %vm207_vm2, %v3607_v43, -inf }
 0x5d2   :  { %3783 = vmax.xlane.f32.xlu0 %v3782_v44  ;;  %v7235_v60 = vpop.f32.mrf.mxu0 }
 0x5d4   :  { %v3763_v0 = vpop.f32.mrf.mxu0 }
 0x5d5   :  { %v3788_v47 = vsel %vm207_vm2, %v3763_v0, -inf }
 0x5d6   :  { %3789 = vmax.xlane.f32.xlu0 %v3788_v47  ;;  %v7245_v48 = vpop.f32.mrf.mxu0 }
 0x5d9   :  { %v8297_v49 = vpop.f32.mrf.mxu1 }
 0x5db   :  { %4023 = vrot.lane.b32.xlu1 %v7782_v16, %s7623_s21  ;;  %v8301_v50 = vpop.f32.mrf.mxu1 }
 0x5df   :  { %4099 = vrot.lane.b32.xlu1 %v7780_v15, %s7623_s21 }
 0x5e1   :  { %v8305_v52 = vpop.f32.mrf.mxu1 }
 0x5e3   :  { %4251 = vrot.lane.b32.xlu1 %v7788_v17, %s7623_s21  ;;  %v8309_v62 = vpop.f32.mrf.mxu1 }
 0x5e5   :  { %v8311_v54 = vpop.f32.mrf.mxu1 }
 0x5e7   :  { %v2995_v51 = vpop.f32.mrf.mxu1 }
 0x5e8   :  { %v8313_v53 = vadd.f32 %v3124_v56, %v2995_v51 }
 0x5e9   :  { %v7191_v2 = vpop.f32.mrf.mxu1 }
 0x5ea   :  { %v8315_v55 = vadd.f32 %v7205_v32, %v7191_v2 }
 0x5eb   :  { %v3005_v22 = vpop.f32.mrf.mxu1 }
 0x5ec   :  { %v8317_v26 = vadd.f32 %v3134_v41, %v3005_v22 }
 0x5ed   :  { %v3217_v37 = vpop.f32.mrf.mxu1 }
 0x5ee   :  { %v3767_v31 = vsel %vm207_vm2, %v3217_v37, -inf }
 0x5ef   :  { %v7210_v35 = vpop.f32.mrf.mxu1  ;;  %3768 = vmax.xlane.f32.xlu0 %v3767_v31 }
 0x5f1   :  { %v3373_v57 = vpop.f32.mrf.mxu1 }
 0x5f2   :  { %v3773_v36 = vsel %vm207_vm2, %v3373_v57, -inf }
 0x5f3   :  { %v7220_v59 = vpop.f32.mrf.mxu1  ;;  %3774 = vmax.xlane.f32.xlu0 %v3773_v36 }
 0x5f5   :  { %v8321_v61 = vpop.f32.mrf.mxu1 }
 0x5f6   :  { %v3779_v3 = vsel %vm207_vm2, %v8321_v61, -inf }
 0x5f7   :  { %v7230_v45 = vpop.f32.mrf.mxu1 }
 0x5f9   :  { %v8323_v63 = vpop.f32.mrf.mxu1 }
 0x5fa   :  { %v3785_v5 = vsel %vm207_vm2, %v8323_v63, -inf }
 0x5fb   :  { %v7240_v1 = vpop.f32.mrf.mxu1 }
 0x607   :  { %3780 = vmax.xlane.f32.xlu1 %v3779_v3 }
 0x609   :  { %3947 = vrot.lane.b32.xlu0 %v7774_v13, %s7623_s21 }
 0x60b   :  { %3786 = vmax.xlane.f32.xlu1 %v3785_v5 }
 0x60d   :  { %4175 = vrot.lane.b32.xlu0 %v7790_v18, %s7623_s21 }
 0x611   :  { %4327 = vrot.lane.b32.xlu0 %v7798_v20, %s7623_s21 }
 0x61c   :  { %4403 = vrot.lane.b32.xlu1 %v7796_v19, %s7623_s21 }
 0x653   :  { %v3772_v6 = vpop.xlane.xlu1 %3771 }
 0x654   :  { %v3792_v34 = vsub.f32 %v3295_v39, %v3772_v6 }
 0x656   :  { %v3801_v7 = vmul.f32 1.442695, %v3792_v34 }
 0x657   :  { %v3778_v8 = vpop.xlane.xlu0 %3777  ;;  %v4024_v44 = vpop.permute.xlu1 %4023 }
 0x658   :  { %7534 = vpow2.f32 %v3801_v7  ;;  %v3794_v24 = vsub.f32 %v3451_v23, %v3778_v8 }
 0x65a   :  { %v3805_v4 = vmul.f32 1.442695, %v3794_v24 }
 0x65b   :  { %v3784_v10 = vpop.xlane.xlu0 %3783  ;;  %v4100_v51 = vpop.permute.xlu1 %4099 }
 0x65c   :  { %7536 = vpow2.f32 %v3805_v4  ;;  %v3796_v21 = vsub.f32 %v3607_v43, %v3784_v10  ;;  %v202_v4 = vld [vmem:[%s8906_s0 + $0x10] sm:$0xff] }
 0x65e   :  { %v3809_v25 = vmul.f32 1.442695, %v3796_v21 }
 0x65f   :  { %v3790_v27 = vpop.xlane.xlu0 %3789  ;;  %v4252_v22 = vpop.permute.xlu1 %4251 }
 0x660   :  { %7538 = vpow2.f32 %v3809_v25  ;;  %v3798_v46 = vsub.f32 %v3763_v0, %v3790_v27 }
 0x662   :  { %v3813_v29 = vmul.f32 1.442695, %v3798_v46 }
 0x664   :  { %7540 = vpow2.f32 %v3813_v29 }
 0x665   :  { %v7535_v56 = vpop.eup %7534 }
 0x666   :  { %v3818_v32 = vsel %vm207_vm2, %v7535_v56, 0.0 }
 0x667   :  { %3819 = vadd.xlane.f32.xlu1 %v3818_v32 }
 0x669   :  { %v7537_v41 = vpop.eup %7536 }
 0x66a   :  { %v3824_v39 = vsel %vm207_vm2, %v7537_v41, 0.0 }
 0x66b   :  { %3825 = vadd.xlane.f32.xlu0 %v3824_v39 }
 0x66d   :  { %v7539_v9 = vpop.eup %7538 }
 0x66e   :  { %v3830_v11 = vsel %vm207_vm2, %v7539_v9, 0.0 }
 0x66f   :  { %3831 = vadd.xlane.f32.xlu0 %v3830_v11 }
 0x671   :  { %v7541_v23 = vpop.eup %7540 }
 0x672   :  { %v3836_v58 = vsel %vm207_vm2, %v7541_v23, 0.0 }
 0x673   :  { %3837 = vadd.xlane.f32.xlu0 %v3836_v58 }
 0x678   :  { %4626 = vrot.lane.b32.xlu1 %v7776_v14, %s7624_s23  ;;  %v3769_v42 = vpop.xlane.xlu0 %3768 }
 0x679   :  { %v3791_v43 = vsub.f32 %v3217_v37, %v3769_v42 }
 0x67b   :  { %v3799_v60 = vmul.f32 1.442695, %v3791_v43 }
 0x67c   :  { %4704 = vrot.lane.b32.xlu1 %v7774_v13, %s7624_s23  ;;  %v3775_v0 = vpop.xlane.xlu0 %3774 }
 0x67d   :  { %7542 = vpow2.f32 %v3799_v60  ;;  %v3793_v47 = vsub.f32 %v3373_v57, %v3775_v0 }
 0x67f   :  { %v3803_v48 = vmul.f32 1.442695, %v3793_v47 }
 0x680   :  { %4702 = vrot.lane.b32.xlu1 %v7774_v13, %s7625_s25  ;;  %v3948_v2 = vpop.permute.xlu0 %3947 }
 0x681   :  { %7544 = vpow2.f32 %v3803_v48  ;;  %7252 = vmatpush3.msra.mxu0 %v3948_v2 }
 0x682   :  { %7254 = vmatmul.mubr.msk.f32.vlgmr.msra.gmra.mxu0 %vm207_vm2, %v7535_v56  ;;  %7261 = vmatprep.subr.mxu0 %v7614_v12 }
 0x683   :  { %7262 = vmatpush3.msra.mxu0 %v4100_v51  ;;  %7263 = vmatprep.mubr.msk.f32.mxu0 %vm7615_vm1, %v7614_v12 }
 0x684   :  { %4780 = vrot.lane.b32.xlu1 %v7782_v16, %s7625_s25  ;;  %7271 = vmatprep.subr.mxu0 %v7614_v12  ;;  %v4176_v35 = vpop.permute.xlu0 %4175 }
 0x686   :  { %7264 = vmatmul.mubr.msk.f32.vlgmr.msra.gmra.mxu0 %vm207_vm2, %v7537_v41 }
 0x687   :  { %7272 = vmatpush3.msra.mxu0 %v4252_v22  ;;  %7273 = vmatprep.mubr.msk.f32.mxu0 %vm7615_vm1, %v7614_v12 }
 0x688   :  { %4858 = vrot.lane.b32.xlu1 %v7780_v15, %s7625_s25  ;;  %7281 = vmatprep.subr.mxu0 %v7614_v12 }
 0x689   :  { %4624 = vrot.lane.b32.xlu0 %v7776_v14, %s7625_s25 }
 0x68a   :  { %v7543_v37 = vpop.eup %7542  ;;  %7274 = vmatmul.mubr.msk.f32.vlgmr.msra.gmra.mxu0 %vm207_vm2, %v7539_v9 }
 0x68b   :  { %7249 = vmatmul.mubr.msk.f32.vlgmr.msra.gmra.mxu1 %vm207_vm2, %v7543_v37  ;;  %7283 = vmatprep.mubr.msk.f32.mxu0 %vm7615_vm1, %v7614_v12  ;;  %v3815_v34 = vsel %vm207_vm2, %v7543_v37, 0.0 }
 0x68c   :  { %5016 = vrot.lane.b32.xlu1 %v7788_v17, %s7624_s23  ;;  %7257 = vmatpush3.msra.mxu1 %v4024_v44 }
 0x68d   :  { %7258 = vmatprep.mubr.msk.f32.mxu1 %vm7615_vm1, %v7614_v12  ;;  %7266 = vmatprep.subr.mxu1 %v7614_v12 }
 0x68e   :  { %v7545_v31 = vpop.eup %7544 }
 0x68f   :  { %7259 = vmatmul.mubr.msk.f32.vlgmr.msra.gmra.mxu1 %vm207_vm2, %v7545_v31  ;;  %v3821_v7 = vsel %vm207_vm2, %v7545_v31, 0.0 }
 0x690   :  { %v3781_v57 = vpop.xlane.xlu1 %3780  ;;  %7267 = vmatpush3.msra.mxu1 %v4176_v35  ;;  %7268 = vmatprep.mubr.msk.f32.mxu1 %vm7615_vm1, %v7614_v12 }
 0x691   :  { %v3795_v36 = vsub.f32 %v8321_v61, %v3781_v57  ;;  %7276 = vmatprep.subr.mxu1 %v7614_v12  ;;  %v4328_v61 = vpop.permute.xlu0 %4327 }
 0x693   :  { %v3807_v59 = vmul.f32 1.442695, %v3795_v36 }
 0x694   :  { %v3787_v45 = vpop.xlane.xlu1 %3786 }
 0x695   :  { %7546 = vpow2.f32 %v3807_v59  ;;  %v3797_v1 = vsub.f32 %v8323_v63, %v3787_v45 }
 0x697   :  { %v3811_v3 = vmul.f32 1.442695, %v3797_v1 }
 0x698   :  { %v4404_v5 = vpop.permute.xlu1 %4403 }
 0x699   :  { %7548 = vpow2.f32 %v3811_v3  ;;  %7282 = vmatpush3.msra.mxu0 %v4404_v5 }
 0x69a   :  { %7284 = vmatmul.mubr.msk.f32.vlgmr.msra.gmra.mxu0 %vm207_vm2, %v7541_v23  ;;  %7300 = vmatprep.subr.mxu0 %v7614_v12 }
 0x69b   :  { %7302 = vmatprep.mubr.msk.f32.mxu0 %vm7615_vm1, %v7614_v12 }
 0x6a2   :  { %v7547_v6 = vpop.eup %7546 }
 0x6a3   :  { %7269 = vmatmul.mubr.msk.f32.vlgmr.msra.gmra.mxu1 %vm207_vm2, %v7547_v6  ;;  %v3827_v8 = vsel %vm207_vm2, %v7547_v6, 0.0 }
 0x6a4   :  { %7277 = vmatpush3.msra.mxu1 %v4328_v61  ;;  %7278 = vmatprep.mubr.msk.f32.mxu1 %vm7615_vm1, %v7614_v12 }
 0x6a5   :  { %7286 = vmatprep.subr.mxu1 %v202_v4 }
 0x6a6   :  { %v7549_v63 = vpop.eup %7548 }
 0x6a7   :  { %7279 = vmatmul.mubr.msk.f32.vlgmr.msra.gmra.mxu1 %vm207_vm2, %v7549_v63  ;;  %v3833_v24 = vsel %vm207_vm2, %v7549_v63, 0.0 }
 0x6a8   :  { %3816 = vadd.xlane.f32.xlu0 %v3815_v34  ;;  %7287 = vmatpush3.msra.mxu1 %v202_v4 }
 0x6a9   :  { %7320 = vmatprep.subr.mxu1 %v7614_v12 }
 0x6ac   :  { %3822 = vadd.xlane.f32.xlu0 %v3821_v7 }
 0x6b0   :  { %3828 = vadd.xlane.f32.xlu1 %v3827_v8 }
 0x6b4   :  { %3834 = vadd.xlane.f32.xlu1 %v3833_v24 }
 0x6c2   :  { %4782 = vrot.lane.b32.xlu0 %v7782_v16, %s7624_s23 }
 0x6c5   :  { %5014 = vrot.lane.b32.xlu1 %v7788_v17, %s7625_s25 }
 0x6c6   :  { %4860 = vrot.lane.b32.xlu0 %v7780_v15, %s7624_s23 }
 0x6c9   :  { %5172 = vrot.lane.b32.xlu1 %v7796_v19, %s7624_s23 }
 0x6ca   :  { %4938 = vrot.lane.b32.xlu0 %v7790_v18, %s7624_s23 }
 0x6cd   :  { %5170 = vrot.lane.b32.xlu1 %v7796_v19, %s7625_s25 }
 0x6ce   :  { %4936 = vrot.lane.b32.xlu0 %v7790_v18, %s7625_s25 }
 0x6d1   :  { %5352 = vrot.lane.b32.xlu1 %v7776_v14, %s7626_s28 }
 0x6d2   :  { %5094 = vrot.lane.b32.xlu0 %v7798_v20, %s7624_s23 }
 0x6d5   :  { %5504 = vrot.lane.b32.xlu1 %v7782_v16, %s7626_s28 }
 0x6d6   :  { %5092 = vrot.lane.b32.xlu0 %v7798_v20, %s7625_s25 }
 0x6d9   :  { %5580 = vrot.lane.b32.xlu1 %v7780_v15, %s7626_s28 }
 0x6da   :  { %5428 = vrot.lane.b32.xlu0 %v7774_v13, %s7626_s28 }
 0x6dd   :  { %5732 = vrot.lane.b32.xlu1 %v7788_v17, %s7626_s28 }
 0x6de   :  { %5656 = vrot.lane.b32.xlu0 %v7790_v18, %s7626_s28 }
 0x6f0   :  { %v3820_v14 = vpop.xlane.xlu1 %3819 }
 0x6f4   :  { %v4627_v10 = vpop.permute.xlu1 %4626  ;;  %v3826_v21 = vpop.xlane.xlu0 %3825 }
 0x6f5   :  { %7301 = vmatpush3.xpose.msk.msra.mxu0 %vm207_vm2, %v4627_v10 }
 0x6f6   :  { %7305 = vmatprep.subr.mxu0 %v7614_v12 }
 0x6f8   :  { %v8425_v16 = vpop.xlane.xlu0 %3831  ;;  %v4705_v15 = vpop.permute.xlu1 %4704 }
 0x6fc   :  { %v8427_v25 = vpop.xlane.xlu0 %3837  ;;  %v4703_v13 = vpop.permute.xlu1 %4702 }
 0x700   :  { %v4625_v27 = vpop.permute.xlu0 %4624  ;;  %v4781_v17 = vpop.permute.xlu1 %4780 }
 0x701   :  { %7303 = vmatmul.mubr.msk.f32.vlgmr.msra.gmra.mxu0 %vm207_vm2, %v4625_v27 }
 0x702   :  { %7306 = vmatpush3.xpose.msk.msra.mxu0 %vm207_vm2, %v4705_v15  ;;  %7307 = vmatprep.mubr.msk.f32.mxu0 %vm7615_vm1, %v7614_v12 }
 0x703   :  { %7310 = vmatprep.subr.mxu0 %v7614_v12 }
 0x704   :  { %v4859_v18 = vpop.permute.xlu1 %4858 }
 0x705   :  { %7308 = vmatmul.mubr.msk.f32.vlgmr.msra.gmra.mxu0 %vm207_vm2, %v4703_v13 }
 0x706   :  { %7312 = vmatprep.mubr.msk.f32.mxu0 %vm7615_vm1, %v7614_v12 }
 0x708   :  { %v5017_v29 = vpop.permute.xlu1 %5016 }
 0x731   :  { %v3817_v46 = vpop.xlane.xlu0 %3816 }
 0x732   :  { %7550 = vrcp.f32 %v3817_v46 }
 0x733   :  { %7552 = vrcp.f32 %v3820_v14 }
 0x735   :  { %v3823_v56 = vpop.xlane.xlu0 %3822 }
 0x736   :  { %7554 = vrcp.f32 %v3823_v56 }
 0x737   :  { %7556 = vrcp.f32 %v3826_v21 }
 0x739   :  { %v8437_v32 = vpop.xlane.xlu1 %3828  ;;  %v4783_v41 = vpop.permute.xlu0 %4782 }
 0x73a   :  { %7311 = vmatpush3.xpose.msk.msra.mxu0 %vm207_vm2, %v4783_v41  ;;  %7558 = vrcp.f32 %v8437_v32 }
 0x73b   :  { %7315 = vmatprep.subr.mxu0 %v7614_v12  ;;  %7560 = vrcp.f32 %v8425_v16 }
 0x73d   :  { %v8441_v39 = vpop.xlane.xlu1 %3834  ;;  %7313 = vmatmul.mubr.msk.f32.vlgmr.msra.gmra.mxu0 %vm207_vm2, %v4781_v17  ;;  %v4861_v9 = vpop.permute.xlu0 %4860 }
 0x73e   :  { %7316 = vmatpush3.xpose.msk.msra.mxu0 %vm207_vm2, %v4861_v9  ;;  %7317 = vmatprep.mubr.msk.f32.mxu0 %vm7615_vm1, %v7614_v12  ;;  %7562 = vrcp.f32 %v8441_v39 }
 0x73f   :  { %v7551_v11 = vpop.eup %7550  ;;  %7325 = vmatprep.subr.mxu0 %v7614_v12  ;;  %7564 = vrcp.f32 %v8427_v25 }
 0x740   :  { %v7553_v23 = vpop.eup %7552  ;;  %v3847_v43 = vmul.f32 %v7551_v11, %v3817_v46 }
 0x741   :  { %v5015_v58 = vpop.permute.xlu1 %5014  ;;  %7318 = vmatmul.mubr.msk.f32.vlgmr.msra.gmra.mxu0 %vm207_vm2, %v4859_v18  ;;  %v4939_v42 = vpop.permute.xlu0 %4938  ;;  %v3848_v60 = vmul.f32 %v7553_v23, %v3820_v14 }
 0x742   :  { %7326 = vmatpush3.xpose.msk.msra.mxu0 %vm207_vm2, %v5017_v29  ;;  %v4019_v44 = vpop.f32.mrf.mxu0  ;;  %7327 = vmatprep.mubr.msk.f32.mxu0 %vm7615_vm1, %v7614_v12  ;;  %v3855_v22 = vsub.f32 2.0, %v3847_v43 }
 0x743   :  { %7335 = vmatprep.subr.mxu0 %v7614_v12  ;;  %v7555_v0 = vpop.eup %7554  ;;  %v3856_v31 = vsub.f32 2.0, %v3848_v60 }
 0x744   :  { %v7255_v47 = vpop.f32.mrf.mxu0  ;;  %v7557_v48 = vpop.eup %7556  ;;  %v3849_v35 = vmul.f32 %v7555_v0, %v3823_v56  ;;  %v3863_v3 = vmul.f32 %v7551_v11, %v3855_v22 }
 0x745   :  { %v5173_v51 = vpop.permute.xlu1 %5172  ;;  %7328 = vmatmul.mubr.msk.f32.vlgmr.msra.gmra.mxu0 %vm207_vm2, %v5015_v58  ;;  %v8454_v2 = vpop.permute.xlu0 %4936  ;;  %v3850_v57 = vmul.f32 %v7557_v48, %v3826_v21  ;;  %v3864_v6 = vmul.f32 %v7553_v23, %v3856_v31 }
 0x746   :  { %7336 = vmatpush3.xpose.msk.msra.mxu0 %vm207_vm2, %v5173_v51  ;;  %v4171_v37 = vpop.f32.mrf.mxu0  ;;  %7337 = vmatprep.mubr.msk.f32.mxu0 %vm7615_vm1, %v7614_v12  ;;  %v3857_v5 = vsub.f32 2.0, %v3849_v35 }
 0x747   :  { %7345 = vmatprep.subr.mxu0 %v7614_v12  ;;  %v3858_v63 = vsub.f32 2.0, %v3850_v57  ;;  %v4480_v8 = vmul.f32 %v4019_v44, %v3864_v6  ;;  %v7559_v18 = vpop.eup %7558 }
 0x748   :  { %v7265_v36 = vpop.f32.mrf.mxu0  ;;  %v3865_v14 = vmul.f32 %v7555_v0, %v3857_v5  ;;  %v7561_v46 = vpop.eup %7560  ;;  %v3851_v29 = vmul.f32 %v7559_v18, %v8437_v32 }
 0x749   :  { %v5171_v59 = vpop.permute.xlu1 %5170  ;;  %v8460_v45 = vpop.permute.xlu0 %5094  ;;  %v3866_v10 = vmul.f32 %v7557_v48, %v3858_v63  ;;  %v3852_v9 = vmul.f32 %v7561_v46, %v8425_v16 }
 0x74a   :  { %7338 = vmatmul.mubr.msk.f32.vlgmr.msra.gmra.mxu0 %vm207_vm2, %v5171_v59  ;;  %v4323_v1 = vpop.f32.mrf.mxu0  ;;  %v3859_v58 = vsub.f32 2.0, %v3851_v29 }
 0x74b   :  { %v3943_v61 = vpop.f32.mrf.mxu1  ;;  %7347 = vmatprep.mubr.msk.f32.mxu0 %vm7615_vm1, %v7614_v12  ;;  %v4482_v13 = vmul.f32 %v4171_v37, %v3866_v10  ;;  %v7563_v41 = vpop.eup %7562  ;;  %v3860_v43 = vsub.f32 2.0, %v3852_v9  ;;  %v3115_v9 = vadd.f32 %v8289_v38, %v8309_v62 }
 0x74c   :  { %v4479_v34 = vmul.f32 %v3943_v61, %v3863_v3  ;;  %v7275_v7 = vpop.f32.mrf.mxu0  ;;  %v7565_v11 = vpop.eup %7564  ;;  %v3867_v0 = vmul.f32 %v7559_v18, %v3859_v58 }
 0x74d   :  { %v5093_v24 = vpop.permute.xlu0 %5092  ;;  %v7250_v4 = vpop.f32.mrf.mxu1  ;;  %v3854_v44 = vmul.f32 %v7565_v11, %v8427_v25  ;;  %v3868_v48 = vmul.f32 %v7561_v46, %v3860_v43 }
 0x74e   :  { %7288 = vmatprep.mubr.msk.f32.mxu1 %vm207_vm2, %v4479_v34  ;;  %v5353_v25 = vpop.permute.xlu1 %5352 }
 0x74f   :  { %7289 = vmatmul.mubr.msk.f32.vlgmr.msra.gmra.mxu1 %vm207_vm2, %v4480_v8  ;;  %v4095_v21 = vpop.f32.mrf.mxu1  ;;  %v3862_v47 = vsub.f32 2.0, %v3854_v44  ;;  %v4484_v37 = vmul.f32 %v4323_v1, %v3868_v48 }
 0x750   :  { %7321 = vmatpush3.xpose.msk.msra.mxu1 %vm207_vm2, %v4939_v42  ;;  %v4481_v15 = vmul.f32 %v4095_v21, %v3865_v14  ;;  %v3853_v42 = vmul.f32 %v7563_v41, %v8441_v39 }
 0x751   :  { %v5429_v27 = vpop.permute.xlu0 %5428  ;;  %7330 = vmatprep.subr.mxu1 %v7614_v12  ;;  %v7260_v17 = vpop.f32.mrf.mxu1  ;;  %v3870_v16 = vmul.f32 %v7565_v11, %v3862_v47 }
 0x752   :  { %7346 = vmatpush3.msra.mxu0 %v5429_v27  ;;  %7291 = vmatprep.mubr.msk.f32.mxu1 %vm207_vm2, %v4481_v15  ;;  %v3861_v60 = vsub.f32 2.0, %v3853_v42  ;;  %v3110_v27 = vadd.f32 %v8283_v30, %v8297_v49  ;;  %v3105_v17 = vadd.f32 %v8285_v33, %v8301_v50  ;;  %v3130_v33 = vadd.f32 %v8291_v40, %v8311_v54 }
 0x753   :  { %7355 = vmatprep.subr.mxu0 %v7614_v12  ;;  %7292 = vmatmul.mubr.msk.f32.gmra.mxu1 %vm207_vm2, %v4482_v13 }
 0x754   :  { %v3869_v31 = vmul.f32 %v7563_v41, %v3861_v60 }
 0x75a   :  { %v4475_v56 = vpop.f32.mrf.mxu0 }
 0x75b   :  { %v4486_v39 = vmul.f32 %v4475_v56, %v3870_v16  ;;  %v3120_v56 = vadd.f32 %v8287_v28, %v8305_v52 }
 0x75c   :  { %v7285_v23 = vpop.f32.mrf.mxu0 }
 0x763   :  { %v4247_v51 = vpop.f32.mrf.mxu1 }
 0x764   :  { %v4483_v22 = vmul.f32 %v4247_v51, %v3867_v0 }
 0x765   :  { %v7270_v32 = vpop.f32.mrf.mxu1 }
 0x766   :  { %7294 = vmatprep.mubr.msk.f32.mxu1 %vm207_vm2, %v4483_v22 }
 0x767   :  { %v4399_v35 = vpop.f32.mrf.mxu1  ;;  %7295 = vmatmul.mubr.msk.f32.gmra.mxu1 %vm207_vm2, %v4484_v37 }
 0x768   :  { %v4485_v57 = vmul.f32 %v4399_v35, %v3869_v31 }
 0x769   :  { %v7280_v36 = vpop.f32.mrf.mxu1 }
 0x76a   :  { %7297 = vmatprep.mubr.msk.f32.mxu1 %vm207_vm2, %v4485_v57 }
 0x76b   :  { %7298 = vmatmul.mubr.msk.f32.gmra.mxu1 %vm207_vm2, %v4486_v39 }
 0x76c   :  { %7322 = vmatprep.mubr.msk.f32.mxu1 %vm7615_vm1, %v7614_v12 }
 0x76f   :  { %7323 = vmatmul.mubr.msk.f32.vlgmr.msra.gmra.mxu1 %vm207_vm2, %v8454_v2 }
 0x770   :  { %7331 = vmatpush3.xpose.msk.msra.mxu1 %vm207_vm2, %v8460_v45  ;;  %7332 = vmatprep.mubr.msk.f32.mxu1 %vm7615_vm1, %v7614_v12 }
 0x771   :  { %7340 = vmatprep.subr.mxu1 %v7614_v12 }
 0x773   :  { %7333 = vmatmul.mubr.msk.f32.vlgmr.msra.gmra.mxu1 %vm207_vm2, %v5093_v24 }
 0x774   :  { %7341 = vmatpush3.msra.mxu1 %v5353_v25  ;;  %7342 = vmatprep.mubr.msk.f32.mxu1 %vm7615_vm1, %v7614_v12 }
 0x775   :  { %7350 = vmatprep.subr.mxu1 %v7614_v12 }
 0x7c1   :  { %v4698_v59 = vpop.f32.mrf.mxu0 }
 0x7c2   :  { %v5248_v2 = vsel %vm207_vm2, %v4698_v59, -inf }
 0x7c3   :  { %5249 = vmax.xlane.f32.xlu0 %v5248_v2  ;;  %v7304_v1 = vpop.f32.mrf.mxu0 }
 0x7c5   :  { %v4776_v45 = vpop.f32.mrf.mxu0 }
 0x7c6   :  { %v5251_v3 = vsel %vm207_vm2, %v4776_v45, -inf }
 0x7c7   :  { %5252 = vmax.xlane.f32.xlu1 %v5251_v3  ;;  %v7309_v5 = vpop.f32.mrf.mxu0 }
 0x7fd   :  { %v8499_v6 = vpop.f32.mrf.mxu0 }
 0x7fe   :  { %v5254_v61 = vsel %vm207_vm2, %v8499_v6, -inf }
 0x7ff   :  { %5255 = vmax.xlane.f32.xlu0 %v5254_v61  ;;  %v7314_v63 = vpop.f32.mrf.mxu0 }
 0x801   :  { %v8503_v34 = vpop.f32.mrf.mxu0 }
 0x802   :  { %v5257_v7 = vsel %vm207_vm2, %v8503_v34, -inf }
 0x803   :  { %5258 = vmax.xlane.f32.xlu0 %v5257_v7  ;;  %v7319_v8 = vpop.f32.mrf.mxu0 }
 0x805   :  { %v8507_v24 = vpop.f32.mrf.mxu0 }
 0x806   :  { %v5263_v4 = vsel %vm207_vm2, %v8507_v24, -inf }
 0x807   :  { %5264 = vmax.xlane.f32.xlu0 %v5263_v4  ;;  %v7329_v14 = vpop.f32.mrf.mxu0 }
 0x80a   :  { %v8511_v10 = vpop.f32.mrf.mxu0 }
 0x80b   :  { %v5269_v21 = vsel %vm207_vm2, %v8511_v10, -inf }
 0x80c   :  { %5270 = vmax.xlane.f32.xlu0 %v5269_v21  ;;  %v7339_v15 = vpop.f32.mrf.mxu0 }
 0x80f   :  { %v7290_v13 = vpop.f32.mrf.mxu1 }
 0x810   :  { %v8519_v18 = vadd.f32 %v7290_v13, %v3110_v27 }
 0x811   :  { %v4577_v46 = vpop.f32.mrf.mxu1 }
 0x812   :  { %v8521_v29 = vadd.f32 %v4577_v46, %v3105_v17 }
 0x813   :  { %v7293_v41 = vpop.f32.mrf.mxu1 }
 0x814   :  { %v8527_v11 = vadd.f32 %v7293_v41, %v3120_v56 }
 0x815   :  { %v4587_v23 = vpop.f32.mrf.mxu1 }
 0x816   :  { %v8529_v30 = vadd.f32 %v4587_v23, %v3115_v9  ;;  %v203_v9 = vld [vmem:[%s8906_s0 + $0x18] sm:$0xff]  ;;  %s7627_s0 = smov 32  }
 0x822   :  { %5808 = vrot.lane.b32.xlu0 %v7798_v20, %s7626_s28 }
 0x827   :  { %v7296_v49 = vpop.f32.mrf.mxu1 }
 0x828   :  { %v8535_v50 = vadd.f32 %v7296_v49, %v3130_v33 }
 0x829   :  { %v4597_v58 = vpop.f32.mrf.mxu1 }
 0x82a   :  { %v8538_v28 = vadd.f32 %v4597_v58, %v8313_v53 }
 0x82b   :  { %v7299_v52 = vpop.f32.mrf.mxu1 }
 0x82c   :  { %v8541_v38 = vadd.f32 %v7299_v52, %v8315_v55  ;;  %v5505_v55 = vpop.permute.xlu1 %5504  ;;  %v8604_v52 = vld [vmem:[%s8905_s20 + $0x38] sm:$0xff] }
 0x82d   :  { %v4607_v62 = vpop.f32.mrf.mxu1 }
 0x82e   :  { %v8544_v42 = vadd.f32 %v4607_v62, %v8317_v26  ;;  %v5657_v26 = vpop.permute.xlu0 %5656  ;;  %v8610_v62 = vld [vmem:[%s8905_s20 + $0x30] sm:$0xff] }
 0x82f   :  { %v8546_v43 = vpop.f32.mrf.mxu1 }
 0x830   :  { %v5260_v20 = vsel %vm207_vm2, %v8546_v43, -inf  ;;  %v5581_v60 = vpop.permute.xlu1 %5580 }
 0x831   :  { %v7324_v40 = vpop.f32.mrf.mxu1  ;;  %5261 = vmax.xlane.f32.xlu1 %v5260_v20  ;;  %v8622_v20 = vld [vmem:[%s8905_s20 + $0x18] sm:$0xff] }
 0x832   :  { %v8628_v40 = vld [vmem:[%s8905_s20 + $0x20] sm:$0xff] }
 0x833   :  { %v8550_v54 = vpop.f32.mrf.mxu1 }
 0x834   :  { %v5266_v53 = vsel %vm207_vm2, %v8550_v54, -inf  ;;  %v5733_v0 = vpop.permute.xlu1 %5732 }
 0x835   :  { %v7334_v44 = vpop.f32.mrf.mxu1  ;;  %5267 = vmax.xlane.f32.xlu1 %v5266_v53  ;;  %v8640_v53 = vld [vmem:[%s8905_s20 + $0x10] sm:$0xff] }
 0x836   :  { %v8646_v44 = vld [vmem:[%s8905_s20] sm:$0xff] }
 0x846   :  { %5884 = vrot.lane.b32.xlu1 %v7796_v19, %s7626_s28 }
 0x84c   :  { %v5250_v47 = vpop.xlane.xlu0 %5249 }
 0x84d   :  { %v5272_v48 = vsub.f32 %v4698_v59, %v5250_v47 }
 0x84f   :  { %v5280_v51 = vmul.f32 1.442695, %v5272_v48 }
 0x850   :  { %v5253_v22 = vpop.xlane.xlu1 %5252 }
 0x851   :  { %7566 = vpow2.f32 %v5280_v51  ;;  %v5273_v37 = vsub.f32 %v4776_v45, %v5253_v22 }
 0x853   :  { %v5282_v32 = vmul.f32 1.442695, %v5273_v37 }
 0x855   :  { %7568 = vpow2.f32 %v5282_v32 }
 0x85e   :  { %v7567_v31 = vpop.eup %7566 }
 0x85f   :  { %7343 = vmatmul.mubr.msk.f32.vlgmr.msra.gmra.mxu1 %vm207_vm2, %v7567_v31  ;;  %v5296_v16 = vsel %vm207_vm2, %v7567_v31, 0.0 }
 0x860   :  { %7351 = vmatpush3.msra.mxu1 %v5505_v55  ;;  %5297 = vadd.xlane.f32.xlu0 %v5296_v16 }
 0x861   :  { %7352 = vmatprep.mubr.msk.f32.mxu1 %vm7615_vm1, %v7614_v12  ;;  %7360 = vmatprep.subr.mxu1 %v7614_v12 }
 0x862   :  { %v7569_v19 = vpop.eup %7568 }
 0x863   :  { %7348 = vmatmul.mubr.msk.f32.vlgmr.msra.gmra.mxu0 %vm207_vm2, %v7569_v19  ;;  %v5299_v35 = vsel %vm207_vm2, %v7569_v19, 0.0 }
 0x864   :  { %7356 = vmatpush3.msra.mxu0 %v5581_v60  ;;  %7357 = vmatprep.mubr.msk.f32.mxu0 %vm7615_vm1, %v7614_v12 }
 0x865   :  { %7365 = vmatprep.subr.mxu0 %v7614_v12 }
 0x86a   :  { %5300 = vadd.xlane.f32.xlu1 %v5299_v35 }
 0x888   :  { %v5256_v57 = vpop.xlane.xlu0 %5255 }
 0x889   :  { %v5274_v39 = vsub.f32 %v8499_v6, %v5256_v57 }
 0x88b   :  { %v5284_v36 = vmul.f32 1.442695, %v5274_v39 }
 0x88c   :  { %v5259_v25 = vpop.xlane.xlu0 %5258 }
 0x88d   :  { %7570 = vpow2.f32 %v5284_v36  ;;  %v5275_v59 = vsub.f32 %v8503_v34, %v5259_v25 }
 0x88f   :  { %v5286_v2 = vmul.f32 1.442695, %v5275_v59 }
 0x890   :  { %v5265_v1 = vpop.xlane.xlu0 %5264 }
 0x891   :  { %7572 = vpow2.f32 %v5286_v2  ;;  %v5277_v45 = vsub.f32 %v8507_v24, %v5265_v1 }
 0x893   :  { %v5290_v3 = vmul.f32 1.442695, %v5277_v45 }
 0x895   :  { %7574 = vpow2.f32 %v5290_v3  ;;  %v5271_v5 = vpop.xlane.xlu0 %5270 }
 0x896   :  { %v5279_v61 = vsub.f32 %v8511_v10, %v5271_v5 }
 0x898   :  { %v5294_v63 = vmul.f32 1.442695, %v5279_v61 }
 0x899   :  { %v5809_v23 = vpop.permute.xlu0 %5808 }
 0x89a   :  { %v7571_v7 = vpop.eup %7570  ;;  %7576 = vpow2.f32 %v5294_v63 }
 0x89b   :  { %7353 = vmatmul.mubr.msk.f32.vlgmr.msra.gmra.mxu1 %vm207_vm2, %v7571_v7  ;;  %v5302_v6 = vsel %vm207_vm2, %v7571_v7, 0.0 }
 0x89c   :  { %7361 = vmatpush3.msra.mxu1 %v5657_v26  ;;  %5303 = vadd.xlane.f32.xlu0 %v5302_v6 }
 0x89d   :  { %7362 = vmatprep.mubr.msk.f32.mxu1 %vm7615_vm1, %v7614_v12  ;;  %7370 = vmatprep.subr.mxu1 %v7614_v12 }
 0x89e   :  { %v7573_v34 = vpop.eup %7572 }
 0x89f   :  { %7358 = vmatmul.mubr.msk.f32.vlgmr.msra.gmra.mxu0 %vm207_vm2, %v7573_v34  ;;  %v5305_v8 = vsel %vm207_vm2, %v7573_v34, 0.0 }
 0x8a0   :  { %7366 = vmatpush3.msra.mxu0 %v5733_v0  ;;  %5306 = vadd.xlane.f32.xlu0 %v5305_v8 }
 0x8a1   :  { %7367 = vmatprep.mubr.msk.f32.mxu0 %vm7615_vm1, %v7614_v12  ;;  %7375 = vmatprep.subr.mxu0 %v7614_v12 }
 0x8a2   :  { %v7575_v24 = vpop.eup %7574 }
 0x8a3   :  { %7368 = vmatmul.mubr.msk.f32.vlgmr.msra.gmra.mxu0 %vm207_vm2, %v7575_v24  ;;  %v5311_v4 = vsel %vm207_vm2, %v7575_v24, 0.0 }
 0x8a4   :  { %5312 = vadd.xlane.f32.xlu0 %v5311_v4  ;;  %7377 = vmatprep.mubr.msk.f32.mxu0 %vm7615_vm1, %v7614_v12 }
 0x8a7   :  { %v7577_v14 = vpop.eup %7576 }
 0x8a8   :  { %v5317_v10 = vsel %vm207_vm2, %v7577_v14, 0.0 }
 0x8a9   :  { %5318 = vadd.xlane.f32.xlu0 %v5317_v10 }
 0x8ba   :  { %v5262_v21 = vpop.xlane.xlu1 %5261 }
 0x8bb   :  { %v5276_v15 = vsub.f32 %v8546_v43, %v5262_v21  ;;  %v8616_v43 = vld [vmem:[%s8905_s20 + $0x28] sm:$0xff] }
 0x8bd   :  { %v5288_v27 = vmul.f32 1.442695, %v5276_v15 }
 0x8be   :  { %v5268_v13 = vpop.xlane.xlu1 %5267 }
 0x8bf   :  { %7578 = vpow2.f32 %v5288_v27  ;;  %v5278_v17 = vsub.f32 %v8550_v54, %v5268_v13  ;;  %6148 = vrot.lane.b32.xlu0 %v8610_v62, %s7627_s0  ;;  %v8634_v54 = vld [vmem:[%s8905_s20 + $0x8] sm:$0xff] }
 0x8c1   :  { %v5292_v46 = vmul.f32 1.442695, %v5278_v17 }
 0x8c2   :  { %v5885_v56 = vpop.permute.xlu1 %5884 }
 0x8c3   :  { %7580 = vpow2.f32 %v5292_v46  ;;  %7376 = vmatpush3.msra.mxu0 %v5885_v56  ;;  %6142 = vrot.lane.b32.xlu0 %v8622_v20, %s7627_s0 }
 0x8c4   :  { %7378 = vmatmul.mubr.msk.f32.vlgmr.msra.gmra.mxu0 %vm207_vm2, %v7577_v14  ;;  %7394 = vmatprep.subr.mxu0 %v7614_v12 }
 0x8c5   :  { %7410 = vmatprep.mubr.msk.f32.mxu0 %vm7615_vm1, %v7614_v12 }
 0x8c7   :  { %6138 = vrot.lane.b32.xlu0 %v8634_v54, %s7627_s0 }
 0x8cc   :  { %v7579_v41 = vpop.eup %7578 }
 0x8cd   :  { %7363 = vmatmul.mubr.msk.f32.vlgmr.msra.gmra.mxu1 %vm207_vm2, %v7579_v41  ;;  %v5308_v33 = vsel %vm207_vm2, %v7579_v41, 0.0 }
 0x8ce   :  { %7371 = vmatpush3.msra.mxu1 %v5809_v23  ;;  %5309 = vadd.xlane.f32.xlu1 %v5308_v33 }
 0x8cf   :  { %7372 = vmatprep.mubr.msk.f32.mxu1 %vm7615_vm1, %v7614_v12  ;;  %7380 = vmatprep.subr.mxu1 %v203_v9 }
 0x8d0   :  { %v7581_v49 = vpop.eup %7580 }
 0x8d1   :  { %7373 = vmatmul.mubr.msk.f32.vlgmr.msra.gmra.mxu1 %vm207_vm2, %v7581_v49  ;;  %v5314_v58 = vsel %vm207_vm2, %v7581_v49, 0.0 }
 0x8d2   :  { %5315 = vadd.xlane.f32.xlu1 %v5314_v58  ;;  %7381 = vmatpush3.msra.mxu1 %v203_v9 }
 0x8d3   :  { %7413 = vmatprep.subr.mxu1 %v7614_v12 }
 0x8e3   :  { %6150 = vrot.lane.b32.xlu1 %v8604_v52, %s7627_s0 }
 0x8e7   :  { %6146 = vrot.lane.b32.xlu1 %v8616_v43, %s7627_s0 }
 0x8e9   :  { %v5298_v55 = vpop.xlane.xlu0 %5297 }
 0x8ea   :  { %7582 = vrcp.f32 %v5298_v55 }
 0x8eb   :  { %6144 = vrot.lane.b32.xlu1 %v8628_v40, %s7627_s0 }
 0x8ef   :  { %6140 = vrot.lane.b32.xlu1 %v8640_v53, %s7627_s0 }
 0x8f3   :  { %6136 = vrot.lane.b32.xlu1 %v8646_v44, %s7627_s0  ;;  %v5301_v60 = vpop.xlane.xlu1 %5300 }
 0x8f4   :  { %7584 = vrcp.f32 %v5301_v60 }
 0x8f7   :  { %v7583_v26 = vpop.eup %7582 }
 0x8f8   :  { %v5328_v0 = vmul.f32 %v7583_v26, %v5298_v55 }
 0x8fa   :  { %v5336_v48 = vsub.f32 2.0, %v5328_v0 }
 0x8fc   :  { %v5344_v37 = vmul.f32 %v7583_v26, %v5336_v48 }
 0x901   :  { %v7585_v47 = vpop.eup %7584 }
 0x902   :  { %v5329_v51 = vmul.f32 %v7585_v47, %v5301_v60 }
 0x904   :  { %v5337_v22 = vsub.f32 2.0, %v5329_v51 }
 0x906   :  { %v5345_v19 = vmul.f32 %v7585_v47, %v5337_v22 }
 0x91f   :  { %v5424_v32 = vpop.f32.mrf.mxu1 }
 0x920   :  { %v5960_v31 = vmul.f32 %v5424_v32, %v5344_v37 }
 0x921   :  { %v7344_v16 = vpop.f32.mrf.mxu1 }
 0x922   :  { %7382 = vmatprep.mubr.msk.f32.mxu1 %vm207_vm2, %v5960_v31 }
 0x923   :  { %v5500_v35 = vpop.f32.mrf.mxu0 }
 0x924   :  { %v5961_v57 = vmul.f32 %v5500_v35, %v5345_v19 }
 0x925   :  { %v7349_v39 = vpop.f32.mrf.mxu0  ;;  %v5304_v36 = vpop.xlane.xlu0 %5303 }
 0x926   :  { %7383 = vmatmul.mubr.msk.f32.vlgmr.msra.gmra.mxu1 %vm207_vm2, %v5961_v57  ;;  %7586 = vrcp.f32 %v5304_v36 }
 0x929   :  { %v5307_v25 = vpop.xlane.xlu0 %5306 }
 0x92a   :  { %7588 = vrcp.f32 %v5307_v25 }
 0x92d   :  { %v5313_v15 = vpop.xlane.xlu0 %5312 }
 0x932   :  { %v5319_v13 = vpop.xlane.xlu0 %5318 }
 0x933   :  { %v7587_v59 = vpop.eup %7586 }
 0x934   :  { %v5330_v2 = vmul.f32 %v7587_v59, %v5304_v36 }
 0x936   :  { %v5338_v45 = vsub.f32 2.0, %v5330_v2 }
 0x937   :  { %v7589_v1 = vpop.eup %7588 }
 0x938   :  { %v5331_v3 = vmul.f32 %v7589_v1, %v5307_v25  ;;  %v5346_v61 = vmul.f32 %v7587_v59, %v5338_v45  ;;  %v6781_v59 = vld [vmem:[%s8882_s3] ss:$0 sm:$0xff] }
 0x93a   :  { %v5339_v5 = vsub.f32 2.0, %v5331_v3 }
 0x93c   :  { %v5347_v34 = vmul.f32 %v7589_v1, %v5339_v5 }
 0x957   :  { %v5310_v21 = vpop.xlane.xlu1 %5309 }
 0x958   :  { %7590 = vrcp.f32 %v5310_v21 }
 0x959   :  { %7592 = vrcp.f32 %v5313_v15 }
 0x95b   :  { %v5576_v63 = vpop.f32.mrf.mxu1  ;;  %v5316_v27 = vpop.xlane.xlu1 %5315 }
 0x95c   :  { %v5962_v7 = vmul.f32 %v5576_v63, %v5346_v61  ;;  %7594 = vrcp.f32 %v5316_v27 }
 0x95d   :  { %v7354_v6 = vpop.f32.mrf.mxu1  ;;  %7596 = vrcp.f32 %v5319_v13 }
 0x95e   :  { %7385 = vmatprep.mubr.msk.f32.mxu1 %vm207_vm2, %v5962_v7 }
 0x95f   :  { %v5652_v8 = vpop.f32.mrf.mxu0 }
 0x960   :  { %v5963_v24 = vmul.f32 %v5652_v8, %v5347_v34 }
 0x961   :  { %v7359_v4 = vpop.f32.mrf.mxu0 }
 0x962   :  { %7386 = vmatmul.mubr.msk.f32.gmra.mxu1 %vm207_vm2, %v5963_v24 }
 0x963   :  { %v5804_v14 = vpop.f32.mrf.mxu0 }
 0x965   :  { %v7369_v10 = vpop.f32.mrf.mxu0  ;;  %v7591_v17 = vpop.eup %7590 }
 0x966   :  { %v7593_v46 = vpop.eup %7592  ;;  %v5332_v56 = vmul.f32 %v7591_v17, %v5310_v21 }
 0x967   :  { %v5333_v23 = vmul.f32 %v7593_v46, %v5313_v15 }
 0x968   :  { %v5340_v58 = vsub.f32 2.0, %v5332_v56 }
 0x969   :  { %v7595_v9 = vpop.eup %7594  ;;  %v5341_v60 = vsub.f32 2.0, %v5333_v23 }
 0x96a   :  { %v7597_v33 = vpop.eup %7596  ;;  %v5334_v55 = vmul.f32 %v7595_v9, %v5316_v27  ;;  %v5348_v47 = vmul.f32 %v7591_v17, %v5340_v58 }
 0x96b   :  { %v5335_v26 = vmul.f32 %v7597_v33, %v5319_v13  ;;  %v5349_v51 = vmul.f32 %v7593_v46, %v5341_v60 }
 0x96c   :  { %v5342_v0 = vsub.f32 2.0, %v5334_v55 }
 0x96d   :  { %v5343_v48 = vsub.f32 2.0, %v5335_v26  ;;  %v5965_v32 = vmul.f32 %v5804_v14, %v5349_v51  ;;  %v6303_v51 = vld [vmem:[%s8885_s6 + $0x10] sm:$0xff] }
 0x96e   :  { %v5350_v16 = vmul.f32 %v7595_v9, %v5342_v0 }
 0x96f   :  { %v5351_v19 = vmul.f32 %v7597_v33, %v5343_v48  ;;  %v24_v48 = vstv %s8884_s5 }
 0x970   :  { %25 = vst [vmem:[#allocation2] sm:$0x1] %v24_v48 }
 0x984   :  { %v5956_v41 = vpop.f32.mrf.mxu0 }
 0x985   :  { %v5967_v39 = vmul.f32 %v5956_v41, %v5351_v19  ;;  %v6301_v19 = vld [vmem:[%s8885_s6] sm:$0xff] }
 0x986   :  { %v7379_v49 = vpop.f32.mrf.mxu0 }
 0x987   :  { %v6149_v49 = vpop.permute.xlu0 %6148 }
 0x98d   :  { %v5728_v22 = vpop.f32.mrf.mxu1 }
 0x98e   :  { %v5964_v37 = vmul.f32 %v5728_v22, %v5348_v47 }
 0x98f   :  { %v7364_v31 = vpop.f32.mrf.mxu1 }
 0x990   :  { %7388 = vmatprep.mubr.msk.f32.mxu1 %vm207_vm2, %v5964_v37  ;;  %v7628_v37 = vmov 0   ;;  %v6302_v31 = vld [vmem:[%s8885_s6 + $0x8] sm:$0xff] }
 0x991   :  { %v5880_v35 = vpop.f32.mrf.mxu1  ;;  %7389 = vmatmul.mubr.msk.f32.gmra.mxu1 %vm207_vm2, %v5965_v32  ;;  %7469 = vset.pattern.permute.xlu0 %v7628_v37  ;;  %v6539_v37 = vld [vmem:[%s8893_s14 + $0x10] sm:$0xff] }
 0x992   :  { %v5966_v57 = vmul.f32 %v5880_v35, %v5350_v16 }
 0x993   :  { %v7374_v36 = vpop.f32.mrf.mxu1 }
 0x994   :  { %7391 = vmatprep.mubr.msk.f32.mxu1 %vm207_vm2, %v5966_v57 }
 0x995   :  { %7392 = vmatmul.mubr.msk.f32.gmra.mxu1 %vm207_vm2, %v5967_v39 }
 0x996   :  { %7421 = vmatprep.mubr.msk.f32.mxu1 %vm7615_vm1, %v7614_v12 }
 0x9e6   :  { %v7384_v25 = vpop.f32.mrf.mxu1 }
 0x9e7   :  { %v6098_v2 = vadd.f32 %v7384_v25, %v8519_v18  ;;  %v6782_v25 = vld [vmem:[#allocation2] ss:$0 sm:$0xff] }
 0x9e8   :  { %v6058_v1 = vpop.f32.mrf.mxu1 }
 0x9e9   :  { %v8663_v45 = vadd.f32 %v6781_v59, %v6098_v2  ;;  %v6097_v3 = vadd.f32 %v6058_v1, %v8521_v29 }
 0x9eb   :  { %v8666_v5 = vadd.f32 %v6781_v59, %v6097_v3  ;;  %v6121_v61 = vmax.f32 %v8663_v45, 0.0 }
 0x9ed   :  { %v6129_v63 = vmul.f32 %v8634_v54, %v6121_v61  ;;  %v6120_v7 = vmax.f32 %v8666_v5, 0.0 }
 0x9ef   :  { %6169 = vst.msk [vmem:[%s8883_s17 + $0x8] sm:$0xff] %vm70_vm0, %v6129_v63  ;;  %v6128_v18 = vmul.f32 %v8646_v44, %v6120_v7  ;;  %v6216_v63 = vld [vmem:[%s8887_s4] sm:$0xff] }
 0x9f1   :  { %6168 = vst.msk [vmem:[%s8883_s17] sm:$0xff] %vm70_vm0, %v6128_v18 }
 0xa22   :  { %v7387_v29 = vpop.f32.mrf.mxu1 }
 0xa23   :  { %v6100_v6 = vadd.f32 %v7387_v29, %v8527_v11  ;;  %v6151_v11 = vpop.permute.xlu1 %6150 }
 0xa24   :  { %v6068_v54 = vpop.f32.mrf.mxu1 }
 0xa25   :  { %v6115_v34 = vadd.f32 %v6781_v59, %v6100_v6  ;;  %v6099_v8 = vadd.f32 %v6068_v54, %v8529_v30 }
 0xa27   :  { %v6123_v24 = vmax.f32 %v6115_v34, 0.0  ;;  %v6114_v4 = vadd.f32 %v6781_v59, %v6099_v8  ;;  %v6147_v17 = vpop.permute.xlu1 %6146  ;;  %v6784_v34 = vld [vmem:[%s8888_s7] ss:$0 sm:$0xff] }
 0xa29   :  { %v6131_v14 = vmul.f32 %v8622_v20, %v6123_v24  ;;  %v6122_v10 = vmax.f32 %v6114_v4, 0.0 }
 0xa2b   :  { %6171 = vst.msk [vmem:[%s8883_s17 + $0x18] sm:$0xff] %vm70_vm0, %v6131_v14  ;;  %v6130_v44 = vmul.f32 %v8640_v53, %v6122_v10  ;;  %v6145_v60 = vpop.permute.xlu1 %6144 }
 0xa2d   :  { %6170 = vst.msk [vmem:[%s8883_s17 + $0x10] sm:$0xff] %vm70_vm0, %v6130_v44 }
 0xa51   :  { %v7390_v21 = vpop.f32.mrf.mxu1 }
 0xa52   :  { %v6102_v30 = vadd.f32 %v7390_v21, %v8535_v50 }
 0xa53   :  { %v6078_v15 = vpop.f32.mrf.mxu1 }
 0xa54   :  { %v6117_v27 = vadd.f32 %v6781_v59, %v6102_v30  ;;  %v6101_v20 = vadd.f32 %v6078_v15, %v8538_v28  ;;  %v6424_v15 = vld [vmem:[%s8889_s10 + $0x38] sm:$0xff] }
 0xa55   :  { %v7393_v13 = vpop.f32.mrf.mxu1 }
 0xa56   :  { %v6125_v46 = vmax.f32 %v6117_v27, 0.0  ;;  %v6116_v56 = vadd.f32 %v6781_v59, %v6101_v20  ;;  %v6104_v41 = vadd.f32 %v7393_v13, %v8541_v38  ;;  %v6423_v27 = vld [vmem:[%s8889_s10 + $0x30] sm:$0xff]  ;;  %v6422_v20 = vld [vmem:[%s8889_s10 + $0x28] sm:$0xff]  ;;  %v6421_v13 = vld [vmem:[%s8889_s10 + $0x20] sm:$0xff] }
 0xa57   :  { %v6088_v53 = vpop.f32.mrf.mxu1 }
 0xa58   :  { %v6133_v9 = vmul.f32 %v8616_v43, %v6125_v46  ;;  %v6124_v23 = vmax.f32 %v6116_v56, 0.0  ;;  %v6119_v33 = vadd.f32 %v6781_v59, %v6104_v41  ;;  %v6103_v58 = vadd.f32 %v6088_v53, %v8544_v42  ;;  %v6143_v42 = vpop.permute.xlu0 %6142  ;;  %v6418_v56 = vld [vmem:[%s8889_s10 + $0x8] sm:$0xff]  ;;  %v6417_v41 = vld [vmem:[%s8889_s10] sm:$0xff] }
 0xa59   :  { %v6165_v47 = vmul.f32 %v6147_v17, %v6125_v46  ;;  %v6163_v32 = vmul.f32 %v6143_v42, %v6123_v24  ;;  %v6420_v17 = vld [vmem:[%s8889_s10 + $0x18] sm:$0xff]  ;;  %v6419_v46 = vld [vmem:[%s8889_s10 + $0x10] sm:$0xff] }
 0xa5a   :  { %6173 = vst.msk [vmem:[%s8883_s17 + $0x28] sm:$0xff] %vm70_vm0, %v6133_v9  ;;  %v6132_v50 = vmul.f32 %v8628_v40, %v6124_v23  ;;  %v6127_v28 = vmax.f32 %v6119_v33, 0.0  ;;  %v6118_v55 = vadd.f32 %v6781_v59, %v6103_v58  ;;  %v6164_v22 = vmul.f32 %v6145_v60, %v6124_v23 }
 0xa5c   :  { %6172 = vst.msk [vmem:[%s8883_s17 + $0x20] sm:$0xff] %vm70_vm0, %v6132_v50  ;;  %v6135_v38 = vmul.f32 %v8604_v52, %v6127_v28  ;;  %v6167_v43 = vmul.f32 %v6151_v11, %v6127_v28  ;;  %v6126_v26 = vmax.f32 %v6118_v55, 0.0  ;;  %v6141_v52 = vpop.permute.xlu1 %6140  ;;  %v6139_v16 = vpop.permute.xlu0 %6138  ;;  %v6787_v50 = vld [vmem:[%s8891_s9] ss:$0 sm:$0xff] }
 0xa5d   :  { %v6162_v35 = vmul.f32 %v6141_v52, %v6122_v10  ;;  %v6161_v57 = vmul.f32 %v6139_v16, %v6121_v61 }
 0xa5e   :  { %6175 = vst.msk [vmem:[%s8883_s17 + $0x38] sm:$0xff] %vm70_vm0, %v6135_v38  ;;  %6198 = vrot.lane.b32.xlu0 %v6167_v43, %s7616_s24  ;;  %v6134_v40 = vmul.f32 %v8610_v62, %v6126_v26  ;;  %v6166_v0 = vmul.f32 %v6149_v49, %v6126_v26  ;;  %v6304_v62 = vld [vmem:[%s8885_s6 + $0x18] sm:$0xff]  ;;  %v6786_v49 = vld [vmem:[%s8890_s8] ss:$0 sm:$0xff] }
 0xa5f   :  { %7414 = vmatpush3.msra.mxu1 %v6304_v62  ;;  %v6788_v43 = vld [vmem:[%s8892_s11] ss:$0 sm:$0xff] }
 0xa60   :  { %6174 = vst.msk [vmem:[%s8883_s17 + $0x30] sm:$0xff] %vm70_vm0, %v6134_v40  ;;  %6196 = vrot.lane.b32.xlu1 %v6166_v0, %s7616_s24  ;;  %7415 = vmatprep.subr.mxu1 %v7614_v12  ;;  %v6137_v39 = vpop.permute.xlu1 %6136 }
 0xa61   :  { %7416 = vmatpush3.msra.mxu1 %v6303_v51  ;;  %v6160_v36 = vmul.f32 %v6137_v39, %v6120_v7  ;;  %v6790_v39 = vld [vmem:[%s8894_s12] ss:$0 sm:$0xff] }
 0xa62   :  { %6194 = vrot.lane.b32.xlu0 %v6165_v47, %s7616_s24  ;;  %7417 = vmatprep.subr.mxu1 %v7614_v12 }
 0xa63   :  { %7418 = vmatpush3.msra.mxu1 %v6302_v31  ;;  %v6537_v31 = vld [vmem:[%s8893_s14] sm:$0xff] }
 0xa64   :  { %6192 = vrot.lane.b32.xlu1 %v6164_v22, %s7616_s24  ;;  %7419 = vmatprep.subr.mxu1 %v7614_v12  ;;  %v6540_v22 = vld [vmem:[%s8893_s14 + $0x18] sm:$0xff] }
 0xa65   :  { %7420 = vmatpush3.msra.mxu1 %v6301_v19 }
 0xa66   :  { %6190 = vrot.lane.b32.xlu0 %v6163_v32, %s7616_s24  ;;  %7443 = vmatprep.subr.mxu1 %v7614_v12  ;;  %v6538_v32 = vld [vmem:[%s8893_s14 + $0x8] sm:$0xff] }
 0xa68   :  { %6188 = vrot.lane.b32.xlu1 %v6162_v35, %s7616_s24 }
 0xa6a   :  { %6186 = vrot.lane.b32.xlu0 %v6161_v57, %s7616_s24 }
 0xa6c   :  { %6184 = vrot.lane.b32.xlu1 %v6160_v36, %s7616_s24 }
 0xa6e   :  { %6224 = vperm.xlu0 %7469, %v6782_v25   ;;  %v6791_v25 = vld [vmem:[%s8895_s13] ss:$0 sm:$0xff] }
 0xad0   :  { %v6199_v59 = vpop.permute.xlu0 %6198 }
 0xad1   :  { %6215 = vst.msk [vmem:[%s8886_s16 + $0x38] sm:$0xff] %vm70_vm0, %v6199_v59  ;;  %7395 = vmatpush3.msra.mxu0 %v6199_v59 }
 0xad2   :  { %7396 = vmatprep.subr.mxu0 %v7614_v12  ;;  %v6197_v2 = vpop.permute.xlu1 %6196 }
 0xad3   :  { %6214 = vst.msk [vmem:[%s8886_s16 + $0x30] sm:$0xff] %vm70_vm0, %v6197_v2  ;;  %7397 = vmatpush3.msra.mxu0 %v6197_v2 }
 0xad4   :  { %v6195_v1 = vpop.permute.xlu0 %6194  ;;  %7398 = vmatprep.subr.mxu0 %v7614_v12 }
 0xad5   :  { %6213 = vst.msk [vmem:[%s8886_s16 + $0x28] sm:$0xff] %vm70_vm0, %v6195_v1  ;;  %7399 = vmatpush3.msra.mxu0 %v6195_v1 }
 0xad6   :  { %7400 = vmatprep.subr.mxu0 %v7614_v12  ;;  %v6193_v45 = vpop.permute.xlu1 %6192 }
 0xad7   :  { %6212 = vst.msk [vmem:[%s8886_s16 + $0x20] sm:$0xff] %vm70_vm0, %v6193_v45  ;;  %7401 = vmatpush3.msra.mxu0 %v6193_v45 }
 0xad8   :  { %v6191_v3 = vpop.permute.xlu0 %6190  ;;  %7402 = vmatprep.subr.mxu0 %v7614_v12 }
 0xad9   :  { %6211 = vst.msk [vmem:[%s8886_s16 + $0x18] sm:$0xff] %vm70_vm0, %v6191_v3  ;;  %7403 = vmatpush3.msra.mxu0 %v6191_v3 }
 0xada   :  { %7404 = vmatprep.subr.mxu0 %v7614_v12  ;;  %v6189_v5 = vpop.permute.xlu1 %6188 }
 0xadb   :  { %6210 = vst.msk [vmem:[%s8886_s16 + $0x10] sm:$0xff] %vm70_vm0, %v6189_v5  ;;  %7405 = vmatpush3.msra.mxu0 %v6189_v5 }
 0xadc   :  { %v6187_v61 = vpop.permute.xlu0 %6186  ;;  %7406 = vmatprep.subr.mxu0 %v7614_v12 }
 0xadd   :  { %6209 = vst.msk [vmem:[%s8886_s16 + $0x8] sm:$0xff] %vm70_vm0, %v6187_v61  ;;  %7407 = vmatpush3.msra.mxu0 %v6187_v61 }
 0xade   :  { %7408 = vmatprep.subr.mxu0 %v7614_v12  ;;  %v6185_v7 = vpop.permute.xlu1 %6184 }
 0xadf   :  { %6208 = vst.msk [vmem:[%s8886_s16] sm:$0xff] %vm70_vm0, %v6185_v7  ;;  %7409 = vmatpush3.msra.mxu0 %v6185_v7 }
 0xae0   :  { %7411 = vmatmul.mubr.msk.f32.vlgmr.msra.gmra.mxu0 %vm6227_vm3, %v6216_v63  ;;  %7424 = vmatprep.subr.mxu0 %v7614_v12 }
 0xae1   :  { %7440 = vmatprep.mubr.msk.f32.mxu0 %vm7615_vm1, %v7614_v12  ;;  %7425 = vmatpush3.msra.mxu0 %v6424_v15 }
 0xae2   :  { %7426 = vmatprep.subr.mxu0 %v7614_v12 }
 0xae3   :  { %7427 = vmatpush3.msra.mxu0 %v6423_v27 }
 0xae4   :  { %7428 = vmatprep.subr.mxu0 %v7614_v12 }
 0xae5   :  { %7429 = vmatpush3.msra.mxu0 %v6422_v20 }
 0xae6   :  { %7430 = vmatprep.subr.mxu0 %v7614_v12 }
 0xae7   :  { %7431 = vmatpush3.msra.mxu0 %v6421_v13 }
 0xae8   :  { %7432 = vmatprep.subr.mxu0 %v7614_v12 }
 0xae9   :  { %v6225_v18 = vpop.permute.xlu0 %6224  ;;  %7433 = vmatpush3.msra.mxu0 %v6420_v17 }
 0xaea   :  { %7434 = vmatprep.subr.mxu0 %v7614_v12 }
 0xaeb   :  { %7435 = vmatpush3.msra.mxu0 %v6419_v46 }
 0xaec   :  { %7436 = vmatprep.subr.mxu0 %v7614_v12 }
 0xaed   :  { %7437 = vmatpush3.msra.mxu0 %v6418_v56 }
 0xaee   :  { %7438 = vmatprep.subr.mxu0 %v7614_v12 }
 0xaef   :  { %7439 = vmatpush3.msra.mxu0 %v6417_v41 }
 0xba0   :  { %v6297_v29 = vpop.f32.mrf.mxu0 }
 0xba1   :  { %v6298_v6 = vadd.f32 %v6297_v29, %v6225_v18 }
 0xba2   :  { %v7412_v54 = vpop.f32.mrf.mxu0 }
 0xba3   :  { %7422 = vmatmul.mubr.msk.f32.vlgmr.msra.gmra.mxu1 %vm70_vm0, %v6298_v6 }
 0xba4   :  { %7451 = vmatprep.mubr.msk.f32.mxu1 %vm7615_vm1, %v7614_v12  ;;  %7444 = vmatpush3.msra.mxu1 %v6540_v22 }
 0xba5   :  { %7445 = vmatprep.subr.mxu1 %v7614_v12 }
 0xba6   :  { %7446 = vmatpush3.msra.mxu1 %v6539_v37 }
 0xba7   :  { %7447 = vmatprep.subr.mxu1 %v7614_v12 }
 0xba8   :  { %7448 = vmatpush3.msra.mxu1 %v6538_v32 }
 0xba9   :  { %7449 = vmatprep.subr.mxu1 %v7614_v12  ;;  %v6792_v12 = vld [vmem:[%s8896_s15] ss:$0 sm:$0xff] }
 0xbaa   :  { %7450 = vmatpush3.msra.mxu1 %v6537_v31 }
 0xc63   :  { %v6381_v8 = vpop.f32.mrf.mxu1 }
 0xc64   :  { %v6382_v24 = vadd.f32 %v6784_v34, %v6381_v8 }
 0xc65   :  { %v7423_v4 = vpop.f32.mrf.mxu1 }
 0xc66   :  { %v6385_v14 = vsel %vm6227_vm3, %v6382_v24, 0.0 }
 0xc67   :  { %6386 = vadd.xlane.f32.xlu1 %v6385_v14 }
 0xcf0   :  { %v6387_v10 = vpop.xlane.xlu1 %6386 }
 0xcf1   :  { %v6389_v44 = vmul.f32 0.015625, %v6387_v10 }
 0xcf3   :  { %v6390_v11 = vsub.f32 %v6382_v24, %v6389_v44 }
 0xcf5   :  { %v6391_v21 = vmul.f32 %v6390_v11, %v6390_v11 }
 0xcf7   :  { %v6392_v30 = vsel %vm6227_vm3, %v6391_v21, 0.0 }
 0xcf8   :  { %6393 = vadd.xlane.f32.xlu0 %v6392_v30 }
 0xd81   :  { %v6394_v53 = vpop.xlane.xlu0 %6393 }
 0xd82   :  { %v6395_v9 = vmul.f32 0.015625, %v6394_v53 }
 0xd84   :  { %v6396_v23 = vadd.f32 1e-05, %v6395_v9 }
 0xd86   :  { %7598 = vrsqrt.f32 %v6396_v23 }
 0xd93   :  { %v7599_v33 = vpop.eup %7598 }
 0xd94   :  { %v6398_v58 = vmul.f32 %v7599_v33, %v6390_v11 }
 0xd96   :  { %v6406_v28 = vmul.f32 %v6786_v49, %v6398_v58 }
 0xd98   :  { %v6414_v55 = vadd.f32 %v6787_v50, %v6406_v28 }
 0xd9a   :  { %v6415_v60 = vmul.f32 0.2, %v6414_v55 }
 0xd9c   :  { %v6416_v38 = vmax.f32 %v6414_v55, %v6415_v60 }
 0xd9e   :  { %7441 = vmatmul.mubr.msk.f32.vlgmr.msra.gmra.mxu0 %vm6227_vm3, %v6416_v38 }
 0xe5e   :  { %v6501_v26 = vpop.f32.mrf.mxu0 }
 0xe5f   :  { %v6502_v42 = vadd.f32 %v6788_v43, %v6501_v26 }
 0xe60   :  { %v7442_v40 = vpop.f32.mrf.mxu0 }
 0xe61   :  { %v6505_v0 = vsel %vm70_vm0, %v6502_v42, 0.0 }
 0xe62   :  { %6506 = vadd.xlane.f32.xlu1 %v6505_v0 }
 0xeeb   :  { %v6507_v47 = vpop.xlane.xlu1 %6506 }
 0xeec   :  { %v6509_v52 = vmul.f32 0.03125, %v6507_v47 }
 0xeee   :  { %v6510_v48 = vsub.f32 %v6502_v42, %v6509_v52 }
 0xef0   :  { %v6511_v62 = vmul.f32 %v6510_v48, %v6510_v48 }
 0xef2   :  { %v6512_v51 = vsel %vm70_vm0, %v6511_v62, 0.0 }
 0xef3   :  { %6513 = vadd.xlane.f32.xlu0 %v6512_v51 }
 0xf7c   :  { %v6514_v16 = vpop.xlane.xlu0 %6513 }
 0xf7d   :  { %v6515_v19 = vmul.f32 0.03125, %v6514_v16 }
 0xf7f   :  { %v6516_v35 = vadd.f32 1e-05, %v6515_v19 }
 0xf81   :  { %7600 = vrsqrt.f32 %v6516_v35 }
 0xf8e   :  { %v7601_v57 = vpop.eup %7600 }
 0xf8f   :  { %v6518_v36 = vmul.f32 %v7601_v57, %v6510_v48 }
 0xf91   :  { %v6526_v59 = vmul.f32 %v6790_v39, %v6518_v36 }
 0xf93   :  { %v6534_v2 = vadd.f32 %v6791_v25, %v6526_v59 }
 0xf95   :  { %v6535_v1 = vmul.f32 0.2, %v6534_v2 }
 0xf97   :  { %v6536_v45 = vmax.f32 %v6534_v2, %v6535_v1 }
 0xf99   :  { %7452 = vmatmul.mubr.msk.f32.vlgmr.msra.gmra.mxu1 %vm70_vm0, %v6536_v45 }
0x1059   :  { %v6617_v3 = vpop.f32.mrf.mxu1 }
0x105a   :  { %v6618_v5 = vadd.f32 %v6792_v12, %v6617_v3 }
0x105b   :  { %v7453_v61 = vpop.f32.mrf.mxu1 }
0x105c   :  { %v6621_v63 = vsel %vm207_vm2, %v6618_v5, -inf }
0x105d   :  { %6622 = vmax.xlane.f32.xlu1 %v6621_v63 }
0x10e6   :  { %v6623_v7 = vpop.xlane.xlu1 %6622 }
0x10e7   :  { %v6624_v18 = vsub.f32 %v6618_v5, %v6623_v7 }
0x10e9   :  { %v6625_v29 = vmul.f32 1.442695, %v6624_v18 }
0x10eb   :  { %7602 = vpow2.f32 %v6625_v29 }
0x10f8   :  { %v7603_v6 = vpop.eup %7602 }
0x10f9   :  { %v6627_v54 = vsel %vm207_vm2, %v7603_v6, 0.0 }
0x10fa   :  { %6628 = vadd.xlane.f32.xlu0 %v6627_v54 }
0x1183   :  { %v6629_v34 = vpop.xlane.xlu0 %6628 }
0x1184   :  { %7604 = vrcp.f32 %v6629_v34 }
0x1191   :  { %v7605_v8 = vpop.eup %7604 }
0x1192   :  { %v6631_v24 = vmul.f32 %v7605_v8, %v7603_v6 }
0x1194   :  { %6632 = vst.msk [vmem:[%s8897_s18] sm:$0xff] %vm207_vm2, %v6631_v24 }

</bundles_post_ra>
